<compile_context>
chip_gen: v5e
topology: v5e:2x2
jax: 0.10.0
libtpu: 0.0.40
codegen_flags: <defaults>
</compile_context>

<pallas_src>
import math

import jax
import jax.numpy as jnp
from jax import lax
from jax.experimental import pallas as pl
from jax.experimental.pallas import tpu as pltpu

# Hyperparameters ~ ResNetReshapeTransformer(patch_size=2, channels=4,
# n_embd=32, n_head=4, n_layer=2, depth=1, final_relu=True, dropout=0.2)
PATCH_SIZE = 2
CHANNELS = 4
N_EMBD = 32
N_HEAD = 4
N_LAYER = 2
FINAL_RELU = True
DROPOUT = 0.2                            # all dropouts are identity in inference mode
BLOCK_SIZE = PATCH_SIZE ** 2 * CHANNELS  # wpe embedding rows (16)
HEAD_DIM = N_EMBD // N_HEAD              # 8
T = 4                                    # tokens after reshape(B, 4, -1)
L_IN = BLOCK_SIZE // T                   # per-token input features (4)
TE = T * N_EMBD                          # lane-flattened token*embed width (128)
FE = T * 4 * N_EMBD                      # lane-flattened MLP hidden width (512)
SW = T * TE                              # fused per-offset score width (512)
IN_W = T * L_IN                          # flattened per-sample input/output width (16)
LN_EPS = 1e-5
INV_SQRT2 = 1.0 / math.sqrt(2.0)

VEC_W = FE                               # packed bias row width (512)

# Packed-vector row indices (LN gains/biases no longer needed: folded into weights).
ROW_WTE_B = 0
ROW_POS = 1
ROW_LM_B = 2                # bias induced by folding ln_f's bias into lm_head
ROW_LAYER0 = 3
ROWS_PER_LAYER = 4          # b_qkv, b_out, b_fc, b_proj (all folds pre-applied)
N_VEC = ROW_LAYER0 + ROWS_PER_LAYER * N_LAYER


def _round_up(n, m):
    return (n + m - 1) // m * m


def _silu(z):
    # SiLU with a single EUP op per element: sigmoid(z) = 0.5*tanh(0.5*z) + 0.5.
    return z * (0.5 * jnp.tanh(0.5 * z) + 0.5)


# --------------------------------------------------------------------------- #
# Kernel
# --------------------------------------------------------------------------- #
def _transformer_kernel(*refs):
    (x_ref, wte_ref, avg2_ref, rb8_ref, wlm_ref, vecs_ref) = refs[:6]
    layer_refs = refs[6:6 + 4 * N_LAYER]
    out_ref = refs[-1]

    avg2 = avg2_ref[...]   # (2*TE, 2*TE) f32 blockdiag(avg, avg): fused LN stats
    rb8b = rb8_ref[...]    # (SW, SW) bf16 blockdiag of per-(token,head) sum matrix

    def vec(row, width):   # (1, width) broadcastable bias / pos row (f32)
        return vecs_ref[row:row + 1, 0:width]

    def layernorm(z):
        # Fused E[z] / E[z^2] via ONE f32 matmul (K=N=256 fills 256x256 MXUs).
        # Returns the un-affined normalized value; gains/biases are folded into
        # the downstream weight matrices in pack_params.
        zz = jnp.concatenate([z, z * z], axis=1)                    # (TB, 256)
        stats = jnp.dot(zz, avg2, preferred_element_type=jnp.float32)
        mu = stats[:, 0:TE]
        var = stats[:, TE:2 * TE] - mu * mu
        return (z - mu) * lax.rsqrt(var + LN_EPS)

    # wte (block-diagonal) + SiLU + positional embedding.  Dropout = identity.
    x = x_ref[...]                                                   # (TB, 16)
    h = jnp.dot(x.astype(jnp.bfloat16), wte_ref[...],
                preferred_element_type=jnp.float32) + vec(ROW_WTE_B, TE)
    h = _silu(h) + vec(ROW_POS, TE)                                  # (TB, 128) f32

    for l in range(N_LAYER):
        w_qkv = layer_refs[4 * l + 0][...]     # (TE, 3*TE) bf16 (ln1 folded in)
        w_out = layer_refs[4 * l + 1][...]     # (TE, TE)   bf16 (1/sqrt2 folded)
        w_fc = layer_refs[4 * l + 2][...]      # (TE, FE)   bf16 (ln2 folded in)
        w_proj = layer_refs[4 * l + 3][...]    # (FE, TE)   bf16 (1/sqrt2 folded)
        base = ROW_LAYER0 + ROWS_PER_LAYER * l
        r_bqkv, r_bout, r_bfc, r_bproj = base, base + 1, base + 2, base + 3

        # --- attention block:  h += out_proj(attn(ln_1(h))) / sqrt(2) ---------
        hn = layernorm(h)
        qkv = jnp.dot(hn.astype(jnp.bfloat16), w_qkv,
                      preferred_element_type=jnp.float32) + vec(r_bqkv, 3 * TE)
        q = qkv[:, 0:TE]            # lane = 32*i + 8*h + d ; 1/sqrt(hd) pre-folded
        k = qkv[:, TE:2 * TE]
        v = qkv[:, 2 * TE:3 * TE]

        # For offset r, roll k/v by r whole tokens (XLU).  All four per-offset
        # q*k_r products are concatenated along lanes and reduced per head by a
        # single (TB,512)x(512,512) bf16 matmul against blockdiag(rb8 x4).
        qk_parts, v_rolled = [], []
        for r in range(T):
            shift = (N_EMBD * r) % TE
            if shift:
                k_r = pltpu.roll(k, shift, axis=1)
                v_r = pltpu.roll(v, shift, axis=1)
            else:
                k_r, v_r = k, v
            v_rolled.append(v_r)
            qk_parts.append(q * k_r)
        qk = jnp.concatenate(qk_parts, axis=1).astype(jnp.bfloat16)  # (TB, 512)
        s_all = jnp.dot(qk, rb8b, preferred_element_type=jnp.float32)
        scores = [s_all[:, r * TE:(r + 1) * TE] for r in range(T)]

        s_max = scores[0]
        for r in range(1, T):
            s_max = jnp.maximum(s_max, scores[r])
        exps = [jnp.exp(s - s_max) for s in scores]
        denom = exps[0]
        for r in range(1, T):
            denom = denom + exps[r]
        inv = pl.reciprocal(denom, approx=True)
        attn = exps[0] * v_rolled[0]
        for r in range(1, T):
            attn = attn + exps[r] * v_rolled[r]
        attn = attn * inv                               # (TB, 128): heads concat / token

        proj = jnp.dot(attn.astype(jnp.bfloat16), w_out,
                       preferred_element_type=jnp.float32) + vec(r_bout, TE)
        h = h + proj                                    # 1/sqrt(2) already folded

        # --- MLP block:  h += c_proj(silu(c_fc(ln_2(h)))) / sqrt(2) -----------
        hn2 = layernorm(h)
        m1 = _silu(jnp.dot(hn2.astype(jnp.bfloat16), w_fc,
                           preferred_element_type=jnp.float32) + vec(r_bfc, FE))
        m2 = jnp.dot(m1.astype(jnp.bfloat16), w_proj,
                     preferred_element_type=jnp.float32) + vec(r_bproj, TE)
        h = h + m2                                      # 1/sqrt(2) already folded

    h = layernorm(h)                                    # ln_f affine folded into w_lm
    logits = jnp.dot(h.astype(jnp.bfloat16), wlm_ref[...],
                     preferred_element_type=jnp.float32) + vec(ROW_LM_B, IN_W)
    if FINAL_RELU:
        logits = jnp.maximum(logits, 0.0)
    out_ref[...] = logits


# --------------------------------------------------------------------------- #
# Parameter packing (PyTorch layout -> lane-flattened block-diagonal bf16 layout)
# --------------------------------------------------------------------------- #
def pack_params(raw):
    eye_t = jnp.eye(T, dtype=jnp.float32)
    E = N_EMBD

    def blockdiag(w_in_out):          # (in, out) per-token weight -> (T*in, T*out)
        return jnp.kron(eye_t, w_in_out)

    def tiled(v):                     # (n,) per-token vector -> (T*n,)
        return jnp.tile(v, T)

    def padded_row(v):
        return jnp.pad(v, (0, VEC_W - v.shape[0]))

    def as_bf16(w):
        return w.astype(jnp.bfloat16)

    scale = 1.0 / math.sqrt(HEAD_DIM)

    w_wte = as_bf16(blockdiag(raw["wte_w"].T))                        # (16, 128)

    # Fused LayerNorm-stat constant (kept f32 for accuracy): blockdiag(avg, avg).
    avg_tok = jnp.full((E, E), 1.0 / E, jnp.float32)
    avg_te = jnp.kron(eye_t, avg_tok)                                 # (128, 128)
    avg2 = jnp.kron(jnp.eye(2, dtype=jnp.float32), avg_te)            # (256, 256)

    # Per-(token, head) 8-lane sum + broadcast, block-diag over the 4 key offsets.
    rb8 = jnp.kron(jnp.eye(T * N_HEAD, dtype=jnp.float32),
                   jnp.ones((HEAD_DIM, HEAD_DIM), jnp.float32))       # (128, 128)
    rb8_big = as_bf16(jnp.kron(eye_t, rb8))                           # (512, 512)

    # lm_head with ln_f affine folded in (gain scales weight rows; the ln_f bias
    # becomes an output bias because lm_head itself is bias-free).
    w_lm_tok = raw["lnf_w"][:, None] * raw["lm_w"].T                  # (32, 4)
    b_lm_tok = raw["lnf_b"] @ raw["lm_w"].T                           # (4,)
    w_lm = as_bf16(blockdiag(w_lm_tok))                               # (128, 16)

    vec_rows = [jnp.zeros((VEC_W,), jnp.float32) for _ in range(N_VEC)]
    vec_rows[ROW_WTE_B] = padded_row(tiled(raw["wte_b"]))
    vec_rows[ROW_POS] = padded_row(raw["wpe"][:T].reshape(-1))
    vec_rows[ROW_LM_B] = padded_row(tiled(b_lm_tok))

    layer_ws = []
    for l, lp in enumerate(raw["layers"]):
        g1, b1 = lp["ln1_w"], lp["ln1_b"]
        g2, b2 = lp["ln2_w"], lp["ln2_b"]

        # 1/sqrt(head_dim) folded into q; ln_1 affine folded into q/k/v:
        #   w' = diag(g1) @ w ,  b' = b1 @ w + b   (bias fold uses the pre-gain w).
        wq = lp["attn_in_w"][:E].T * scale
        wk = lp["attn_in_w"][E:2 * E].T
        wv = lp["attn_in_w"][2 * E:].T
        bq = b1 @ wq + lp["attn_in_b"][:E] * scale
        bk = b1 @ wk + lp["attn_in_b"][E:2 * E]
        bv = b1 @ wv + lp["attn_in_b"][2 * E:]
        wq, wk, wv = g1[:, None] * wq, g1[:, None] * wk, g1[:, None] * wv

        w_qkv = as_bf16(jnp.concatenate(
            [blockdiag(wq), blockdiag(wk), blockdiag(wv)], axis=1))   # (128, 384)
        b_qkv = jnp.concatenate([tiled(bq), tiled(bk), tiled(bv)])    # (384,)

        # Residual 1/sqrt(2) folded into out_proj and c_proj.
        w_out = as_bf16(blockdiag(lp["attn_out_w"].T * INV_SQRT2))    # (128, 128)
        b_out = tiled(lp["attn_out_b"] * INV_SQRT2)

        # ln_2 affine folded into c_fc.
        w_fc_tok = lp["fc_w"].T                                       # (32, 128)
        b_fc_tok = b2 @ w_fc_tok + lp["fc_b"]
        w_fc = as_bf16(blockdiag(g2[:, None] * w_fc_tok))             # (128, 512)
        b_fc = tiled(b_fc_tok)

        w_proj = as_bf16(blockdiag(lp["proj_w"].T * INV_SQRT2))       # (512, 128)
        b_proj = tiled(lp["proj_b"] * INV_SQRT2)

        layer_ws += [w_qkv, w_out, w_fc, w_proj]
        base = ROW_LAYER0 + ROWS_PER_LAYER * l
        vec_rows[base + 0] = padded_row(b_qkv)
        vec_rows[base + 1] = padded_row(b_out)
        vec_rows[base + 2] = padded_row(b_fc)
        vec_rows[base + 3] = padded_row(b_proj)

    vecs = jnp.stack(vec_rows)
    vecs = jnp.pad(vecs, ((0, _round_up(N_VEC, 8) - N_VEC), (0, 0)))  # sublane-align

    # TODO(synk): source assigns `wte.weights = lm_head.weight` (attribute typo) — a
    # no-op in PyTorch, so no actual weight tying is reproduced here either.
    return [w_wte, avg2, rb8_big, w_lm, vecs] + layer_ws


# --------------------------------------------------------------------------- #
# Wrapper
# --------------------------------------------------------------------------- #
def _vmem_capacity_bytes():
    try:
        info = pltpu.get_tpu_info()
        return int(getattr(info, "vmem_capacity_bytes", 64 << 20))
    except Exception:
        return 64 << 20            # conservative (v7x-sized) fallback


def _pick_tiling(B):
    vmem_cap = _vmem_capacity_bytes()
    # 128 MiB-VMEM chips (v5e/v6e) take 1024-row tiles; 64 MiB (v7x) capped at 512.
    max_tile_b = 1024 if vmem_cap >= (96 << 20) else 512
    # Cap the tile at ceil(B/2) so the grid has >= 2 "parallel" steps: on v7x the
    # batch axis then shards over both TensorCores (one extra ~0.35us step on 1-TC
    # chips is noise).
    tile_b = min(max_tile_b, max(8, _round_up(-(-B // 2), 8)))
    b_pad = _round_up(B, tile_b)
    return tile_b, b_pad, vmem_cap


def resnet_reshape_transformer(x, packed):
    shape = x.shape
    B = shape[0]
    xf = x.reshape(B, -1).astype(jnp.float32)
    assert xf.shape[1] == IN_W, "module requires C*H*W == 16 (wte = Linear(4, n_embd))"

    tile_b, b_pad, vmem_cap = _pick_tiling(B)
    if b_pad != B:
        xf = jnp.pad(xf, ((0, b_pad - B), (0, 0)))
    grid = (b_pad // tile_b,)

    in_specs = [pl.BlockSpec((tile_b, IN_W), lambda i: (i, 0))]
    # Constant weights: full-array blocks with a constant index_map -> fetched once.
    # (Single-buffering them would free another ~1.6 MiB; not needed at these tiles.)
    in_specs += [pl.BlockSpec(p.shape, lambda i: (0, 0)) for p in packed]
    out_specs = pl.BlockSpec((tile_b, IN_W), lambda i: (i, 0))

    # Advisory cost estimate for the XLA scheduler.
    per_layer_kn = (2 * (2 * TE) * (2 * TE)      # 2 fused LN-stat matmuls
                    + TE * 3 * TE                # qkv
                    + SW * SW                    # fused per-offset score matmul
                    + TE * TE                    # out_proj
                    + TE * FE + FE * TE)         # c_fc / c_proj
    total_kn = IN_W * TE + N_LAYER * per_layer_kn + (2 * TE) * (2 * TE) + TE * IN_W
    param_bytes = sum(int(p.size) * p.dtype.itemsize for p in packed)
    cost = pl.CostEstimate(
        flops=2 * b_pad * total_kn,
        transcendentals=b_pad * (TE + N_LAYER * (2 * TE + T * TE + TE + FE) + TE),
        bytes_accessed=2 * b_pad * IN_W * 4 + param_bytes,
    )

    # Right-sized VMEM ask: double-buffered weights + per-row intermediates + slack.
    vmem_limit = 12 * (1 << 20) + 2 * param_bytes + tile_b * 32 * 1024
    vmem_limit = int(min(vmem_limit, int(0.85 * vmem_cap)))
    vmem_limit = max(vmem_limit, 16 * (1 << 20))

    out = pl.pallas_call(
        _transformer_kernel,
        out_shape=jax.ShapeDtypeStruct((b_pad, IN_W), jnp.float32),
        grid=grid,
        in_specs=in_specs,
        out_specs=out_specs,
        compiler_params=pltpu.CompilerParams(
            dimension_semantics=("parallel",),
            vmem_limit_bytes=vmem_limit,
        ),
        cost_estimate=cost,
    )(xf, *packed)

    return out[:B].reshape(shape)


# --------------------------------------------------------------------------- #
# Synthetic parameters + pure-JAX reference (original per-token math, f32)
# --------------------------------------------------------------------------- #
def init_raw_params(key):
    """Deterministic synthetic parameters in the original PyTorch layout.
    Weights ~ N(0, 0.02); biases / LN params get small random values (instead of
    the zeros/ones of the PyTorch init) so every packed/folded path is tested."""
    std = 0.02
    keys = iter(jax.random.split(key, 64))

    def nrm(shape):
        return std * jax.random.normal(next(keys), shape, dtype=jnp.float32)

    raw = {
        "wte_w": nrm((N_EMBD, L_IN)),        # Linear(4, E).weight  (out, in)
        "wte_b": nrm((N_EMBD,)),
        "wpe": nrm((BLOCK_SIZE, N_EMBD)),    # Embedding(16, E)
        "lnf_w": 1.0 + nrm((N_EMBD,)),
        "lnf_b": nrm((N_EMBD,)),
        "lm_w": nrm((L_IN, N_EMBD)),         # Linear(E, 4, bias=False).weight
        "layers": [],
    }
    for _ in range(N_LAYER):
        raw["layers"].append({
            "ln1_w": 1.0 + nrm((N_EMBD,)), "ln1_b": nrm((N_EMBD,)),
            "attn_in_w": nrm((3 * N_EMBD, N_EMBD)),    # MHA in_proj_weight
            "attn_in_b": nrm((3 * N_EMBD,)),
            "attn_out_w": nrm((N_EMBD, N_EMBD)),       # MHA out_proj.weight
            "attn_out_b": nrm((N_EMBD,)),
            "ln2_w": 1.0 + nrm((N_EMBD,)), "ln2_b": nrm((N_EMBD,)),
            "fc_w": nrm((4 * N_EMBD, N_EMBD)),         # MLP c_fc.weight
            "fc_b": nrm((4 * N_EMBD,)),
            "proj_w": nrm((N_EMBD, 4 * N_EMBD)),       # MLP c_proj.weight
            "proj_b": nrm((N_EMBD,)),
        })
    return raw


def _silu_ref(z):
    return z * jax.nn.sigmoid(z)


def _ln_ref(z, g, b):
    mu = jnp.mean(z, axis=-1, keepdims=True)
    var = jnp.mean((z - mu) ** 2, axis=-1, keepdims=True)
    return (z - mu) * lax.rsqrt(var + LN_EPS) * g + b


def reference_forward(x, raw):
    """Pure-JAX re-implementation of the PyTorch module (eval mode)."""
    shape = x.shape
    B = shape[0]
    xs = x.reshape(B, T, L_IN).astype(jnp.float32)
    h = _silu_ref(xs @ raw["wte_w"].T + raw["wte_b"]) + raw["wpe"][:T]
    for lp in raw["layers"]:
        hn = _ln_ref(h, lp["ln1_w"], lp["ln1_b"])
        qkv = hn @ lp["attn_in_w"].T + lp["attn_in_b"]
        q, k, v = jnp.split(qkv, 3, axis=-1)
        qh = q.reshape(B, T, N_HEAD, HEAD_DIM).transpose(0, 2, 1, 3)
        kh = k.reshape(B, T, N_HEAD, HEAD_DIM).transpose(0, 2, 1, 3)
        vh = v.reshape(B, T, N_HEAD, HEAD_DIM).transpose(0, 2, 1, 3)
        s = (qh @ kh.transpose(0, 1, 3, 2)) / math.sqrt(HEAD_DIM)
        a = jax.nn.softmax(s, axis=-1)
        o = (a @ vh).transpose(0, 2, 1, 3).reshape(B, T, N_EMBD)
        o = o @ lp["attn_out_w"].T + lp["attn_out_b"]
        h = h + o * INV_SQRT2
        hn2 = _ln_ref(h, lp["ln2_w"], lp["ln2_b"])
        m = _silu_ref(hn2 @ lp["fc_w"].T + lp["fc_b"]) @ lp["proj_w"].T + lp["proj_b"]
        h = h + m * INV_SQRT2
    h = _ln_ref(h, raw["lnf_w"], raw["lnf_b"])
    logits = h @ raw["lm_w"].T
    if FINAL_RELU:
        logits = jnp.maximum(logits, 0.0)
    return logits.reshape(shape)


if __name__ == "__main__":
    key = jax.random.PRNGKey(0)
    pkey, xkey, xkey2 = jax.random.split(key, 3)
    raw = init_raw_params(pkey)
    packed = pack_params(raw)

    # NCHW input; the module forces C*H*W == 16 (wte = nn.Linear(4, n_embd)).
    x = jax.random.normal(xkey, (2, CHANNELS, PATCH_SIZE, PATCH_SIZE), dtype=jnp.float32)
    out = jax.block_until_ready(resnet_reshape_transformer(x, packed))
    assert out.shape == x.shape and out.dtype == jnp.float32

    ref = reference_forward(x, raw)
    max_err = float(jnp.max(jnp.abs(out - ref)))
    assert jnp.allclose(out, ref, atol=5e-3, rtol=5e-3), f"max_err={max_err}"

    # Larger batch exercises batch padding and a multi-step (grid >= 2) pipeline.
    x2 = jax.random.normal(xkey2, (24, CHANNELS, PATCH_SIZE, PATCH_SIZE),
                           dtype=jnp.float32)
    out2 = jax.block_until_ready(resnet_reshape_transformer(x2, packed))
    ref2 = reference_forward(x2, raw)
    max_err2 = float(jnp.max(jnp.abs(out2 - ref2)))
    assert jnp.allclose(out2, ref2, atol=5e-3, rtol=5e-3), f"max_err2={max_err2}"

    print("KERNEL_OK")
</pallas_src>

<mosaic_0001>
module attributes {stable_mosaic.version = 11 : i64} {
  func.func @_transformer_kernel(%arg0: i32, %arg1: memref<8x16xf32, #tpu.memory_space<vmem>>, %arg2: memref<16x128xbf16, #tpu.memory_space<vmem>>, %arg3: memref<256x256xf32, #tpu.memory_space<vmem>>, %arg4: memref<512x512xbf16, #tpu.memory_space<vmem>>, %arg5: memref<128x16xbf16, #tpu.memory_space<vmem>>, %arg6: memref<16x512xf32, #tpu.memory_space<vmem>>, %arg7: memref<128x384xbf16, #tpu.memory_space<vmem>>, %arg8: memref<128x128xbf16, #tpu.memory_space<vmem>>, %arg9: memref<128x512xbf16, #tpu.memory_space<vmem>>, %arg10: memref<512x128xbf16, #tpu.memory_space<vmem>>, %arg11: memref<128x384xbf16, #tpu.memory_space<vmem>>, %arg12: memref<128x128xbf16, #tpu.memory_space<vmem>>, %arg13: memref<128x512xbf16, #tpu.memory_space<vmem>>, %arg14: memref<512x128xbf16, #tpu.memory_space<vmem>>, %arg15: memref<8x16xf32, #tpu.memory_space<vmem>>) attributes {dimension_semantics = [#tpu.dimension_semantics<parallel>], iteration_bounds = array<i64: 1>, scalar_prefetch = 0 : i64, scratch_operands = 0 : i64, tpu.core_type = #tpu.core_type<tc>, window_params = [{transform_indices = @transform_0, window_bounds = array<i64: 8, 16>}, {pipeline_mode = #tpu.pipeline_mode<synchronous>, transform_indices = @transform_1, window_bounds = array<i64: 16, 128>}, {pipeline_mode = #tpu.pipeline_mode<synchronous>, transform_indices = @transform_2, window_bounds = array<i64: 256, 256>}, {pipeline_mode = #tpu.pipeline_mode<synchronous>, transform_indices = @transform_3, window_bounds = array<i64: 512, 512>}, {pipeline_mode = #tpu.pipeline_mode<synchronous>, transform_indices = @transform_4, window_bounds = array<i64: 128, 16>}, {pipeline_mode = #tpu.pipeline_mode<synchronous>, transform_indices = @transform_5, window_bounds = array<i64: 16, 512>}, {pipeline_mode = #tpu.pipeline_mode<synchronous>, transform_indices = @transform_6, window_bounds = array<i64: 128, 384>}, {pipeline_mode = #tpu.pipeline_mode<synchronous>, transform_indices = @transform_7, window_bounds = array<i64: 128, 128>}, {pipeline_mode = #tpu.pipeline_mode<synchronous>, transform_indices = @transform_8, window_bounds = array<i64: 128, 512>}, {pipeline_mode = #tpu.pipeline_mode<synchronous>, transform_indices = @transform_9, window_bounds = array<i64: 512, 128>}, {pipeline_mode = #tpu.pipeline_mode<synchronous>, transform_indices = @transform_10, window_bounds = array<i64: 128, 384>}, {pipeline_mode = #tpu.pipeline_mode<synchronous>, transform_indices = @transform_11, window_bounds = array<i64: 128, 128>}, {pipeline_mode = #tpu.pipeline_mode<synchronous>, transform_indices = @transform_12, window_bounds = array<i64: 128, 512>}, {pipeline_mode = #tpu.pipeline_mode<synchronous>, transform_indices = @transform_13, window_bounds = array<i64: 512, 128>}, {transform_indices = @transform_14, window_bounds = array<i64: 8, 16>}]} {
    %c0 = arith.constant 0 : index
    %c0_0 = arith.constant 0 : index
    %0 = vector.load %arg3[%c0, %c0_0] : memref<256x256xf32, #tpu.memory_space<vmem>>, vector<256x256xf32>
    %c0_1 = arith.constant 0 : index
    %c0_2 = arith.constant 0 : index
    %1 = vector.load %arg4[%c0_1, %c0_2] : memref<512x512xbf16, #tpu.memory_space<vmem>>, vector<512x512xbf16>
    %c0_3 = arith.constant 0 : index
    %c0_4 = arith.constant 0 : index
    %2 = vector.load %arg1[%c0_3, %c0_4] : memref<8x16xf32, #tpu.memory_space<vmem>>, vector<8x16xf32>
    %3 = arith.truncf %2 : vector<8x16xf32> to vector<8x16xbf16>
    %c0_5 = arith.constant 0 : index
    %c0_6 = arith.constant 0 : index
    %4 = vector.load %arg2[%c0_5, %c0_6] : memref<16x128xbf16, #tpu.memory_space<vmem>>, vector<16x128xbf16>
    %cst = arith.constant dense<0.000000e+00> : vector<8x128xf32>
    %5 = tpu.matmul %3, %4, %cst {dimension_numbers = #tpu.dot_dimension_numbers<[1], [0], [0], [1], [0, 0, 1, 1], [], []>} : vector<8x16xbf16>, vector<16x128xbf16>, vector<8x128xf32> -> vector<8x128xf32>
    %c0_7 = arith.constant 0 : index
    %c0_8 = arith.constant 0 : index
    %6 = vector.load %arg6[%c0_7, %c0_8] : memref<16x512xf32, #tpu.memory_space<vmem>>, vector<1x128xf32>
    %7 = vector.broadcast %6 : vector<1x128xf32> to vector<8x128xf32>
    %8 = arith.addf %5, %7 : vector<8x128xf32>
    %cst_9 = arith.constant 5.000000e-01 : f32
    %9 = vector.broadcast %cst_9 : f32 to vector<8x128xf32>
    %10 = arith.mulf %9, %8 : vector<8x128xf32>
    %11 = math.tanh %10 : vector<8x128xf32>
    %cst_10 = arith.constant 5.000000e-01 : f32
    %12 = vector.broadcast %cst_10 : f32 to vector<8x128xf32>
    %13 = arith.mulf %12, %11 : vector<8x128xf32>
    %cst_11 = arith.constant 5.000000e-01 : f32
    %14 = vector.broadcast %cst_11 : f32 to vector<8x128xf32>
    %15 = arith.addf %13, %14 : vector<8x128xf32>
    %16 = arith.mulf %8, %15 : vector<8x128xf32>
    %c1 = arith.constant 1 : index
    %c0_12 = arith.constant 0 : index
    %17 = vector.load %arg6[%c1, %c0_12] : memref<16x512xf32, #tpu.memory_space<vmem>>, vector<1x128xf32>
    %18 = vector.broadcast %17 : vector<1x128xf32> to vector<8x128xf32>
    %19 = arith.addf %16, %18 : vector<8x128xf32>
    %c0_13 = arith.constant 0 : index
    %c0_14 = arith.constant 0 : index
    %20 = vector.load %arg7[%c0_13, %c0_14] : memref<128x384xbf16, #tpu.memory_space<vmem>>, vector<128x384xbf16>
    %c0_15 = arith.constant 0 : index
    %c0_16 = arith.constant 0 : index
    %21 = vector.load %arg8[%c0_15, %c0_16] : memref<128x128xbf16, #tpu.memory_space<vmem>>, vector<128x128xbf16>
    %c0_17 = arith.constant 0 : index
    %c0_18 = arith.constant 0 : index
    %22 = vector.load %arg9[%c0_17, %c0_18] : memref<128x512xbf16, #tpu.memory_space<vmem>>, vector<128x512xbf16>
    %c0_19 = arith.constant 0 : index
    %c0_20 = arith.constant 0 : index
    %23 = vector.load %arg10[%c0_19, %c0_20] : memref<512x128xbf16, #tpu.memory_space<vmem>>, vector<512x128xbf16>
    %24 = arith.mulf %19, %19 : vector<8x128xf32>
    %25 = tpu.concatenate %19, %24 in 1 : vector<8x128xf32>, vector<8x128xf32> -> vector<8x256xf32>
    %cst_21 = arith.constant dense<0.000000e+00> : vector<8x256xf32>
    %26 = tpu.matmul %25, %0, %cst_21 {dimension_numbers = #tpu.dot_dimension_numbers<[1], [0], [0], [1], [0, 0, 1, 1], [], []>} : vector<8x256xf32>, vector<256x256xf32>, vector<8x256xf32> -> vector<8x256xf32>
    %27 = vector.extract_strided_slice %26 {offsets = [0, 0], sizes = [8, 128], strides = [1, 1]} : vector<8x256xf32> to vector<8x128xf32>
    %28 = vector.extract_strided_slice %26 {offsets = [0, 128], sizes = [8, 128], strides = [1, 1]} : vector<8x256xf32> to vector<8x128xf32>
    %29 = arith.mulf %27, %27 : vector<8x128xf32>
    %30 = arith.subf %28, %29 : vector<8x128xf32>
    %31 = arith.subf %19, %27 : vector<8x128xf32>
    %cst_22 = arith.constant 9.99999974E-6 : f32
    %32 = vector.broadcast %cst_22 : f32 to vector<8x128xf32>
    %33 = arith.addf %30, %32 : vector<8x128xf32>
    %34 = math.rsqrt %33 : vector<8x128xf32>
    %35 = arith.mulf %31, %34 : vector<8x128xf32>
    %36 = arith.truncf %35 : vector<8x128xf32> to vector<8x128xbf16>
    %cst_23 = arith.constant dense<0.000000e+00> : vector<8x384xf32>
    %37 = tpu.matmul %36, %20, %cst_23 {dimension_numbers = #tpu.dot_dimension_numbers<[1], [0], [0], [1], [0, 0, 1, 1], [], []>} : vector<8x128xbf16>, vector<128x384xbf16>, vector<8x384xf32> -> vector<8x384xf32>
    %c3 = arith.constant 3 : index
    %c0_24 = arith.constant 0 : index
    %38 = vector.load %arg6[%c3, %c0_24] : memref<16x512xf32, #tpu.memory_space<vmem>>, vector<1x384xf32>
    %39 = vector.broadcast %38 : vector<1x384xf32> to vector<8x384xf32>
    %40 = arith.addf %37, %39 : vector<8x384xf32>
    %41 = vector.extract_strided_slice %40 {offsets = [0, 0], sizes = [8, 128], strides = [1, 1]} : vector<8x384xf32> to vector<8x128xf32>
    %42 = vector.extract_strided_slice %40 {offsets = [0, 128], sizes = [8, 128], strides = [1, 1]} : vector<8x384xf32> to vector<8x128xf32>
    %43 = vector.extract_strided_slice %40 {offsets = [0, 256], sizes = [8, 128], strides = [1, 1]} : vector<8x384xf32> to vector<8x128xf32>
    %44 = arith.mulf %41, %42 : vector<8x128xf32>
    %c32_i32 = arith.constant 32 : i32
    %45 = tpu.dynamic_rotate %42 by %c32_i32 dim 1 : vector<8x128xf32>, i32 -> vector<8x128xf32>
    %c32_i32_25 = arith.constant 32 : i32
    %46 = tpu.dynamic_rotate %43 by %c32_i32_25 dim 1 : vector<8x128xf32>, i32 -> vector<8x128xf32>
    %47 = arith.mulf %41, %45 : vector<8x128xf32>
    %c64_i32 = arith.constant 64 : i32
    %48 = tpu.dynamic_rotate %42 by %c64_i32 dim 1 : vector<8x128xf32>, i32 -> vector<8x128xf32>
    %c64_i32_26 = arith.constant 64 : i32
    %49 = tpu.dynamic_rotate %43 by %c64_i32_26 dim 1 : vector<8x128xf32>, i32 -> vector<8x128xf32>
    %50 = arith.mulf %41, %48 : vector<8x128xf32>
    %c96_i32 = arith.constant 96 : i32
    %51 = tpu.dynamic_rotate %42 by %c96_i32 dim 1 : vector<8x128xf32>, i32 -> vector<8x128xf32>
    %c96_i32_27 = arith.constant 96 : i32
    %52 = tpu.dynamic_rotate %43 by %c96_i32_27 dim 1 : vector<8x128xf32>, i32 -> vector<8x128xf32>
    %53 = arith.mulf %41, %51 : vector<8x128xf32>
    %54 = tpu.concatenate %44, %47, %50, %53 in 1 : vector<8x128xf32>, vector<8x128xf32>, vector<8x128xf32>, vector<8x128xf32> -> vector<8x512xf32>
    %55 = arith.truncf %54 : vector<8x512xf32> to vector<8x512xbf16>
    %cst_28 = arith.constant dense<0.000000e+00> : vector<8x512xf32>
    %56 = tpu.matmul %55, %1, %cst_28 {dimension_numbers = #tpu.dot_dimension_numbers<[1], [0], [0], [1], [0, 0, 1, 1], [], []>} : vector<8x512xbf16>, vector<512x512xbf16>, vector<8x512xf32> -> vector<8x512xf32>
    %57 = vector.extract_strided_slice %56 {offsets = [0, 0], sizes = [8, 128], strides = [1, 1]} : vector<8x512xf32> to vector<8x128xf32>
    %58 = vector.extract_strided_slice %56 {offsets = [0, 128], sizes = [8, 128], strides = [1, 1]} : vector<8x512xf32> to vector<8x128xf32>
    %59 = vector.extract_strided_slice %56 {offsets = [0, 256], sizes = [8, 128], strides = [1, 1]} : vector<8x512xf32> to vector<8x128xf32>
    %60 = vector.extract_strided_slice %56 {offsets = [0, 384], sizes = [8, 128], strides = [1, 1]} : vector<8x512xf32> to vector<8x128xf32>
    %61 = arith.maximumf %57, %58 : vector<8x128xf32>
    %62 = arith.maximumf %61, %59 : vector<8x128xf32>
    %63 = arith.maximumf %62, %60 : vector<8x128xf32>
    %64 = arith.subf %57, %63 : vector<8x128xf32>
    %65 = math.exp %64 : vector<8x128xf32>
    %66 = arith.subf %58, %63 : vector<8x128xf32>
    %67 = math.exp %66 : vector<8x128xf32>
    %68 = arith.subf %59, %63 : vector<8x128xf32>
    %69 = math.exp %68 : vector<8x128xf32>
    %70 = arith.subf %60, %63 : vector<8x128xf32>
    %71 = math.exp %70 : vector<8x128xf32>
    %72 = arith.addf %65, %67 : vector<8x128xf32>
    %73 = arith.addf %72, %69 : vector<8x128xf32>
    %74 = arith.addf %73, %71 : vector<8x128xf32>
    %75 = tpu.reciprocal %74 {approx = true} : vector<8x128xf32> -> vector<8x128xf32>
    %76 = arith.mulf %65, %43 : vector<8x128xf32>
    %77 = arith.mulf %67, %46 : vector<8x128xf32>
    %78 = arith.addf %76, %77 : vector<8x128xf32>
    %79 = arith.mulf %69, %49 : vector<8x128xf32>
    %80 = arith.addf %78, %79 : vector<8x128xf32>
    %81 = arith.mulf %71, %52 : vector<8x128xf32>
    %82 = arith.addf %80, %81 : vector<8x128xf32>
    %83 = arith.mulf %82, %75 : vector<8x128xf32>
    %84 = arith.truncf %83 : vector<8x128xf32> to vector<8x128xbf16>
    %cst_29 = arith.constant dense<0.000000e+00> : vector<8x128xf32>
    %85 = tpu.matmul %84, %21, %cst_29 {dimension_numbers = #tpu.dot_dimension_numbers<[1], [0], [0], [1], [0, 0, 1, 1], [], []>} : vector<8x128xbf16>, vector<128x128xbf16>, vector<8x128xf32> -> vector<8x128xf32>
    %c4 = arith.constant 4 : index
    %c0_30 = arith.constant 0 : index
    %86 = vector.load %arg6[%c4, %c0_30] : memref<16x512xf32, #tpu.memory_space<vmem>>, vector<1x128xf32>
    %87 = vector.broadcast %86 : vector<1x128xf32> to vector<8x128xf32>
    %88 = arith.addf %85, %87 : vector<8x128xf32>
    %89 = arith.addf %19, %88 : vector<8x128xf32>
    %90 = arith.mulf %89, %89 : vector<8x128xf32>
    %91 = tpu.concatenate %89, %90 in 1 : vector<8x128xf32>, vector<8x128xf32> -> vector<8x256xf32>
    %cst_31 = arith.constant dense<0.000000e+00> : vector<8x256xf32>
    %92 = tpu.matmul %91, %0, %cst_31 {dimension_numbers = #tpu.dot_dimension_numbers<[1], [0], [0], [1], [0, 0, 1, 1], [], []>} : vector<8x256xf32>, vector<256x256xf32>, vector<8x256xf32> -> vector<8x256xf32>
    %93 = vector.extract_strided_slice %92 {offsets = [0, 0], sizes = [8, 128], strides = [1, 1]} : vector<8x256xf32> to vector<8x128xf32>
    %94 = vector.extract_strided_slice %92 {offsets = [0, 128], sizes = [8, 128], strides = [1, 1]} : vector<8x256xf32> to vector<8x128xf32>
    %95 = arith.mulf %93, %93 : vector<8x128xf32>
    %96 = arith.subf %94, %95 : vector<8x128xf32>
    %97 = arith.subf %89, %93 : vector<8x128xf32>
    %cst_32 = arith.constant 9.99999974E-6 : f32
    %98 = vector.broadcast %cst_32 : f32 to vector<8x128xf32>
    %99 = arith.addf %96, %98 : vector<8x128xf32>
    %100 = math.rsqrt %99 : vector<8x128xf32>
    %101 = arith.mulf %97, %100 : vector<8x128xf32>
    %102 = arith.truncf %101 : vector<8x128xf32> to vector<8x128xbf16>
    %cst_33 = arith.constant dense<0.000000e+00> : vector<8x512xf32>
    %103 = tpu.matmul %102, %22, %cst_33 {dimension_numbers = #tpu.dot_dimension_numbers<[1], [0], [0], [1], [0, 0, 1, 1], [], []>} : vector<8x128xbf16>, vector<128x512xbf16>, vector<8x512xf32> -> vector<8x512xf32>
    %c5 = arith.constant 5 : index
    %c0_34 = arith.constant 0 : index
    %104 = vector.load %arg6[%c5, %c0_34] : memref<16x512xf32, #tpu.memory_space<vmem>>, vector<1x512xf32>
    %105 = vector.broadcast %104 : vector<1x512xf32> to vector<8x512xf32>
    %106 = arith.addf %103, %105 : vector<8x512xf32>
    %cst_35 = arith.constant 5.000000e-01 : f32
    %107 = vector.broadcast %cst_35 : f32 to vector<8x512xf32>
    %108 = arith.mulf %107, %106 : vector<8x512xf32>
    %109 = math.tanh %108 : vector<8x512xf32>
    %cst_36 = arith.constant 5.000000e-01 : f32
    %110 = vector.broadcast %cst_36 : f32 to vector<8x512xf32>
    %111 = arith.mulf %110, %109 : vector<8x512xf32>
    %cst_37 = arith.constant 5.000000e-01 : f32
    %112 = vector.broadcast %cst_37 : f32 to vector<8x512xf32>
    %113 = arith.addf %111, %112 : vector<8x512xf32>
    %114 = arith.mulf %106, %113 : vector<8x512xf32>
    %115 = arith.truncf %114 : vector<8x512xf32> to vector<8x512xbf16>
    %cst_38 = arith.constant dense<0.000000e+00> : vector<8x128xf32>
    %116 = tpu.matmul %115, %23, %cst_38 {dimension_numbers = #tpu.dot_dimension_numbers<[1], [0], [0], [1], [0, 0, 1, 1], [], []>} : vector<8x512xbf16>, vector<512x128xbf16>, vector<8x128xf32> -> vector<8x128xf32>
    %c6 = arith.constant 6 : index
    %c0_39 = arith.constant 0 : index
    %117 = vector.load %arg6[%c6, %c0_39] : memref<16x512xf32, #tpu.memory_space<vmem>>, vector<1x128xf32>
    %118 = vector.broadcast %117 : vector<1x128xf32> to vector<8x128xf32>
    %119 = arith.addf %116, %118 : vector<8x128xf32>
    %120 = arith.addf %89, %119 : vector<8x128xf32>
    %c0_40 = arith.constant 0 : index
    %c0_41 = arith.constant 0 : index
    %121 = vector.load %arg11[%c0_40, %c0_41] : memref<128x384xbf16, #tpu.memory_space<vmem>>, vector<128x384xbf16>
    %c0_42 = arith.constant 0 : index
    %c0_43 = arith.constant 0 : index
    %122 = vector.load %arg12[%c0_42, %c0_43] : memref<128x128xbf16, #tpu.memory_space<vmem>>, vector<128x128xbf16>
    %c0_44 = arith.constant 0 : index
    %c0_45 = arith.constant 0 : index
    %123 = vector.load %arg13[%c0_44, %c0_45] : memref<128x512xbf16, #tpu.memory_space<vmem>>, vector<128x512xbf16>
    %c0_46 = arith.constant 0 : index
    %c0_47 = arith.constant 0 : index
    %124 = vector.load %arg14[%c0_46, %c0_47] : memref<512x128xbf16, #tpu.memory_space<vmem>>, vector<512x128xbf16>
    %125 = arith.mulf %120, %120 : vector<8x128xf32>
    %126 = tpu.concatenate %120, %125 in 1 : vector<8x128xf32>, vector<8x128xf32> -> vector<8x256xf32>
    %cst_48 = arith.constant dense<0.000000e+00> : vector<8x256xf32>
    %127 = tpu.matmul %126, %0, %cst_48 {dimension_numbers = #tpu.dot_dimension_numbers<[1], [0], [0], [1], [0, 0, 1, 1], [], []>} : vector<8x256xf32>, vector<256x256xf32>, vector<8x256xf32> -> vector<8x256xf32>
    %128 = vector.extract_strided_slice %127 {offsets = [0, 0], sizes = [8, 128], strides = [1, 1]} : vector<8x256xf32> to vector<8x128xf32>
    %129 = vector.extract_strided_slice %127 {offsets = [0, 128], sizes = [8, 128], strides = [1, 1]} : vector<8x256xf32> to vector<8x128xf32>
    %130 = arith.mulf %128, %128 : vector<8x128xf32>
    %131 = arith.subf %129, %130 : vector<8x128xf32>
    %132 = arith.subf %120, %128 : vector<8x128xf32>
    %cst_49 = arith.constant 9.99999974E-6 : f32
    %133 = vector.broadcast %cst_49 : f32 to vector<8x128xf32>
    %134 = arith.addf %131, %133 : vector<8x128xf32>
    %135 = math.rsqrt %134 : vector<8x128xf32>
    %136 = arith.mulf %132, %135 : vector<8x128xf32>
    %137 = arith.truncf %136 : vector<8x128xf32> to vector<8x128xbf16>
    %cst_50 = arith.constant dense<0.000000e+00> : vector<8x384xf32>
    %138 = tpu.matmul %137, %121, %cst_50 {dimension_numbers = #tpu.dot_dimension_numbers<[1], [0], [0], [1], [0, 0, 1, 1], [], []>} : vector<8x128xbf16>, vector<128x384xbf16>, vector<8x384xf32> -> vector<8x384xf32>
    %c7 = arith.constant 7 : index
    %c0_51 = arith.constant 0 : index
    %139 = vector.load %arg6[%c7, %c0_51] : memref<16x512xf32, #tpu.memory_space<vmem>>, vector<1x384xf32>
    %140 = vector.broadcast %139 : vector<1x384xf32> to vector<8x384xf32>
    %141 = arith.addf %138, %140 : vector<8x384xf32>
    %142 = vector.extract_strided_slice %141 {offsets = [0, 0], sizes = [8, 128], strides = [1, 1]} : vector<8x384xf32> to vector<8x128xf32>
    %143 = vector.extract_strided_slice %141 {offsets = [0, 128], sizes = [8, 128], strides = [1, 1]} : vector<8x384xf32> to vector<8x128xf32>
    %144 = vector.extract_strided_slice %141 {offsets = [0, 256], sizes = [8, 128], strides = [1, 1]} : vector<8x384xf32> to vector<8x128xf32>
    %145 = arith.mulf %142, %143 : vector<8x128xf32>
    %c32_i32_52 = arith.constant 32 : i32
    %146 = tpu.dynamic_rotate %143 by %c32_i32_52 dim 1 : vector<8x128xf32>, i32 -> vector<8x128xf32>
    %c32_i32_53 = arith.constant 32 : i32
    %147 = tpu.dynamic_rotate %144 by %c32_i32_53 dim 1 : vector<8x128xf32>, i32 -> vector<8x128xf32>
    %148 = arith.mulf %142, %146 : vector<8x128xf32>
    %c64_i32_54 = arith.constant 64 : i32
    %149 = tpu.dynamic_rotate %143 by %c64_i32_54 dim 1 : vector<8x128xf32>, i32 -> vector<8x128xf32>
    %c64_i32_55 = arith.constant 64 : i32
    %150 = tpu.dynamic_rotate %144 by %c64_i32_55 dim 1 : vector<8x128xf32>, i32 -> vector<8x128xf32>
    %151 = arith.mulf %142, %149 : vector<8x128xf32>
    %c96_i32_56 = arith.constant 96 : i32
    %152 = tpu.dynamic_rotate %143 by %c96_i32_56 dim 1 : vector<8x128xf32>, i32 -> vector<8x128xf32>
    %c96_i32_57 = arith.constant 96 : i32
    %153 = tpu.dynamic_rotate %144 by %c96_i32_57 dim 1 : vector<8x128xf32>, i32 -> vector<8x128xf32>
    %154 = arith.mulf %142, %152 : vector<8x128xf32>
    %155 = tpu.concatenate %145, %148, %151, %154 in 1 : vector<8x128xf32>, vector<8x128xf32>, vector<8x128xf32>, vector<8x128xf32> -> vector<8x512xf32>
    %156 = arith.truncf %155 : vector<8x512xf32> to vector<8x512xbf16>
    %cst_58 = arith.constant dense<0.000000e+00> : vector<8x512xf32>
    %157 = tpu.matmul %156, %1, %cst_58 {dimension_numbers = #tpu.dot_dimension_numbers<[1], [0], [0], [1], [0, 0, 1, 1], [], []>} : vector<8x512xbf16>, vector<512x512xbf16>, vector<8x512xf32> -> vector<8x512xf32>
    %158 = vector.extract_strided_slice %157 {offsets = [0, 0], sizes = [8, 128], strides = [1, 1]} : vector<8x512xf32> to vector<8x128xf32>
    %159 = vector.extract_strided_slice %157 {offsets = [0, 128], sizes = [8, 128], strides = [1, 1]} : vector<8x512xf32> to vector<8x128xf32>
    %160 = vector.extract_strided_slice %157 {offsets = [0, 256], sizes = [8, 128], strides = [1, 1]} : vector<8x512xf32> to vector<8x128xf32>
    %161 = vector.extract_strided_slice %157 {offsets = [0, 384], sizes = [8, 128], strides = [1, 1]} : vector<8x512xf32> to vector<8x128xf32>
    %162 = arith.maximumf %158, %159 : vector<8x128xf32>
    %163 = arith.maximumf %162, %160 : vector<8x128xf32>
    %164 = arith.maximumf %163, %161 : vector<8x128xf32>
    %165 = arith.subf %158, %164 : vector<8x128xf32>
    %166 = math.exp %165 : vector<8x128xf32>
    %167 = arith.subf %159, %164 : vector<8x128xf32>
    %168 = math.exp %167 : vector<8x128xf32>
    %169 = arith.subf %160, %164 : vector<8x128xf32>
    %170 = math.exp %169 : vector<8x128xf32>
    %171 = arith.subf %161, %164 : vector<8x128xf32>
    %172 = math.exp %171 : vector<8x128xf32>
    %173 = arith.addf %166, %168 : vector<8x128xf32>
    %174 = arith.addf %173, %170 : vector<8x128xf32>
    %175 = arith.addf %174, %172 : vector<8x128xf32>
    %176 = tpu.reciprocal %175 {approx = true} : vector<8x128xf32> -> vector<8x128xf32>
    %177 = arith.mulf %166, %144 : vector<8x128xf32>
    %178 = arith.mulf %168, %147 : vector<8x128xf32>
    %179 = arith.addf %177, %178 : vector<8x128xf32>
    %180 = arith.mulf %170, %150 : vector<8x128xf32>
    %181 = arith.addf %179, %180 : vector<8x128xf32>
    %182 = arith.mulf %172, %153 : vector<8x128xf32>
    %183 = arith.addf %181, %182 : vector<8x128xf32>
    %184 = arith.mulf %183, %176 : vector<8x128xf32>
    %185 = arith.truncf %184 : vector<8x128xf32> to vector<8x128xbf16>
    %cst_59 = arith.constant dense<0.000000e+00> : vector<8x128xf32>
    %186 = tpu.matmul %185, %122, %cst_59 {dimension_numbers = #tpu.dot_dimension_numbers<[1], [0], [0], [1], [0, 0, 1, 1], [], []>} : vector<8x128xbf16>, vector<128x128xbf16>, vector<8x128xf32> -> vector<8x128xf32>
    %c8 = arith.constant 8 : index
    %c0_60 = arith.constant 0 : index
    %187 = vector.load %arg6[%c8, %c0_60] : memref<16x512xf32, #tpu.memory_space<vmem>>, vector<1x128xf32>
    %188 = vector.broadcast %187 : vector<1x128xf32> to vector<8x128xf32>
    %189 = arith.addf %186, %188 : vector<8x128xf32>
    %190 = arith.addf %120, %189 : vector<8x128xf32>
    %191 = arith.mulf %190, %190 : vector<8x128xf32>
    %192 = tpu.concatenate %190, %191 in 1 : vector<8x128xf32>, vector<8x128xf32> -> vector<8x256xf32>
    %cst_61 = arith.constant dense<0.000000e+00> : vector<8x256xf32>
    %193 = tpu.matmul %192, %0, %cst_61 {dimension_numbers = #tpu.dot_dimension_numbers<[1], [0], [0], [1], [0, 0, 1, 1], [], []>} : vector<8x256xf32>, vector<256x256xf32>, vector<8x256xf32> -> vector<8x256xf32>
    %194 = vector.extract_strided_slice %193 {offsets = [0, 0], sizes = [8, 128], strides = [1, 1]} : vector<8x256xf32> to vector<8x128xf32>
    %195 = vector.extract_strided_slice %193 {offsets = [0, 128], sizes = [8, 128], strides = [1, 1]} : vector<8x256xf32> to vector<8x128xf32>
    %196 = arith.mulf %194, %194 : vector<8x128xf32>
    %197 = arith.subf %195, %196 : vector<8x128xf32>
    %198 = arith.subf %190, %194 : vector<8x128xf32>
    %cst_62 = arith.constant 9.99999974E-6 : f32
    %199 = vector.broadcast %cst_62 : f32 to vector<8x128xf32>
    %200 = arith.addf %197, %199 : vector<8x128xf32>
    %201 = math.rsqrt %200 : vector<8x128xf32>
    %202 = arith.mulf %198, %201 : vector<8x128xf32>
    %203 = arith.truncf %202 : vector<8x128xf32> to vector<8x128xbf16>
    %cst_63 = arith.constant dense<0.000000e+00> : vector<8x512xf32>
    %204 = tpu.matmul %203, %123, %cst_63 {dimension_numbers = #tpu.dot_dimension_numbers<[1], [0], [0], [1], [0, 0, 1, 1], [], []>} : vector<8x128xbf16>, vector<128x512xbf16>, vector<8x512xf32> -> vector<8x512xf32>
    %c9 = arith.constant 9 : index
    %c0_64 = arith.constant 0 : index
    %205 = vector.load %arg6[%c9, %c0_64] : memref<16x512xf32, #tpu.memory_space<vmem>>, vector<1x512xf32>
    %206 = vector.broadcast %205 : vector<1x512xf32> to vector<8x512xf32>
    %207 = arith.addf %204, %206 : vector<8x512xf32>
    %cst_65 = arith.constant 5.000000e-01 : f32
    %208 = vector.broadcast %cst_65 : f32 to vector<8x512xf32>
    %209 = arith.mulf %208, %207 : vector<8x512xf32>
    %210 = math.tanh %209 : vector<8x512xf32>
    %cst_66 = arith.constant 5.000000e-01 : f32
    %211 = vector.broadcast %cst_66 : f32 to vector<8x512xf32>
    %212 = arith.mulf %211, %210 : vector<8x512xf32>
    %cst_67 = arith.constant 5.000000e-01 : f32
    %213 = vector.broadcast %cst_67 : f32 to vector<8x512xf32>
    %214 = arith.addf %212, %213 : vector<8x512xf32>
    %215 = arith.mulf %207, %214 : vector<8x512xf32>
    %216 = arith.truncf %215 : vector<8x512xf32> to vector<8x512xbf16>
    %cst_68 = arith.constant dense<0.000000e+00> : vector<8x128xf32>
    %217 = tpu.matmul %216, %124, %cst_68 {dimension_numbers = #tpu.dot_dimension_numbers<[1], [0], [0], [1], [0, 0, 1, 1], [], []>} : vector<8x512xbf16>, vector<512x128xbf16>, vector<8x128xf32> -> vector<8x128xf32>
    %c10 = arith.constant 10 : index
    %c0_69 = arith.constant 0 : index
    %218 = vector.load %arg6[%c10, %c0_69] : memref<16x512xf32, #tpu.memory_space<vmem>>, vector<1x128xf32>
    %219 = vector.broadcast %218 : vector<1x128xf32> to vector<8x128xf32>
    %220 = arith.addf %217, %219 : vector<8x128xf32>
    %221 = arith.addf %190, %220 : vector<8x128xf32>
    %222 = arith.mulf %221, %221 : vector<8x128xf32>
    %223 = tpu.concatenate %221, %222 in 1 : vector<8x128xf32>, vector<8x128xf32> -> vector<8x256xf32>
    %cst_70 = arith.constant dense<0.000000e+00> : vector<8x256xf32>
    %224 = tpu.matmul %223, %0, %cst_70 {dimension_numbers = #tpu.dot_dimension_numbers<[1], [0], [0], [1], [0, 0, 1, 1], [], []>} : vector<8x256xf32>, vector<256x256xf32>, vector<8x256xf32> -> vector<8x256xf32>
    %225 = vector.extract_strided_slice %224 {offsets = [0, 0], sizes = [8, 128], strides = [1, 1]} : vector<8x256xf32> to vector<8x128xf32>
    %226 = vector.extract_strided_slice %224 {offsets = [0, 128], sizes = [8, 128], strides = [1, 1]} : vector<8x256xf32> to vector<8x128xf32>
    %227 = arith.mulf %225, %225 : vector<8x128xf32>
    %228 = arith.subf %226, %227 : vector<8x128xf32>
    %229 = arith.subf %221, %225 : vector<8x128xf32>
    %cst_71 = arith.constant 9.99999974E-6 : f32
    %230 = vector.broadcast %cst_71 : f32 to vector<8x128xf32>
    %231 = arith.addf %228, %230 : vector<8x128xf32>
    %232 = math.rsqrt %231 : vector<8x128xf32>
    %233 = arith.mulf %229, %232 : vector<8x128xf32>
    %234 = arith.truncf %233 : vector<8x128xf32> to vector<8x128xbf16>
    %c0_72 = arith.constant 0 : index
    %c0_73 = arith.constant 0 : index
    %235 = vector.load %arg5[%c0_72, %c0_73] : memref<128x16xbf16, #tpu.memory_space<vmem>>, vector<128x16xbf16>
    %cst_74 = arith.constant dense<0.000000e+00> : vector<8x16xf32>
    %236 = tpu.matmul %234, %235, %cst_74 {dimension_numbers = #tpu.dot_dimension_numbers<[1], [0], [0], [1], [0, 0, 1, 1], [], []>} : vector<8x128xbf16>, vector<128x16xbf16>, vector<8x16xf32> -> vector<8x16xf32>
    %c2 = arith.constant 2 : index
    %c0_75 = arith.constant 0 : index
    %237 = vector.load %arg6[%c2, %c0_75] : memref<16x512xf32, #tpu.memory_space<vmem>>, vector<1x16xf32>
    %238 = vector.broadcast %237 : vector<1x16xf32> to vector<8x16xf32>
    %239 = arith.addf %236, %238 : vector<8x16xf32>
    %cst_76 = arith.constant 0.000000e+00 : f32
    %240 = vector.broadcast %cst_76 : f32 to vector<8x16xf32>
    %241 = arith.maximumf %239, %240 : vector<8x16xf32>
    %c0_77 = arith.constant 0 : index
    %c0_78 = arith.constant 0 : index
    %242 = vector.load %arg15[%c0_77, %c0_78] : memref<8x16xf32, #tpu.memory_space<vmem>>, vector<8x16xf32>
    tpu.vector_store %arg15[%c0_77, %c0_78], %241 {strides = array<i32>} : memref<8x16xf32, #tpu.memory_space<vmem>>, vector<8x16xf32>,
    return
  }
  func.func @transform_0(%arg0: i32) -> (i32, i32) {
    %c0_i32 = arith.constant 0 : i32
    %c0_i32_0 = arith.constant 0 : i32
    return %arg0, %c0_i32 : i32, i32
  }
  func.func @transform_1(%arg0: i32) -> (i32, i32) {
    %c0_i32 = arith.constant 0 : i32
    %c0_i32_0 = arith.constant 0 : i32
    %c0_i32_1 = arith.constant 0 : i32
    return %c0_i32, %c0_i32_0 : i32, i32
  }
  func.func @transform_2(%arg0: i32) -> (i32, i32) {
    %c0_i32 = arith.constant 0 : i32
    %c0_i32_0 = arith.constant 0 : i32
    %c0_i32_1 = arith.constant 0 : i32
    return %c0_i32, %c0_i32_0 : i32, i32
  }
  func.func @transform_3(%arg0: i32) -> (i32, i32) {
    %c0_i32 = arith.constant 0 : i32
    %c0_i32_0 = arith.constant 0 : i32
    %c0_i32_1 = arith.constant 0 : i32
    return %c0_i32, %c0_i32_0 : i32, i32
  }
  func.func @transform_4(%arg0: i32) -> (i32, i32) {
    %c0_i32 = arith.constant 0 : i32
    %c0_i32_0 = arith.constant 0 : i32
    %c0_i32_1 = arith.constant 0 : i32
    return %c0_i32, %c0_i32_0 : i32, i32
  }
  func.func @transform_5(%arg0: i32) -> (i32, i32) {
    %c0_i32 = arith.constant 0 : i32
    %c0_i32_0 = arith.constant 0 : i32
    %c0_i32_1 = arith.constant 0 : i32
    return %c0_i32, %c0_i32_0 : i32, i32
  }
  func.func @transform_6(%arg0: i32) -> (i32, i32) {
    %c0_i32 = arith.constant 0 : i32
    %c0_i32_0 = arith.constant 0 : i32
    %c0_i32_1 = arith.constant 0 : i32
    return %c0_i32, %c0_i32_0 : i32, i32
  }
  func.func @transform_7(%arg0: i32) -> (i32, i32) {
    %c0_i32 = arith.constant 0 : i32
    %c0_i32_0 = arith.constant 0 : i32
    %c0_i32_1 = arith.constant 0 : i32
    return %c0_i32, %c0_i32_0 : i32, i32
  }
  func.func @transform_8(%arg0: i32) -> (i32, i32) {
    %c0_i32 = arith.constant 0 : i32
    %c0_i32_0 = arith.constant 0 : i32
    %c0_i32_1 = arith.constant 0 : i32
    return %c0_i32, %c0_i32_0 : i32, i32
  }
  func.func @transform_9(%arg0: i32) -> (i32, i32) {
    %c0_i32 = arith.constant 0 : i32
    %c0_i32_0 = arith.constant 0 : i32
    %c0_i32_1 = arith.constant 0 : i32
    return %c0_i32, %c0_i32_0 : i32, i32
  }
  func.func @transform_10(%arg0: i32) -> (i32, i32) {
    %c0_i32 = arith.constant 0 : i32
    %c0_i32_0 = arith.constant 0 : i32
    %c0_i32_1 = arith.constant 0 : i32
    return %c0_i32, %c0_i32_0 : i32, i32
  }
  func.func @transform_11(%arg0: i32) -> (i32, i32) {
    %c0_i32 = arith.constant 0 : i32
    %c0_i32_0 = arith.constant 0 : i32
    %c0_i32_1 = arith.constant 0 : i32
    return %c0_i32, %c0_i32_0 : i32, i32
  }
  func.func @transform_12(%arg0: i32) -> (i32, i32) {
    %c0_i32 = arith.constant 0 : i32
    %c0_i32_0 = arith.constant 0 : i32
    %c0_i32_1 = arith.constant 0 : i32
    return %c0_i32, %c0_i32_0 : i32, i32
  }
  func.func @transform_13(%arg0: i32) -> (i32, i32) {
    %c0_i32 = arith.constant 0 : i32
    %c0_i32_0 = arith.constant 0 : i32
    %c0_i32_1 = arith.constant 0 : i32
    return %c0_i32, %c0_i32_0 : i32, i32
  }
  func.func @transform_14(%arg0: i32) -> (i32, i32) {
    %c0_i32 = arith.constant 0 : i32
    %c0_i32_0 = arith.constant 0 : i32
    return %arg0, %c0_i32 : i32, i32
  }
}

</mosaic_0001>

<bundles_post_ra>
// kernel: tpu_custom_call.1
= control target key start
LH: loop header
LB: loop body
LE: loop exit
PB: predicated region body
PF: predicated region fallthrough
CT: control target
= control target key end

     0   :  { %19 = vsyncpa [#allocation3], 0  ;;  %s7452_s0 = inlined_call_operand.vmem [shape: f32[8,16], index: 0, kind: input, shape index: {}]   ;;  %s7453_s1 = inlined_call_operand.hbm [shape: bf16[16,128], index: 1, kind: input, shape index: {}]   ;;  %s7454_s2 = inlined_call_operand.hbm [shape: f32[256,256], index: 2, kind: input, shape index: {}]   ;;  %s7455_s3 = inlined_call_operand.hbm [shape: bf16[512,512], index: 3, kind: input, shape index: {}]   ;;  %s7456_s4 = inlined_call_operand.vmem [shape: bf16[128,16], index: 4, kind: input, shape index: {}]   ;;  %s7457_s5 = inlined_call_operand.vmem [shape: f32[16,512], index: 5, kind: input, shape index: {}]   ;;  %s7458_s6 = inlined_call_operand.hbm [shape: bf16[128,384], index: 6, kind: input, shape index: {}]   ;;  %s7459_s7 = inlined_call_operand.hbm [shape: bf16[128,128], index: 7, kind: input, shape index: {}]   ;;  %s7460_s8 = inlined_call_operand.hbm [shape: bf16[128,512], index: 8, kind: input, shape index: {}]   ;;  %s7461_s9 = inlined_call_operand.hbm [shape: bf16[512,128], index: 9, kind: input, shape index: {}]   ;;  %s7462_s10 = inlined_call_operand.hbm [shape: bf16[128,384], index: 10, kind: input, shape index: {}]   ;;  %s7463_s11 = inlined_call_operand.hbm [shape: bf16[128,128], index: 11, kind: input, shape index: {}]   ;;  %s7464_s12 = inlined_call_operand.hbm [shape: bf16[128,512], index: 12, kind: input, shape index: {}]   ;;  %s7465_s13 = inlined_call_operand.hbm [shape: bf16[512,128], index: 13, kind: input, shape index: {}]   ;;  %s7466_s14 = inlined_call_operand.hbm [shape: f32[8,16], index: 14, kind: output, shape index: {}]  }
   0x1   :  { %20 = vsyncpa [#allocation6], 0 }
   0x2   :  { %21 = vsyncpa [#allocation9], 0 }
   0x3   :  { %22 = vsyncpa [#allocation12], 0 }
   0x4   :  { %23 = vsyncpa [#allocation15], 0 }
   0x5   :  { %24 = vsyncpa [#allocation18], 0  ;;  %s45_s15 = sshll.u32 %s7454_s2, 4  ;;  %s46_s15 = int_to_ptr.hbm [resolvable:$true] %s45_s15 }
   0x6   :  { %25 = vsyncpa [#allocation4], 0  ;;  %s6086_s16 = smov [#allocation5]   ;;  %s75_s20 = sshll.u32 %s7458_s6, 4  ;;  %s76_s20 = int_to_ptr.hbm [resolvable:$true] %s75_s20 }
   0x7   :  { %s47_s17 = sshll.u32 %s6086_s16, 4  ;;  %s6087_s21 = smov 256   ;;  %s48_s17 = int_to_ptr.vmem [resolvable:$true] %s47_s17 }
   0x8   :  { %s6088_s22 = smov 16   ;;  %s6089_s23 = smov [#allocation8]  }
   0x9   :  { %53 = dma.hbm_to_vmem [thread:$0]  %s46_s15, 8192, %s48_s17, [#allocation6], %s6087_s21, %s6087_s21, %s6088_s22  }
   0xa   :  { %s77_s24 = sshll.u32 %s6089_s23, 4  ;;  %s6090_s2 = smov 192   ;;  %s78_s24 = int_to_ptr.vmem [resolvable:$true] %s77_s24 }
   0xb   :  { %s6091_s25 = smov 12   ;;  %s101_s28 = sshll.u32 %s7460_s8, 4  ;;  %s102_s28 = int_to_ptr.hbm [resolvable:$true] %s101_s28 }
   0xc   :  { %83 = dma.hbm_to_vmem [thread:$0]  %s76_s20, 3072, %s78_s24, [#allocation9], %s6090_s2, %s6090_s2, %s6091_s25  }
   0xd   :  { %s6092_s29 = smov [#allocation11]   ;;  %s127_s18 = sshll.u32 %s7462_s10, 4  ;;  %s128_s18 = int_to_ptr.hbm [resolvable:$true] %s127_s18 }
   0xe   :  { %s103_s6 = sshll.u32 %s6092_s29, 4  ;;  %s6093_s15 = smov [#allocation14]   ;;  %s104_s6 = int_to_ptr.vmem [resolvable:$true] %s103_s6 }
   0xf   :  { %109 = dma.hbm_to_vmem [thread:$0]  %s102_s28, 4096, %s104_s6, [#allocation12], %s6087_s21, %s6087_s21, %s6088_s22  }
  0x10   :  { %s129_s17 = sshll.u32 %s6093_s15, 4  ;;  %s153_s23 = sshll.u32 %s7464_s12, 4  ;;  %s130_s17 = int_to_ptr.vmem [resolvable:$true] %s129_s17  ;;  %s154_s23 = int_to_ptr.hbm [resolvable:$true] %s153_s23 }
  0x11   :  { %135 = dma.hbm_to_vmem [thread:$0]  %s128_s18, 3072, %s130_s17, [#allocation15], %s6090_s2, %s6090_s2, %s6091_s25  }
  0x12   :  { %s32_s26 = sshll.u32 %s7453_s1, 4  ;;  %s6094_s27 = smov [#allocation17]   ;;  %s33_s26 = int_to_ptr.hbm [resolvable:$true] %s32_s26 }
  0x13   :  { %s155_s10 = sshll.u32 %s6094_s27, 4  ;;  %s6095_s28 = smov [#allocation2]   ;;  %s156_s10 = int_to_ptr.vmem [resolvable:$true] %s155_s10 }
  0x14   :  { %161 = dma.hbm_to_vmem [thread:$0]  %s154_s23, 4096, %s156_s10, [#allocation18], %s6087_s21, %s6087_s21, %s6088_s22  }
  0x15   :  { %s34_s29 = sshll.u32 %s6095_s28, 4  ;;  %s6096_s6 = smov 64   ;;  %s35_s29 = int_to_ptr.vmem [resolvable:$true] %s34_s29 }
  0x16   :  { %s6097_s12 = smov 4   ;;  %s58_s1 = sshll.u32 %s7455_s3, 4  ;;  %s59_s1 = int_to_ptr.hbm [resolvable:$true] %s58_s1 }
  0x17   :  { %40 = dma.hbm_to_vmem [thread:$0]  %s33_s26, 128, %s35_s29, [#allocation3], %s6096_s6, %s6096_s6, %s6097_s12  }
  0x18   :  { %s6098_s30 = smov [#allocation7]   ;;  %s88_s17 = sshll.u32 %s7459_s7, 4  ;;  %s89_s17 = int_to_ptr.hbm [resolvable:$true] %s88_s17 }
  0x19   :  { %s60_s16 = sshll.u32 %s6098_s30, 4  ;;  %s6099_s19 = smov [#allocation10]   ;;  %s61_s16 = int_to_ptr.vmem [resolvable:$true] %s60_s16 }
  0x1a   :  { %66 = dma.hbm_to_vmem [thread:$0]  %s59_s1, 16384, %s61_s16, [#allocation6], %s6087_s21, %s6087_s21, %s6088_s22  }
  0x1b   :  { %s90_s20 = sshll.u32 %s6099_s19, 4  ;;  %s114_s24 = sshll.u32 %s7461_s9, 4  ;;  %s91_s20 = int_to_ptr.vmem [resolvable:$true] %s90_s20  ;;  %s115_s24 = int_to_ptr.hbm [resolvable:$true] %s114_s24 }
  0x1c   :  { %96 = dma.hbm_to_vmem [thread:$0]  %s89_s17, 1024, %s91_s20, [#allocation9], %s6096_s6, %s6096_s6, %s6097_s12  }
  0x1d   :  { %s140_s7 = sshll.u32 %s7463_s11, 4  ;;  %s6100_s27 = smov [#allocation13]   ;;  %s141_s7 = int_to_ptr.hbm [resolvable:$true] %s140_s7 }
  0x1e   :  { %s116_s10 = sshll.u32 %s6100_s27, 4  ;;  %s6101_s21 = smov [#allocation16]   ;;  %s117_s10 = int_to_ptr.vmem [resolvable:$true] %s116_s10 }
  0x1f   :  { %122 = dma.hbm_to_vmem [thread:$0]  %s115_s24, 4096, %s117_s10, [#allocation12], %s6096_s6, %s6096_s6, %s6097_s12  }
  0x20   :  { %s142_s9 = sshll.u32 %s6101_s21, 4  ;;  %s166_s29 = sshll.u32 %s7465_s13, 4  ;;  %s143_s9 = int_to_ptr.vmem [resolvable:$true] %s142_s9  ;;  %s167_s29 = int_to_ptr.hbm [resolvable:$true] %s166_s29 }
  0x21   :  { %148 = dma.hbm_to_vmem [thread:$0]  %s141_s7, 1024, %s143_s9, [#allocation15], %s6096_s6, %s6096_s6, %s6097_s12  }
  0x22   :  { %s6102_s11 = smov [#allocation19]  }
  0x23   :  { %s168_s2 = sshll.u32 %s6102_s11, 4  ;;  %s169_s2 = int_to_ptr.vmem [resolvable:$true] %s168_s2 }
  0x24   :  { %174 = dma.hbm_to_vmem [thread:$0]  %s167_s29, 4096, %s169_s2, [#allocation18], %s6096_s6, %s6096_s6, %s6097_s12  }
  0x25   :  { %6072 = dma.done.wait [#allocation3], 128  }
  0x26   :  { %6073 = vsyncadd [#allocation3], 4294967168 }
  0x27   :  { %6074 = dma.done.wait [#allocation6], 24576  }
  0x28   :  { %6075 = vsyncadd [#allocation6], 4294942720 }
  0x29   :  { %6076 = dma.done.wait [#allocation9], 4096  }
  0x2a   :  { %6077 = vsyncadd [#allocation9], 4294963200 }
  0x2b   :  { %6078 = dma.done.wait [#allocation12], 8192  }
  0x2c   :  { %6079 = vsyncadd [#allocation12], 4294959104 }
  0x2d   :  { %6080 = dma.done.wait [#allocation15], 4096  }
  0x2e   :  { %6081 = vsyncadd [#allocation15], 4294963200 }
  0x2f   :  { %6082 = dma.done.wait [#allocation18], 8192  }
  0x30   :  { %6083 = vsyncadd [#allocation18], 4294959104  ;;  %v5387_v0 = vld [vmem:[#allocation2] sm:$0xff]  ;;  %v250_v2 = vld [vmem:[#allocation5 + $0xf0] sm:$0xff]  ;;  %vm423_vm0 = vcmask 130048   ;;  %s6103_s15 = smov 32  }
  0x31   :  { %v412_v1 = vld [vmem:[%s7452_s0] sm:$0xff]  ;;  %592 = vmatpush.msra.mxu2 %v250_v2  ;;  %v248_v4 = vld [vmem:[#allocation5 + $0xe0] sm:$0xff]  ;;  %434 = vmatpush.bf16.msra.mxu0 %v5387_v0  ;;  %v246_v5 = vld [vmem:[#allocation5 + $0xd0] sm:$0xff]  ;;  %s6104_s17 = smov 96   ;;  %s6105_s8 = smov [#allocation20]  }
  0x32   :  { %v413_v3 = vpack.c.bf16 %v412_v1, %v412_v1  ;;  %v244_v6 = vld [vmem:[#allocation5 + $0xc0] sm:$0xff]  ;;  %v251_v7 = vld [vmem:[#allocation5 + $0xf8] sm:$0xff]  ;;  %v249_v8 = vld [vmem:[#allocation5 + $0xe8] sm:$0xff]  ;;  %s3921_s24 = sshll.u32 %s6105_s8, 4  ;;  %s3923_s7 = sshll.u32 %s7466_s14, 4  ;;  %s3922_s24 = int_to_ptr.vmem [resolvable:$true] %s3921_s24  ;;  %s3924_s7 = int_to_ptr.hbm [resolvable:$true] %s3923_s7 }
  0x33   :  { %593 = vmatpush.msra.mxu2 %v248_v4  ;;  %v283_v9 = vld [vmem:[#allocation5 + $0x1f8] sm:$0xff]  ;;  %v242_v10 = vld [vmem:[#allocation5 + $0xb0] sm:$0xff]  ;;  %632 = vmatpush.msra.mxu3 %v251_v7  ;;  %v281_v11 = vld [vmem:[#allocation5 + $0x1e8] sm:$0xff] }
  0x34   :  { %3942 = vmatmul.msk.bf16.vlgmr.msra.gmra.mxu0 %vm423_vm0, %v413_v3  ;;  %v247_v12 = vld [vmem:[#allocation5 + $0xd8] sm:$0xff]  ;;  %v240_v14 = vld [vmem:[#allocation5 + $0xa0] sm:$0xff]  ;;  %v245_v15 = vld [vmem:[#allocation5 + $0xc8] sm:$0xff] }
  0x35   :  { %594 = vmatpush.msra.mxu2 %v246_v5  ;;  %652 = vmatpush.msrb.mxu0 %v283_v9  ;;  %v279_v13 = vld [vmem:[#allocation5 + $0x1d8] sm:$0xff]  ;;  %v277_v16 = vld [vmem:[#allocation5 + $0x1c8] sm:$0xff]  ;;  %v238_v17 = vld [vmem:[#allocation5 + $0x90] sm:$0xff] }
  0x36   :  { %633 = vmatpush.msra.mxu3 %v249_v8  ;;  %v243_v18 = vld [vmem:[#allocation5 + $0xb8] sm:$0xff]  ;;  %v236_v20 = vld [vmem:[#allocation5 + $0x80] sm:$0xff]  ;;  %v241_v21 = vld [vmem:[#allocation5 + $0xa8] sm:$0xff] }
  0x37   :  { %595 = vmatpush.msra.mxu2 %v244_v6  ;;  %653 = vmatpush.msrb.mxu0 %v281_v11  ;;  %v275_v19 = vld [vmem:[#allocation5 + $0x1b8] sm:$0xff]  ;;  %v234_v22 = vld [vmem:[#allocation5 + $0x70] sm:$0xff]  ;;  %v232_v23 = vld [vmem:[#allocation5 + $0x60] sm:$0xff] }
  0x38   :  { %634 = vmatpush.msra.mxu3 %v247_v12  ;;  %v230_v24 = vld [vmem:[#allocation5 + $0x50] sm:$0xff]  ;;  %v228_v25 = vld [vmem:[#allocation5 + $0x40] sm:$0xff]  ;;  %v239_v33 = vld [vmem:[#allocation5 + $0x98] sm:$0xff] }
  0x39   :  { %596 = vmatpush.msra.mxu2 %v242_v10  ;;  %654 = vmatpush.msrb.mxu0 %v279_v13  ;;  %v226_v26 = vld [vmem:[#allocation5 + $0x30] sm:$0xff]  ;;  %v224_v27 = vld [vmem:[#allocation5 + $0x20] sm:$0xff]  ;;  %v273_v34 = vld [vmem:[#allocation5 + $0x1a8] sm:$0xff] }
  0x3a   :  { %635 = vmatpush.msra.mxu3 %v245_v15  ;;  %v222_v28 = vld [vmem:[#allocation5 + $0x10] sm:$0xff]  ;;  %v220_v29 = vld [vmem:[#allocation5] sm:$0xff]  ;;  %v237_v36 = vld [vmem:[#allocation5 + $0x88] sm:$0xff] }
  0x3b   :  { %597 = vmatpush.msra.mxu2 %v240_v14  ;;  %655 = vmatpush.msrb.mxu0 %v277_v16  ;;  %v282_v30 = vld [vmem:[#allocation5 + $0x1f0] sm:$0xff]  ;;  %v280_v31 = vld [vmem:[#allocation5 + $0x1e0] sm:$0xff]  ;;  %v271_v37 = vld [vmem:[#allocation5 + $0x198] sm:$0xff] }
  0x3c   :  { %636 = vmatpush.msra.mxu3 %v243_v18  ;;  %v278_v32 = vld [vmem:[#allocation5 + $0x1d0] sm:$0xff]  ;;  %v276_v35 = vld [vmem:[#allocation5 + $0x1c0] sm:$0xff]  ;;  %v235_v39 = vld [vmem:[#allocation5 + $0x78] sm:$0xff] }
  0x3d   :  { %598 = vmatpush.msra.mxu2 %v238_v17  ;;  %656 = vmatpush.msrb.mxu0 %v275_v19  ;;  %v274_v38 = vld [vmem:[#allocation5 + $0x1b0] sm:$0xff]  ;;  %v269_v40 = vld [vmem:[#allocation5 + $0x188] sm:$0xff]  ;;  %v272_v41 = vld [vmem:[#allocation5 + $0x1a0] sm:$0xff] }
  0x3e   :  { %637 = vmatpush.msra.mxu3 %v241_v21  ;;  %v233_v42 = vld [vmem:[#allocation5 + $0x68] sm:$0xff]  ;;  %v267_v43 = vld [vmem:[#allocation5 + $0x178] sm:$0xff]  ;;  %v270_v44 = vld [vmem:[#allocation5 + $0x190] sm:$0xff] }
  0x3f   :  { %599 = vmatpush.msra.mxu2 %v236_v20  ;;  %657 = vmatpush.msrb.mxu0 %v273_v34  ;;  %v231_v45 = vld [vmem:[#allocation5 + $0x58] sm:$0xff]  ;;  %v265_v46 = vld [vmem:[#allocation5 + $0x168] sm:$0xff]  ;;  %v268_v47 = vld [vmem:[#allocation5 + $0x180] sm:$0xff] }
  0x40   :  { %638 = vmatpush.msra.mxu3 %v239_v33  ;;  %v229_v48 = vld [vmem:[#allocation5 + $0x48] sm:$0xff]  ;;  %v263_v49 = vld [vmem:[#allocation5 + $0x158] sm:$0xff]  ;;  %v266_v50 = vld [vmem:[#allocation5 + $0x170] sm:$0xff] }
  0x41   :  { %600 = vmatpush.msra.mxu2 %v234_v22  ;;  %658 = vmatpush.msrb.mxu0 %v271_v37  ;;  %v227_v51 = vld [vmem:[#allocation5 + $0x38] sm:$0xff]  ;;  %v261_v52 = vld [vmem:[#allocation5 + $0x148] sm:$0xff]  ;;  %v264_v53 = vld [vmem:[#allocation5 + $0x160] sm:$0xff] }
  0x42   :  { %639 = vmatpush.msra.mxu3 %v237_v36  ;;  %v225_v54 = vld [vmem:[#allocation5 + $0x28] sm:$0xff]  ;;  %v259_v55 = vld [vmem:[#allocation5 + $0x138] sm:$0xff]  ;;  %v262_v56 = vld [vmem:[#allocation5 + $0x150] sm:$0xff] }
  0x43   :  { %601 = vmatpush.msra.mxu2 %v232_v23  ;;  %659 = vmatpush.msrb.mxu0 %v269_v40  ;;  %v223_v57 = vld [vmem:[#allocation5 + $0x18] sm:$0xff]  ;;  %v257_v58 = vld [vmem:[#allocation5 + $0x128] sm:$0xff]  ;;  %v260_v59 = vld [vmem:[#allocation5 + $0x140] sm:$0xff] }
  0x44   :  { %640 = vmatpush.msra.mxu3 %v235_v39  ;;  %v221_v60 = vld [vmem:[#allocation5 + $0x8] sm:$0xff]  ;;  %v255_v61 = vld [vmem:[#allocation5 + $0x118] sm:$0xff]  ;;  %v258_v62 = vld [vmem:[#allocation5 + $0x130] sm:$0xff] }
  0x45   :  { %602 = vmatpush.msra.mxu2 %v230_v24  ;;  %660 = vmatpush.msrb.mxu0 %v267_v43  ;;  %v253_v63 = vld [vmem:[#allocation5 + $0x108] sm:$0xff]  ;;  %v256_v0 = vld [vmem:[#allocation5 + $0x120] sm:$0xff]  ;;  %v254_v1 = vld [vmem:[#allocation5 + $0x110] sm:$0xff] }
  0x46   :  { %641 = vmatpush.msra.mxu3 %v233_v42  ;;  %v252_v2 = vld [vmem:[#allocation5 + $0x100] sm:$0xff]  ;;  %v416_v3 = vld [vmem:[%s7457_s5] ss:$0 sm:$0xff]  ;;  %v445_v11 = vld [vmem:[%s7457_s5 + $0x1] ss:$0 sm:$0xff] }
  0x47   :  { %603 = vmatpush.msra.mxu2 %v228_v25  ;;  %661 = vmatpush.msrb.mxu0 %v265_v46  ;;  %v4030_v15 = vld [vmem:[#allocation8 + $0xa8] sm:$0xf]  ;;  %v5410_v16 = vld [vmem:[#allocation8 + $0xb0] sm:$0xf0]  ;;  %v5409_v17 = vld [vmem:[#allocation8 + $0xac] sm:$0xf] }
  0x48   :  { %642 = vmatpush.msra.mxu3 %v231_v45  ;;  %v4031_v18 = vor.u32 %v5410_v16, %v4030_v15  ;;  %v4032_v19 = vld [vmem:[#allocation8 + $0xb4] sm:$0xf0]  ;;  %v4038_v20 = vld [vmem:[#allocation8 + $0xb0] sm:$0xf]  ;;  %v5411_v21 = vld [vmem:[#allocation8 + $0xb8] sm:$0xf0] }
  0x49   :  { %604 = vmatpush.msra.mxu2 %v226_v26  ;;  %662 = vmatpush.msrb.mxu0 %v263_v49  ;;  %v4035_v22 = vor.u32 %v5409_v17, %v4032_v19  ;;  %v4039_v23 = vor.u32 %v5411_v21, %v4038_v20  ;;  %v4018_v24 = vld [vmem:[#allocation8 + $0x90] sm:$0xf]  ;;  %v5407_v25 = vld [vmem:[#allocation8 + $0x98] sm:$0xf0]  ;;  %v5406_v26 = vld [vmem:[#allocation8 + $0x94] sm:$0xf] }
  0x4a   :  { %643 = vmatpush.msra.mxu3 %v229_v48  ;;  %825 = vmatpush.bf16.msra.mxu1 %v4031_v18  ;;  %v4006_v33 = vld [vmem:[#allocation8 + $0x78] sm:$0xf]  ;;  %v5404_v34 = vld [vmem:[#allocation8 + $0x80] sm:$0xf0]  ;;  %v4008_v37 = vld [vmem:[#allocation8 + $0x84] sm:$0xf0] }
  0x4b   :  { %605 = vmatpush.msra.mxu2 %v224_v27  ;;  %663 = vmatpush.msrb.mxu0 %v261_v52  ;;  %v4019_v27 = vor.u32 %v5407_v25, %v4018_v24  ;;  %v4007_v36 = vor.u32 %v5404_v34, %v4006_v33  ;;  %v5405_v39 = vld [vmem:[#allocation8 + $0x88] sm:$0xf0]  ;;  %v3994_v42 = vld [vmem:[#allocation8 + $0x60] sm:$0xf]  ;;  %v3996_v46 = vld [vmem:[#allocation8 + $0x6c] sm:$0xf0] }
  0x4c   :  { %644 = vmatpush.msra.mxu3 %v227_v51  ;;  %v5401_v43 = vld [vmem:[#allocation8 + $0x68] sm:$0xf0]  ;;  %v5402_v48 = vld [vmem:[#allocation8 + $0x70] sm:$0xf0]  ;;  %v3982_v51 = vld [vmem:[#allocation8 + $0x48] sm:$0xf] }
  0x4d   :  { %606 = vmatpush.msra.mxu2 %v222_v28  ;;  %664 = vmatpush.msrb.mxu0 %v259_v55  ;;  %v4020_v28 = vld [vmem:[#allocation8 + $0x9c] sm:$0xf0]  ;;  %v3995_v45 = vor.u32 %v5401_v43, %v3994_v42  ;;  %v5398_v52 = vld [vmem:[#allocation8 + $0x50] sm:$0xf0]  ;;  %v3984_v55 = vld [vmem:[#allocation8 + $0x54] sm:$0xf0] }
  0x4e   :  { %645 = vmatpush.msra.mxu3 %v225_v54  ;;  %826 = vmatpush.bf16.msra.mxu1 %v4019_v27  ;;  %v3983_v54 = vor.u32 %v5398_v52, %v3982_v51  ;;  %v3946_v15 = vld [vmem:[#allocation8] sm:$0xf]  ;;  %v5389_v16 = vld [vmem:[#allocation8 + $0x8] sm:$0xf0]  ;;  %v5388_v17 = vld [vmem:[#allocation8 + $0x4] sm:$0xf] }
  0x4f   :  { %607 = vmatpush.msra.mxu2 %v220_v29  ;;  %665 = vmatpush.msrb.mxu0 %v257_v58  ;;  %v4026_v29 = vld [vmem:[#allocation8 + $0x98] sm:$0xf]  ;;  %v3948_v18 = vld [vmem:[#allocation8 + $0xc] sm:$0xf0]  ;;  %v3954_v19 = vld [vmem:[#allocation8 + $0x8] sm:$0xf] }
  0x50   :  { %646 = vmatpush.msra.mxu3 %v223_v57  ;;  %v5399_v57 = vld [vmem:[#allocation8 + $0x58] sm:$0xf0]  ;;  %v5390_v20 = vld [vmem:[#allocation8 + $0x10] sm:$0xf0]  ;;  %v4154_v27 = vld [vmem:[#allocation7 + $0xe0] sm:$0xf] }
  0x51   :  { %612 = vmatpush.msrb.mxu2 %v282_v30  ;;  %666 = vmatpush.msrb.mxu0 %v255_v61  ;;  %v5408_v30 = vld [vmem:[#allocation8 + $0xa0] sm:$0xf0]  ;;  %v5395_v61 = vld [vmem:[#allocation8 + $0x38] sm:$0xf0]  ;;  %v3955_v24 = vor.u32 %v5390_v20, %v3954_v19  ;;  %v4106_v42 = vld [vmem:[#allocation7 + $0x80] sm:$0xf] }
  0x52   :  { %647 = vmatpush.msra.mxu3 %v221_v60  ;;  %827 = vmatpush.bf16.msra.mxu1 %v4007_v36  ;;  %v3970_v60 = vld [vmem:[#allocation8 + $0x30] sm:$0xf]  ;;  %v5267_v19 = vld [vmem:[#allocation7 + $0x44] sm:$0xf]  ;;  %v4076_v20 = vld [vmem:[#allocation7 + $0x50] sm:$0xf0] }
  0x53   :  { %613 = vmatpush.msrb.mxu2 %v280_v31  ;;  %667 = vmatpush.msrb.mxu0 %v253_v63  ;;  %v4023_v31 = vor.u32 %v5406_v26, %v4020_v28  ;;  %v3971_v63 = vor.u32 %v5395_v61, %v3970_v60  ;;  %v5289_v28 = vld [vmem:[#allocation7 + $0xec] sm:$0xf0]  ;;  %v4042_v61 = vld [vmem:[#allocation7] sm:$0xf] }
  0x54   :  { %851 = vmatpush.bf16.msrb.mxu3 %v4039_v23  ;;  %v3951_v23 = vor.u32 %v5388_v17, %v3948_v18  ;;  %v5277_v43 = vld [vmem:[#allocation7 + $0x8c] sm:$0xf0]  ;;  %v4092_v17 = vld [vmem:[#allocation7 + $0x70] sm:$0xf0] }
  0x55   :  { %614 = vmatpush.msrb.mxu2 %v278_v32  ;;  %v4027_v32 = vor.u32 %v5408_v30, %v4026_v29  ;;  %v4138_v29 = vld [vmem:[#allocation7 + $0xc0] sm:$0xf]  ;;  %v5269_v51 = vld [vmem:[#allocation7 + $0x4c] sm:$0xf0] }
  0x56   :  { %828 = vmatpush.bf16.msra.mxu1 %v3995_v45  ;;  %v4090_v45 = vld [vmem:[#allocation7 + $0x60] sm:$0xf] }
  0x57   :  { %615 = vmatpush.msrb.mxu2 %v276_v35  ;;  %v5403_v35 = vld [vmem:[#allocation8 + $0x7c] sm:$0xf] }
  0x58   :  { %852 = vmatpush.bf16.msrb.mxu3 %v4027_v32  ;;  %v4011_v40 = vor.u32 %v5403_v35, %v4008_v37  ;;  %v5285_v32 = vld [vmem:[#allocation7 + $0xcc] sm:$0xf0]  ;;  %v4122_v37 = vld [vmem:[#allocation7 + $0xa0] sm:$0xf] }
  0x59   :  { %616 = vmatpush.msrb.mxu2 %v274_v38  ;;  %v4014_v38 = vld [vmem:[#allocation8 + $0x80] sm:$0xf]  ;;  %v6260_v36 = vor.u32 %v5285_v32, %v4138_v29 }
  0x5a   :  { %829 = vmatpush.bf16.msra.mxu1 %v3983_v54 }
  0x5b   :  { %617 = vmatpush.msrb.mxu2 %v272_v41  ;;  %v4015_v41 = vor.u32 %v5405_v39, %v4014_v38  ;;  %7640 = vst [vmem:[#allocation29_spill] sm:$0xff] %v6260_v36  ;;  %v5281_v38 = vld [vmem:[#allocation7 + $0xac] sm:$0xf0] }
  0x5d   :  { %618 = vmatpush.msrb.mxu2 %v270_v44  ;;  %853 = vmatpush.bf16.msrb.mxu3 %v4015_v41  ;;  %v5400_v44 = vld [vmem:[#allocation8 + $0x64] sm:$0xf]  ;;  %v6263_v41 = vor.u32 %v5281_v38, %v4122_v37 }
  0x5e   :  { %v3999_v49 = vor.u32 %v5400_v44, %v3996_v46  ;;  %830 = vmatpush.bf16.msra.mxu1 %v3971_v63  ;;  %v6266_v44 = vor.u32 %v5277_v43, %v4106_v42  ;;  %v5273_v46 = vld [vmem:[#allocation7 + $0x6c] sm:$0xf0] }
  0x5f   :  { %619 = vmatpush.msrb.mxu2 %v268_v47  ;;  %v4002_v47 = vld [vmem:[#allocation8 + $0x68] sm:$0xf]  ;;  %7641 = vst [vmem:[#allocation30_spill] sm:$0xff] %v6263_v41 }
  0x60   :  { %7642 = vst [vmem:[#allocation31_spill] sm:$0xff] %v6266_v44 }
  0x61   :  { %620 = vmatpush.msrb.mxu2 %v266_v50  ;;  %v4003_v50 = vor.u32 %v5402_v48, %v4002_v47  ;;  %v6269_v48 = vor.u32 %v5273_v46, %v4090_v45 }
  0x63   :  { %621 = vmatpush.msrb.mxu2 %v264_v53  ;;  %854 = vmatpush.bf16.msrb.mxu3 %v4003_v50  ;;  %v5397_v53 = vld [vmem:[#allocation8 + $0x4c] sm:$0xf]  ;;  %7643 = vst [vmem:[#allocation32_spill] sm:$0xff] %v6269_v48  ;;  %v4074_v50 = vld [vmem:[#allocation7 + $0x40] sm:$0xf] }
  0x64   :  { %v3987_v58 = vor.u32 %v5397_v53, %v3984_v55  ;;  %v6272_v53 = vor.u32 %v5269_v51, %v4074_v50  ;;  %v4058_v55 = vld [vmem:[#allocation7 + $0x20] sm:$0xf]  ;;  %v5286_v50 = vld [vmem:[#allocation7 + $0xd4] sm:$0xf0] }
  0x65   :  { %622 = vmatpush.msrb.mxu2 %v262_v56  ;;  %v3990_v56 = vld [vmem:[#allocation8 + $0x50] sm:$0xf] }
  0x66   :  { %7644 = vst [vmem:[#allocation33_spill] sm:$0xff] %v6272_v53 }
  0x67   :  { %623 = vmatpush.msrb.mxu2 %v260_v59  ;;  %v3991_v59 = vor.u32 %v5399_v57, %v3990_v56  ;;  %v5265_v56 = vld [vmem:[#allocation7 + $0x2c] sm:$0xf0] }
  0x69   :  { %624 = vmatpush.msrb.mxu2 %v258_v62  ;;  %855 = vmatpush.bf16.msrb.mxu3 %v3991_v59  ;;  %v5394_v62 = vld [vmem:[#allocation8 + $0x34] sm:$0xf] }
  0x6b   :  { %625 = vmatpush.msrb.mxu2 %v256_v0  ;;  %v3972_v0 = vld [vmem:[#allocation8 + $0x3c] sm:$0xf0] }
  0x6d   :  { %626 = vmatpush.msrb.mxu2 %v254_v1  ;;  %v3978_v1 = vld [vmem:[#allocation8 + $0x38] sm:$0xf] }
  0x6f   :  { %627 = vmatpush.msrb.mxu2 %v252_v2  ;;  %v5396_v2 = vld [vmem:[#allocation8 + $0x40] sm:$0xf0] }
  0xb1   :  { %v436_v4 = vpop.f32.mrf.mxu0 }
  0xb2   :  { %v437_v5 = vadd.f32 %v436_v4, %v416_v3  ;;  %v3975_v3 = vor.u32 %v5394_v62, %v3972_v0  ;;  %v3979_v4 = vor.u32 %v5396_v2, %v3978_v1  ;;  %v5261_v62 = vld [vmem:[#allocation7 + $0xc] sm:$0xf0]  ;;  %v5287_v0 = vld [vmem:[#allocation7 + $0xe4] sm:$0xf]  ;;  %v4156_v1 = vld [vmem:[#allocation7 + $0xf0] sm:$0xf0] }
  0xb4   :  { %v440_v6 = vmul.f32 0.5, %v437_v5  ;;  %856 = vmatpush.bf16.msrb.mxu3 %v3979_v4 }
  0xb6   :  { %5608 = vtanh.f32 %v440_v6  ;;  %v5392_v6 = vld [vmem:[#allocation8 + $0x20] sm:$0xf0] }
  0xb9   :  { %v438_v7 = vpop.f32.mrf.mxu0 }
  0xba   :  { %v5391_v7 = vld [vmem:[#allocation8 + $0x1c] sm:$0xf] }
  0xbc   :  { %v5609_v8 = vpop.eup %5608 }
  0xbd   :  { %v442_v9 = vmul.f32 0.5, %v5609_v8 }
  0xbf   :  { %v443_v10 = vadd.f32 0.5, %v442_v9  ;;  %v3960_v9 = vld [vmem:[#allocation8 + $0x24] sm:$0xf0] }
  0xc1   :  { %v444_v12 = vmul.f32 %v443_v10, %v437_v5  ;;  %v3958_v5 = vld [vmem:[#allocation8 + $0x18] sm:$0xf]  ;;  %v3966_v10 = vld [vmem:[#allocation8 + $0x20] sm:$0xf] }
  0xc2   :  { %v3959_v8 = vor.u32 %v5392_v6, %v3958_v5  ;;  %v6281_v5 = vor.u32 %v5287_v0, %v4156_v1  ;;  %v5283_v6 = vld [vmem:[#allocation7 + $0xc4] sm:$0xf]  ;;  %v4082_v1 = vld [vmem:[#allocation7 + $0x48] sm:$0xf] }
  0xc3   :  { %v6251_v13 = vadd.f32 %v445_v11, %v444_v12  ;;  %v5393_v11 = vld [vmem:[#allocation8 + $0x28] sm:$0xf0]  ;;  %v3963_v12 = vor.u32 %v5391_v7, %v3960_v9  ;;  %v4140_v7 = vld [vmem:[#allocation7 + $0xd0] sm:$0xf0]  ;;  %v5279_v9 = vld [vmem:[#allocation7 + $0xa4] sm:$0xf] }
  0xc4   :  { %831 = vmatpush.bf16.msra.mxu1 %v3959_v8  ;;  %7647 = vst [vmem:[#allocation36_spill] sm:$0xff] %v6281_v5  ;;  %v6285_v8 = vor.u32 %v5283_v6, %v4140_v7  ;;  %v4066_v6 = vld [vmem:[#allocation7 + $0x28] sm:$0xf]  ;;  %v5266_v7 = vld [vmem:[#allocation7 + $0x34] sm:$0xf0] }
  0xc5   :  { %608 = vmatmul.f32.vlgmr.msra.gmra.mxu2 %v6251_v13  ;;  %648 = vmatmul.f32.vlgmr.msra.gmra.mxu3 %v6251_v13  ;;  %v591_v14 = vmul.f32 %v6251_v13, %v6251_v13 }
  0xc6   :  { %838 = vmatpush.bf16.msra.mxu2 %v4035_v22  ;;  %v3947_v22 = vor.u32 %v5389_v16, %v3946_v15  ;;  %7648 = vst [vmem:[#allocation37_spill] sm:$0xff] %v6285_v8  ;;  %v5271_v16 = vld [vmem:[#allocation7 + $0x64] sm:$0xf] }
  0xc7   :  { %668 = vmatmul.f32.vlgmr.msrb.gmra.mxu0 %v591_v14  ;;  %v6294_v18 = vor.u32 %v5271_v16, %v4092_v17  ;;  %v5321_v16 = vld [vmem:[#allocation7 + $0x1ec] sm:$0xf0]  ;;  %v4410_v17 = vld [vmem:[#allocation7 + $0x2e0] sm:$0xf] }
  0xc8   :  { %832 = vmatpush.bf16.msra.mxu1 %v3947_v22  ;;  %v5263_v22 = vld [vmem:[#allocation7 + $0x24] sm:$0xf] }
  0xc9   :  { %7651 = vst [vmem:[#allocation40_spill] sm:$0xff] %v6294_v18 }
  0xca   :  { %839 = vmatpush.bf16.msra.mxu2 %v4023_v31  ;;  %v6257_v31 = vor.u32 %v5289_v28, %v4154_v27  ;;  %v3943_v28 = vld [vmem:[%s7457_s5 + $0x3] ss:$8 sm:$0x7] }
  0xcb   :  { %v692_v32 = vperm.slane %v3943_v28, 1 }
  0xcc   :  { %7639 = vst [vmem:[#allocation28_spill] sm:$0xff] %v6257_v31  ;;  %1524 = vmatpush.bf16.msra.mxu0 %v6257_v31 }
  0xcd   :  { %628 = vmatmul.f32.vlgmr.msrb.gmra.mxu2 %v591_v14  ;;  %v3967_v14 = vor.u32 %v5393_v11, %v3966_v10  ;;  %v4124_v10 = vld [vmem:[#allocation7 + $0xb0] sm:$0xf0] }
  0xce   :  { %840 = vmatpush.bf16.msra.mxu2 %v4011_v40  ;;  %v6288_v11 = vor.u32 %v5279_v9, %v4124_v10  ;;  %v6345_v9 = vor.u32 %v5266_v7, %v4066_v6  ;;  %v4050_v10 = vld [vmem:[#allocation7 + $0x8] sm:$0xf]  ;;  %v5341_v6 = vld [vmem:[#allocation7 + $0x28c] sm:$0xf0]  ;;  %v4522_v7 = vld [vmem:[#allocation7 + $0x3c0] sm:$0xf] }
  0xcf   :  { %857 = vmatpush.bf16.msrb.mxu3 %v3967_v14  ;;  %v4108_v14 = vld [vmem:[#allocation7 + $0x90] sm:$0xf0] }
  0xd0   :  { %1525 = vmatpush.bf16.msra.mxu0 %v6260_v36  ;;  %7649 = vst [vmem:[#allocation38_spill] sm:$0xff] %v6288_v11 }
  0xd1   :  { %7661 = vst [vmem:[#allocation50_spill] sm:$0xff] %v6345_v9 }
  0xd2   :  { %841 = vmatpush.bf16.msra.mxu2 %v3999_v49 }
  0xd3   :  { %858 = vmatpush.bf16.msrb.mxu3 %v3955_v24 }
  0xd4   :  { %1526 = vmatpush.bf16.msra.mxu0 %v6263_v41 }
  0xd6   :  { %842 = vmatpush.bf16.msra.mxu2 %v3987_v58  ;;  %v6275_v58 = vor.u32 %v5265_v56, %v4058_v55  ;;  %v4130_v55 = vld [vmem:[#allocation7 + $0xa8] sm:$0xf]  ;;  %v5282_v56 = vld [vmem:[#allocation7 + $0xb4] sm:$0xf0] }
  0xd8   :  { %1527 = vmatpush.bf16.msra.mxu0 %v6266_v44  ;;  %7645 = vst [vmem:[#allocation34_spill] sm:$0xff] %v6275_v58 }
  0xda   :  { %843 = vmatpush.bf16.msra.mxu2 %v3975_v3  ;;  %v6279_v3 = vor.u32 %v5261_v62, %v4042_v61  ;;  %v4098_v62 = vld [vmem:[#allocation7 + $0x68] sm:$0xf] }
  0xdc   :  { %1528 = vmatpush.bf16.msra.mxu0 %v6269_v48  ;;  %7646 = vst [vmem:[#allocation35_spill] sm:$0xff] %v6279_v3 }
  0xde   :  { %844 = vmatpush.bf16.msra.mxu2 %v3963_v12  ;;  %v5275_v12 = vld [vmem:[#allocation7 + $0x84] sm:$0xf] }
  0xdf   :  { %v6291_v15 = vor.u32 %v5275_v12, %v4108_v14  ;;  %v5262_v12 = vld [vmem:[#allocation7 + $0x14] sm:$0xf0]  ;;  %v4282_v14 = vld [vmem:[#allocation7 + $0x1e0] sm:$0xf] }
  0xe0   :  { %1529 = vmatpush.bf16.msra.mxu0 %v6272_v53 }
  0xe1   :  { %7650 = vst [vmem:[#allocation39_spill] sm:$0xff] %v6291_v15 }
  0xe2   :  { %845 = vmatpush.bf16.msra.mxu2 %v3951_v23  ;;  %v4060_v23 = vld [vmem:[#allocation7 + $0x30] sm:$0xf0] }
  0xe3   :  { %v6300_v24 = vor.u32 %v5263_v22, %v4060_v23  ;;  %v6347_v22 = vor.u32 %v5321_v16, %v4282_v14  ;;  %v5353_v23 = vld [vmem:[#allocation7 + $0x2ec] sm:$0xf0]  ;;  %v5276_v16 = vld [vmem:[#allocation7 + $0x8c] sm:$0xf] }
  0xe4   :  { %1530 = vmatpush.bf16.msra.mxu0 %v6275_v58 }
  0xe5   :  { %7653 = vst [vmem:[#allocation42_spill] sm:$0xff] %v6300_v24  ;;  %1537 = vmatpush.bf16.msrb.mxu1 %v6347_v22 }
  0xe6   :  { %7662 = vst [vmem:[#allocation51_spill] sm:$0xff] %v6347_v22  ;;  %v6817_v22 = vld [vmem:[#allocation5] sm:$0xff] }
  0xe7   :  { %7778 = vst [vmem:[#allocation167_spill] sm:$0xff] %v6817_v22 }
  0xe8   :  { %1531 = vmatpush.bf16.msra.mxu0 %v6279_v3 }
  0xec   :  { %1576 = vmatpush.bf16.msrb.mxu0 %v6281_v5 }
  0xf0   :  { %1577 = vmatpush.bf16.msrb.mxu0 %v6285_v8 }
  0xf4   :  { %1578 = vmatpush.bf16.msrb.mxu0 %v6288_v11  ;;  %v6835_v11 = vld [vmem:[#allocation5 + $0x8] sm:$0xff] }
  0xf5   :  { %7784 = vst [vmem:[#allocation173_spill] sm:$0xff] %v6835_v11 }
  0xf8   :  { %1579 = vmatpush.bf16.msrb.mxu0 %v6291_v15  ;;  %v6832_v15 = vld [vmem:[#allocation5 + $0x18] sm:$0xff] }
  0xf9   :  { %7783 = vst [vmem:[#allocation172_spill] sm:$0xff] %v6832_v15 }
  0xfc   :  { %1580 = vmatpush.bf16.msrb.mxu0 %v6294_v18  ;;  %v6829_v18 = vld [vmem:[#allocation5 + $0x28] sm:$0xff] }
  0xfd   :  { %7782 = vst [vmem:[#allocation171_spill] sm:$0xff] %v6829_v18 }
 0x144   :  { %v669_v33 = vpop.f32.mrf.mxu0 }
 0x148   :  { %v609_v21 = vpop.f32.mrf.mxu2  ;;  %v649_v25 = vpop.f32.mrf.mxu3 }
 0x149   :  { %v670_v34 = vadd.f32 %v669_v33, %v649_v25  ;;  %v5259_v25 = vld [vmem:[#allocation7 + $0x4] sm:$0xf]  ;;  %v693_v33 = vperm.slane %v3943_v28, 2 }
 0x150   :  { %v629_v26 = vpop.f32.mrf.mxu2 }
 0x151   :  { %v630_v30 = vadd.f32 %v629_v26, %v609_v21  ;;  %v6297_v21 = vor.u32 %v5267_v19, %v4076_v20  ;;  %v4044_v26 = vld [vmem:[#allocation7 + $0x10] sm:$0xf0]  ;;  %v5288_v19 = vld [vmem:[#allocation7 + $0xec] sm:$0xf]  ;;  %v4164_v20 = vld [vmem:[#allocation7 + $0xf8] sm:$0xf0] }
 0x152   :  { %v6303_v27 = vor.u32 %v5259_v25, %v4044_v26  ;;  %v6349_v25 = vor.u32 %v5353_v23, %v4410_v17  ;;  %v6352_v26 = vor.u32 %v5262_v12, %v4050_v10  ;;  %v5381_v10 = vld [vmem:[#allocation7 + $0x3cc] sm:$0xf0]  ;;  %v4116_v23 = vld [vmem:[#allocation7 + $0x98] sm:$0xf0] }
 0x153   :  { %v672_v35 = vmul.f32 %v630_v30, %v630_v30  ;;  %v674_v60 = vsub.f32 %v6251_v13, %v630_v30  ;;  %7652 = vst [vmem:[#allocation41_spill] sm:$0xff] %v6297_v21  ;;  %1581 = vmatpush.bf16.msrb.mxu0 %v6297_v21  ;;  %v691_v30 = vperm.slane %v3943_v28, 0  ;;  %v6355_v28 = vor.u32 %v5288_v19, %v4164_v20  ;;  %v4506_v19 = vld [vmem:[#allocation7 + $0x3a0] sm:$0xf]  ;;  %v5377_v20 = vld [vmem:[#allocation7 + $0x3ac] sm:$0xf0] }
 0x154   :  { %7654 = vst [vmem:[#allocation43_spill] sm:$0xff] %v6303_v27  ;;  %1550 = vmatpush.bf16.msrb.mxu2 %v6349_v25  ;;  %v6376_v12 = vor.u32 %v5381_v10, %v4522_v7  ;;  %v5268_v10 = vld [vmem:[#allocation7 + $0x4c] sm:$0xf]  ;;  %v6826_v21 = vld [vmem:[#allocation5 + $0x38] sm:$0xff] }
 0x155   :  { %v673_v39 = vsub.f32 %v670_v34, %v672_v35  ;;  %7663 = vst [vmem:[#allocation52_spill] sm:$0xff] %v6349_v25  ;;  %v6814_v25 = vld [vmem:[#allocation5 + $0x110] sm:$0xff] }
 0x156   :  { %7664 = vst [vmem:[#allocation53_spill] sm:$0xff] %v6352_v26 }
 0x157   :  { %v675_v40 = vadd.f32 1e-05, %v673_v39  ;;  %1582 = vmatpush.bf16.msrb.mxu0 %v6300_v24  ;;  %v4162_v39 = vld [vmem:[#allocation7 + $0xe8] sm:$0xf]  ;;  %7665 = vst [vmem:[#allocation54_spill] sm:$0xff] %v6355_v28  ;;  %v6823_v24 = vld [vmem:[#allocation5 + $0x100] sm:$0xff] }
 0x158   :  { %7672 = vst [vmem:[#allocation61_spill] sm:$0xff] %v6376_v12 }
 0x159   :  { %5610 = vrsqrt.f32 %v675_v40  ;;  %vm682_vm2 = vweird.f32 %v675_v40  ;;  %7777 = vst [vmem:[#allocation166_spill] sm:$0xff] %v6814_v25 }
 0x15a   :  { %7780 = vst [vmem:[#allocation169_spill] sm:$0xff] %v6823_v24 }
 0x15b   :  { %1583 = vmatpush.bf16.msrb.mxu0 %v6303_v27  ;;  %v6820_v27 = vld [vmem:[#allocation5 + $0x48] sm:$0xff]  ;;  %7781 = vst [vmem:[#allocation170_spill] sm:$0xff] %v6826_v21 }
 0x15c   :  { %7779 = vst [vmem:[#allocation168_spill] sm:$0xff] %v6820_v27 }
 0x15f   :  { %v5611_v47 = vpop.eup %5610 }
 0x160   :  { %v677_v49 = vmul.f32 %v5611_v47, %v675_v40  ;;  %vm683_vm1 = vweird.f32 %v5611_v47  ;;  %v5290_v40 = vld [vmem:[#allocation7 + $0xf4] sm:$0xf0] }
 0x161   :  { %vm684_vm3 = vmor %vm682_vm2, %vm683_vm1  ;;  %v6318_v46 = vor.u32 %v5290_v40, %v4162_v39  ;;  %v5280_v39 = vld [vmem:[#allocation7 + $0xac] sm:$0xf]  ;;  %v4132_v40 = vld [vmem:[#allocation7 + $0xb8] sm:$0xf0] }
 0x162   :  { %v678_v52 = vmul.f32 %v5611_v47, %v677_v49  ;;  %v4146_v49 = vld [vmem:[#allocation7 + $0xc8] sm:$0xf]  ;;  %v6379_v14 = vor.u32 %v5280_v39, %v4132_v40  ;;  %v6391_v39 = vor.u32 %v5276_v16, %v4116_v23  ;;  %v5272_v40 = vld [vmem:[#allocation7 + $0x6c] sm:$0xf]  ;;  %v4084_v23 = vld [vmem:[#allocation7 + $0x58] sm:$0xf0] }
 0x163   :  { %7655 = vst [vmem:[#allocation44_spill] sm:$0xff] %v6318_v46 }
 0x164   :  { %v679_v54 = vmul.f32 0.5, %v678_v52  ;;  %v6324_v52 = vor.u32 %v5286_v50, %v4146_v49  ;;  %v5313_v49 = vld [vmem:[#allocation7 + $0x1ac] sm:$0xf0]  ;;  %v4378_v50 = vld [vmem:[#allocation7 + $0x2a0] sm:$0xf]  ;;  %7673 = vst [vmem:[#allocation62_spill] sm:$0xff] %v6379_v14 }
 0x165   :  { %7677 = vst [vmem:[#allocation66_spill] sm:$0xff] %v6391_v39 }
 0x166   :  { %v680_v57 = vsub.f32 1.5, %v679_v54  ;;  %7656 = vst [vmem:[#allocation45_spill] sm:$0xff] %v6324_v52 }
 0x168   :  { %v681_v59 = vmul.f32 %v5611_v47, %v680_v57  ;;  %v6332_v57 = vor.u32 %v5282_v56, %v4130_v55  ;;  %v5345_v55 = vld [vmem:[#allocation7 + $0x2ac] sm:$0xf0]  ;;  %v4538_v56 = vld [vmem:[#allocation7 + $0x3e0] sm:$0xf] }
 0x16a   :  { %v685_v63 = vsel %vm684_vm3, %v5611_v47, %v681_v59  ;;  %7657 = vst [vmem:[#allocation46_spill] sm:$0xff] %v6332_v57  ;;  %v4114_v59 = vld [vmem:[#allocation7 + $0x88] sm:$0xf] }
 0x16b   :  { %v686_v2 = vmul.f32 %v685_v63, %v674_v60  ;;  %v5278_v60 = vld [vmem:[#allocation7 + $0x94] sm:$0xf0] }
 0x16c   :  { %v6335_v61 = vor.u32 %v5278_v60, %v4114_v59  ;;  %v5274_v63 = vld [vmem:[#allocation7 + $0x74] sm:$0xf0]  ;;  %v5385_v59 = vld [vmem:[#allocation7 + $0x3ec] sm:$0xf0]  ;;  %v6370_v60 = vor.u32 %v5345_v55, %v4378_v50  ;;  %v4100_v55 = vld [vmem:[#allocation7 + $0x78] sm:$0xf0] }
 0x16d   :  { %v687_v4 = vpack.c.bf16 %v686_v2, %v686_v2  ;;  %v6338_v0 = vor.u32 %v5274_v63, %v4098_v62  ;;  %v5270_v2 = vld [vmem:[#allocation7 + $0x54] sm:$0xf0]  ;;  %v6372_v62 = vor.u32 %v5385_v59, %v4538_v56  ;;  %v4234_v63 = vld [vmem:[#allocation7 + $0x180] sm:$0xf]  ;;  %v5373_v50 = vld [vmem:[#allocation7 + $0x38c] sm:$0xf0]  ;;  %v6403_v7 = vor.u32 %v5272_v40, %v4100_v55 }
 0x16e   :  { %7658 = vst [vmem:[#allocation47_spill] sm:$0xff] %v6335_v61  ;;  %v4202_v59 = vld [vmem:[#allocation7 + $0x140] sm:$0xf]  ;;  %v5264_v55 = vld [vmem:[#allocation7 + $0x2c] sm:$0xf] }
 0x16f   :  { %833 = vmatmul.bf16.vlgmr.msra.gmra.mxu1 %v687_v4  ;;  %846 = vmatmul.bf16.vlgmr.msra.gmra.mxu2 %v687_v4  ;;  %7659 = vst [vmem:[#allocation48_spill] sm:$0xff] %v6338_v0 }
 0x170   :  { %859 = vmatmul.bf16.vlgmr.msrb.gmra.mxu3 %v687_v4  ;;  %v6342_v4 = vor.u32 %v5270_v2, %v4082_v1  ;;  %7670 = vst [vmem:[#allocation59_spill] sm:$0xff] %v6370_v60  ;;  %v5309_v1 = vld [vmem:[#allocation7 + $0x18c] sm:$0xf0]  ;;  %v4362_v2 = vld [vmem:[#allocation7 + $0x280] sm:$0xf] }
 0x171   :  { %7671 = vst [vmem:[#allocation60_spill] sm:$0xff] %v6372_v62  ;;  %1563 = vmatpush.bf16.msra.mxu3 %v6372_v62  ;;  %v6382_v17 = vor.u32 %v5309_v1, %v4234_v63  ;;  %v5301_v63 = vld [vmem:[#allocation7 + $0x14c] sm:$0xf0]  ;;  %v4330_v1 = vld [vmem:[#allocation7 + $0x240] sm:$0xf]  ;;  %v6811_v62 = vld [vmem:[#allocation5 + $0x58] sm:$0xff] }
 0x172   :  { %7660 = vst [vmem:[#allocation49_spill] sm:$0xff] %v6342_v4  ;;  %v6406_v16 = vor.u32 %v5301_v63, %v4202_v59  ;;  %v4458_v63 = vld [vmem:[#allocation7 + $0x340] sm:$0xf] }
 0x173   :  { %7674 = vst [vmem:[#allocation63_spill] sm:$0xff] %v6382_v17 }
 0x174   :  { %7681 = vst [vmem:[#allocation70_spill] sm:$0xff] %v6403_v7 }
 0x175   :  { %1564 = vmatpush.bf16.msra.mxu3 %v6376_v12  ;;  %7682 = vst [vmem:[#allocation71_spill] sm:$0xff] %v6406_v16  ;;  %v6802_v12 = vld [vmem:[#allocation5 + $0x68] sm:$0xff] }
 0x176   :  { %7773 = vst [vmem:[#allocation162_spill] sm:$0xff] %v6802_v12 }
 0x177   :  { %7776 = vst [vmem:[#allocation165_spill] sm:$0xff] %v6811_v62 }
 0x1ec   :  { %v834_v29 = vpop.f32.mrf.mxu1 }
 0x1ed   :  { %v6309_v35 = vadd.f32 %v834_v29, %v691_v30  ;;  %v5284_v29 = vld [vmem:[#allocation7 + $0xcc] sm:$0xf]  ;;  %v4148_v30 = vld [vmem:[#allocation7 + $0xd8] sm:$0xf0] }
 0x1f2   :  { %v847_v34 = vpop.f32.mrf.mxu2 }
 0x1f3   :  { %v848_v37 = vadd.f32 %v847_v34, %v692_v32  ;;  %v860_v38 = vpop.f32.mrf.mxu3  ;;  %v4266_v32 = vld [vmem:[#allocation7 + $0x1c0] sm:$0xf] }
 0x1f4   :  { %v6311_v42 = vadd.f32 %v860_v38, %v693_v33  ;;  %v836_v43 = vpop.f32.mrf.mxu1  ;;  %v5317_v33 = vld [vmem:[#allocation7 + $0x1cc] sm:$0xf0]  ;;  %v4394_v34 = vld [vmem:[#allocation7 + $0x2c0] sm:$0xf] }
 0x1f5   :  { %865 = vrot.lane.b32.xlu1 %v848_v37, %s6103_s15  ;;  %870 = vrot.lane.b32.xlu0 %v848_v37, %s6096_s6  ;;  %v864_v45 = vmul.f32 %v848_v37, %v6309_v35  ;;  %v5349_v38 = vld [vmem:[#allocation7 + $0x2cc] sm:$0xf0] }
 0x1f6   :  { %872 = vrot.lane.b32.xlu2 %v6311_v42, %s6096_s6  ;;  %v6361_v43 = vor.u32 %v5349_v38, %v4394_v34  ;;  %v5337_v34 = vld [vmem:[#allocation7 + $0x26c] sm:$0xf0]  ;;  %v6388_v38 = vor.u32 %v5377_v20, %v4506_v19  ;;  %v4474_v19 = vld [vmem:[#allocation7 + $0x360] sm:$0xf] }
 0x1f7   :  { %v6320_v47 = vpack.c.bf16 %v864_v45, %v864_v45  ;;  %v4250_v45 = vld [vmem:[#allocation7 + $0x1a0] sm:$0xf]  ;;  %v5369_v20 = vld [vmem:[#allocation7 + $0x36c] sm:$0xf0] }
 0x1f8   :  { %7667 = vst [vmem:[#allocation56_spill] sm:$0xff] %v6361_v43  ;;  %1551 = vmatpush.bf16.msrb.mxu2 %v6361_v43  ;;  %1565 = vmatpush.bf16.msra.mxu3 %v6388_v38  ;;  %v6412_v40 = vor.u32 %v5369_v20, %v4474_v19  ;;  %v4298_v19 = vld [vmem:[#allocation7 + $0x200] sm:$0xf]  ;;  %v5325_v20 = vld [vmem:[#allocation7 + $0x20c] sm:$0xf0] }
 0x1f9   :  { %1532 = vmatmul.bf16.vlgmr.msra.gmra.mxu0 %v6320_v47  ;;  %7676 = vst [vmem:[#allocation65_spill] sm:$0xff] %v6388_v38  ;;  %v6793_v38 = vld [vmem:[#allocation5 + $0x78] sm:$0xff]  ;;  %v6805_v43 = vld [vmem:[#allocation5 + $0x120] sm:$0xff] }
 0x1fa   :  { %1628 = vmatpush.bf16.msra.mxu0 %v6318_v46  ;;  %v849_v51 = vpop.f32.mrf.mxu2  ;;  %7684 = vst [vmem:[#allocation73_spill] sm:$0xff] %v6412_v40  ;;  %v5375_v46 = vld [vmem:[#allocation7 + $0x3a4] sm:$0xf] }
 0x1fb   :  { %v862_v54 = vpop.f32.mrf.mxu3  ;;  %v6364_v51 = vor.u32 %v5284_v29, %v4148_v30  ;;  %v6385_v29 = vor.u32 %v5341_v6, %v4362_v2  ;;  %v4218_v30 = vld [vmem:[#allocation7 + $0x160] sm:$0xf]  ;;  %v5333_v2 = vld [vmem:[#allocation7 + $0x24c] sm:$0xf0]  ;;  %7774 = vst [vmem:[#allocation163_spill] sm:$0xff] %v6805_v43 }
 0x1fc   :  { %v6367_v54 = vor.u32 %v5313_v49, %v4250_v45  ;;  %1552 = vmatpush.bf16.msrb.mxu2 %v6370_v60  ;;  %v4490_v49 = vld [vmem:[#allocation7 + $0x380] sm:$0xf]  ;;  %v6796_v60 = vld [vmem:[#allocation5 + $0x130] sm:$0xff] }
 0x1fd   :  { %867 = vrot.lane.b32.xlu1 %v6311_v42, %s6103_s15  ;;  %875 = vrot.lane.b32.xlu0 %v848_v37, %s6104_s17  ;;  %v6358_v37 = vor.u32 %v5317_v33, %v4266_v32  ;;  %7668 = vst [vmem:[#allocation57_spill] sm:$0xff] %v6364_v51  ;;  %v5305_v32 = vld [vmem:[#allocation7 + $0x16c] sm:$0xf0]  ;;  %v4346_v33 = vld [vmem:[#allocation7 + $0x260] sm:$0xf]  ;;  %v6400_v6 = vor.u32 %v5373_v50, %v4490_v49 }
 0x1fe   :  { %877 = vrot.lane.b32.xlu2 %v6311_v42, %s6104_s17  ;;  %1629 = vmatpush.bf16.msra.mxu0 %v6324_v52  ;;  %7669 = vst [vmem:[#allocation58_spill] sm:$0xff] %v6367_v54  ;;  %v6394_v45 = vor.u32 %v5305_v32, %v4218_v30  ;;  %v6397_v56 = vor.u32 %v5337_v34, %v4346_v33  ;;  %v4186_v32 = vld [vmem:[#allocation7 + $0x120] sm:$0xf]  ;;  %v5297_v33 = vld [vmem:[#allocation7 + $0x12c] sm:$0xf0] }
 0x1ff   :  { %7666 = vst [vmem:[#allocation55_spill] sm:$0xff] %v6358_v37  ;;  %1538 = vmatpush.bf16.msrb.mxu1 %v6358_v37  ;;  %v6409_v30 = vor.u32 %v5333_v2, %v4330_v1  ;;  %v4314_v34 = vld [vmem:[#allocation7 + $0x220] sm:$0xf]  ;;  %v5329_v49 = vld [vmem:[#allocation7 + $0x22c] sm:$0xf0]  ;;  %1566 = vmatpush.bf16.msra.mxu3 %v6400_v6  ;;  %v6415_v50 = vor.u32 %v5268_v10, %v4084_v23 }
 0x200   :  { %7675 = vst [vmem:[#allocation64_spill] sm:$0xff] %v6385_v29  ;;  %1553 = vmatpush.bf16.msrb.mxu2 %v6385_v29  ;;  %v6418_v59 = vor.u32 %v5297_v33, %v4186_v32  ;;  %v5365_v1 = vld [vmem:[#allocation7 + $0x34c] sm:$0xf0]  ;;  %v4068_v2 = vld [vmem:[#allocation7 + $0x38] sm:$0xf0]  ;;  %v6787_v29 = vld [vmem:[#allocation5 + $0x140] sm:$0xff] }
 0x201   :  { %7678 = vst [vmem:[#allocation67_spill] sm:$0xff] %v6394_v45  ;;  %v6424_v10 = vor.u32 %v5365_v1, %v4458_v63  ;;  %v6427_v23 = vor.u32 %v5264_v55, %v4068_v2  ;;  %v5260_v33 = vld [vmem:[#allocation7 + $0xc] sm:$0xf]  ;;  %v4412_v1 = vld [vmem:[#allocation7 + $0x2f0] sm:$0xf0] }
 0x202   :  { %1630 = vmatpush.bf16.msra.mxu0 %v6332_v57  ;;  %7679 = vst [vmem:[#allocation68_spill] sm:$0xff] %v6397_v56  ;;  %v5361_v2 = vld [vmem:[#allocation7 + $0x32c] sm:$0xf0]  ;;  %v5335_v57 = vld [vmem:[#allocation7 + $0x264] sm:$0xf] }
 0x203   :  { %1539 = vmatpush.bf16.msrb.mxu1 %v6367_v54  ;;  %7680 = vst [vmem:[#allocation69_spill] sm:$0xff] %v6400_v6  ;;  %1567 = vmatpush.bf16.msra.mxu3 %v6412_v40  ;;  %v4348_v52 = vld [vmem:[#allocation7 + $0x270] sm:$0xf0]  ;;  %v6784_v6 = vld [vmem:[#allocation5 + $0x88] sm:$0xff]  ;;  %v6799_v54 = vld [vmem:[#allocation5 + $0x20] sm:$0xff] }
 0x204   :  { %1554 = vmatpush.bf16.msrb.mxu2 %v6397_v56  ;;  %7683 = vst [vmem:[#allocation72_spill] sm:$0xff] %v6409_v30  ;;  %v6772_v40 = vld [vmem:[#allocation5 + $0x50] sm:$0xff]  ;;  %v6775_v56 = vld [vmem:[#allocation5 + $0x98] sm:$0xff] }
 0x205   :  { %7685 = vst [vmem:[#allocation74_spill] sm:$0xff] %v6415_v50  ;;  %v6808_v37 = vld [vmem:[#allocation5 + $0x10] sm:$0xff] }
 0x206   :  { %1631 = vmatpush.bf16.msra.mxu0 %v6335_v61  ;;  %7686 = vst [vmem:[#allocation75_spill] sm:$0xff] %v6418_v59 }
 0x207   :  { %1540 = vmatpush.bf16.msrb.mxu1 %v6382_v17  ;;  %7688 = vst [vmem:[#allocation77_spill] sm:$0xff] %v6424_v10  ;;  %1568 = vmatpush.bf16.msra.mxu3 %v6424_v10  ;;  %v6790_v17 = vld [vmem:[#allocation5 + $0x30] sm:$0xff] }
 0x208   :  { %1555 = vmatpush.bf16.msrb.mxu2 %v6409_v30  ;;  %7689 = vst [vmem:[#allocation78_spill] sm:$0xff] %v6427_v23  ;;  %v6766_v30 = vld [vmem:[#allocation5 + $0xa8] sm:$0xff] }
 0x209   :  { %1584 = vmatmul.bf16.vlgmr.msrb.gmra.mxu0 %v6320_v47  ;;  %7769 = vst [vmem:[#allocation158_spill] sm:$0xff] %v6787_v29 }
 0x20a   :  { %1632 = vmatpush.bf16.msra.mxu0 %v6338_v0  ;;  %v4364_v0 = vld [vmem:[#allocation7 + $0x290] sm:$0xf0]  ;;  %7770 = vst [vmem:[#allocation159_spill] sm:$0xff] %v6790_v17 }
 0x20b   :  { %1541 = vmatpush.bf16.msrb.mxu1 %v6394_v45  ;;  %v6778_v45 = vld [vmem:[#allocation5 + $0x150] sm:$0xff]  ;;  %7771 = vst [vmem:[#allocation160_spill] sm:$0xff] %v6796_v60 }
 0x20c   :  { %7768 = vst [vmem:[#allocation157_spill] sm:$0xff] %v6778_v45 }
 0x20d   :  { %7772 = vst [vmem:[#allocation161_spill] sm:$0xff] %v6799_v54 }
 0x20e   :  { %1633 = vmatpush.bf16.msra.mxu0 %v6342_v4  ;;  %v4540_v4 = vld [vmem:[#allocation7 + $0x3f0] sm:$0xf0]  ;;  %7775 = vst [vmem:[#allocation164_spill] sm:$0xff] %v6808_v37 }
 0x20f   :  { %1542 = vmatpush.bf16.msrb.mxu1 %v6406_v16  ;;  %v6769_v16 = vld [vmem:[#allocation5 + $0x160] sm:$0xff] }
 0x210   :  { %7767 = vst [vmem:[#allocation156_spill] sm:$0xff] %v6769_v16 }
 0x212   :  { %1634 = vmatpush.bf16.msra.mxu0 %v6345_v9 }
 0x213   :  { %1543 = vmatpush.bf16.msrb.mxu1 %v6418_v59  ;;  %v6763_v59 = vld [vmem:[#allocation5 + $0x60] sm:$0xff] }
 0x216   :  { %1635 = vmatpush.bf16.msra.mxu0 %v6352_v26  ;;  %v5351_v26 = vld [vmem:[#allocation7 + $0x2e4] sm:$0xf] }
 0x219   :  { %1636 = vmatmul.bf16.vlgmr.msra.gmra.mxu0 %v6320_v47 }
 0x21a   :  { %1680 = vmatpush.bf16.msrb.mxu0 %v6355_v28  ;;  %v4284_v28 = vld [vmem:[#allocation7 + $0x1f0] sm:$0xf0] }
 0x21e   :  { %1681 = vmatpush.bf16.msrb.mxu0 %v6364_v51  ;;  %v5293_v51 = vld [vmem:[#allocation7 + $0x10c] sm:$0xf0] }
 0x222   :  { %1682 = vmatpush.bf16.msrb.mxu0 %v6379_v14  ;;  %v4170_v14 = vld [vmem:[#allocation7 + $0x100] sm:$0xf] }
 0x223   :  { %v6430_v32 = vor.u32 %v5293_v51, %v4170_v14  ;;  %v6442_v51 = vor.u32 %v5351_v26, %v4412_v1  ;;  %v4442_v14 = vld [vmem:[#allocation7 + $0x320] sm:$0xf]  ;;  %v5357_v1 = vld [vmem:[#allocation7 + $0x30c] sm:$0xf0] }
 0x224   :  { %v4426_v26 = vld [vmem:[#allocation7 + $0x300] sm:$0xf] }
 0x225   :  { %7690 = vst [vmem:[#allocation79_spill] sm:$0xff] %v6430_v32  ;;  %1544 = vmatpush.bf16.msrb.mxu1 %v6430_v32  ;;  %v6455_v9 = vor.u32 %v5357_v1, %v4426_v26  ;;  %v5339_v26 = vld [vmem:[#allocation7 + $0x284] sm:$0xf]  ;;  %v5362_v32 = vld [vmem:[#allocation7 + $0x334] sm:$0xf0] }
 0x226   :  { %1683 = vmatpush.bf16.msrb.mxu0 %v6391_v39  ;;  %v6421_v39 = vor.u32 %v5329_v49, %v4314_v34  ;;  %v6433_v34 = vor.u32 %v5325_v20, %v4298_v19  ;;  %v5319_v49 = vld [vmem:[#allocation7 + $0x1e4] sm:$0xf]  ;;  %7694 = vst [vmem:[#allocation83_spill] sm:$0xff] %v6442_v51  ;;  %v4268_v20 = vld [vmem:[#allocation7 + $0x1d0] sm:$0xf0] }
 0x227   :  { %v6436_v63 = vor.u32 %v5319_v49, %v4284_v28  ;;  %v5315_v19 = vld [vmem:[#allocation7 + $0x1c4] sm:$0xf]  ;;  %v6447_v28 = vor.u32 %v5361_v2, %v4442_v14  ;;  %7698 = vst [vmem:[#allocation87_spill] sm:$0xff] %v6455_v9 }
 0x228   :  { %7687 = vst [vmem:[#allocation76_spill] sm:$0xff] %v6421_v39  ;;  %1556 = vmatpush.bf16.msrb.mxu2 %v6421_v39  ;;  %v5347_v49 = vld [vmem:[#allocation7 + $0x2c4] sm:$0xf]  ;;  %v5348_v39 = vld [vmem:[#allocation7 + $0x2cc] sm:$0xf] }
 0x229   :  { %7691 = vst [vmem:[#allocation80_spill] sm:$0xff] %v6433_v34  ;;  %1589 = vmatpush.bf16.msra.mxu1 %v6436_v63  ;;  %1569 = vmatpush.bf16.msra.mxu3 %v6447_v28  ;;  %v5311_v2 = vld [vmem:[#allocation7 + $0x1a4] sm:$0xf] }
 0x22a   :  { %1684 = vmatpush.bf16.msrb.mxu0 %v6403_v7  ;;  %v4052_v7 = vld [vmem:[#allocation7 + $0x18] sm:$0xf0]  ;;  %7692 = vst [vmem:[#allocation81_spill] sm:$0xff] %v6436_v63  ;;  %v4530_v63 = vld [vmem:[#allocation7 + $0x3c8] sm:$0xf] }
 0x22b   :  { %v6439_v55 = vor.u32 %v5260_v33, %v4052_v7  ;;  %7695 = vst [vmem:[#allocation84_spill] sm:$0xff] %v6447_v28  ;;  %v6449_v7 = vor.u32 %v5315_v19, %v4268_v20  ;;  %v4252_v19 = vld [vmem:[#allocation7 + $0x1b0] sm:$0xf0]  ;;  %v5316_v28 = vld [vmem:[#allocation7 + $0x1cc] sm:$0xf] }
 0x22c   :  { %1557 = vmatpush.bf16.msrb.mxu2 %v6433_v34  ;;  %v6462_v20 = vor.u32 %v5311_v2, %v4252_v19  ;;  %v4524_v2 = vld [vmem:[#allocation7 + $0x3d0] sm:$0xf0]  ;;  %v6472_v19 = vor.u32 %v5339_v26, %v4364_v0  ;;  %v6483_v0 = vor.u32 %v5335_v57, %v4348_v52  ;;  %v5327_v57 = vld [vmem:[#allocation7 + $0x224] sm:$0xf]  ;;  %v4292_v34 = vld [vmem:[#allocation7 + $0x1f8] sm:$0xf0] }
 0x22d   :  { %7693 = vst [vmem:[#allocation82_spill] sm:$0xff] %v6439_v55  ;;  %1590 = vmatpush.bf16.msra.mxu1 %v6449_v7  ;;  %1570 = vmatpush.bf16.msra.mxu3 %v6455_v9  ;;  %v4204_v26 = vld [vmem:[#allocation7 + $0x150] sm:$0xf0]  ;;  %v5382_v9 = vld [vmem:[#allocation7 + $0x3d4] sm:$0xf0] }
 0x22e   :  { %1685 = vmatpush.bf16.msrb.mxu0 %v6415_v50  ;;  %7696 = vst [vmem:[#allocation85_spill] sm:$0xff] %v6449_v7  ;;  %v5383_v50 = vld [vmem:[#allocation7 + $0x3e4] sm:$0xf]  ;;  %v4332_v7 = vld [vmem:[#allocation7 + $0x250] sm:$0xf0] }
 0x22f   :  { %v6458_v14 = vor.u32 %v5383_v50, %v4540_v4  ;;  %7700 = vst [vmem:[#allocation89_spill] sm:$0xff] %v6462_v20  ;;  %v5307_v4 = vld [vmem:[#allocation7 + $0x184] sm:$0xf]  ;;  %v4236_v50 = vld [vmem:[#allocation7 + $0x190] sm:$0xf0] }
 0x230   :  { %1602 = vmatpush.bf16.msra.mxu2 %v6442_v51  ;;  %v6470_v1 = vor.u32 %v5307_v4, %v4236_v50  ;;  %7703 = vst [vmem:[#allocation92_spill] sm:$0xff] %v6472_v19  ;;  %v5299_v50 = vld [vmem:[#allocation7 + $0x144] sm:$0xf]  ;;  %v4476_v52 = vld [vmem:[#allocation7 + $0x370] sm:$0xf0] }
 0x231   :  { %7699 = vst [vmem:[#allocation88_spill] sm:$0xff] %v6458_v14  ;;  %1615 = vmatpush.bf16.msrb.mxu3 %v6458_v14  ;;  %1591 = vmatpush.bf16.msra.mxu1 %v6462_v20  ;;  %v4508_v20 = vld [vmem:[#allocation7 + $0x3b0] sm:$0xf0]  ;;  %v4370_v14 = vld [vmem:[#allocation7 + $0x288] sm:$0xf] }
 0x232   :  { %1686 = vmatpush.bf16.msrb.mxu0 %v6427_v23  ;;  %v4396_v23 = vld [vmem:[#allocation7 + $0x2d0] sm:$0xf0]  ;;  %7702 = vst [vmem:[#allocation91_spill] sm:$0xff] %v6470_v1  ;;  %v6480_v4 = vor.u32 %v5375_v46, %v4508_v20  ;;  %v5367_v20 = vld [vmem:[#allocation7 + $0x364] sm:$0xf] }
 0x233   :  { %v6451_v33 = vor.u32 %v5347_v49, %v4396_v23  ;;  %v5343_v23 = vld [vmem:[#allocation7 + $0x2a4] sm:$0xf]  ;;  %v4380_v49 = vld [vmem:[#allocation7 + $0x2b0] sm:$0xf0]  ;;  %7707 = vst [vmem:[#allocation96_spill] sm:$0xff] %v6483_v0 }
 0x234   :  { %7706 = vst [vmem:[#allocation95_spill] sm:$0xff] %v6480_v4  ;;  %v5342_v51 = vld [vmem:[#allocation7 + $0x294] sm:$0xf0] }
 0x235   :  { %7697 = vst [vmem:[#allocation86_spill] sm:$0xff] %v6451_v33  ;;  %1603 = vmatpush.bf16.msra.mxu2 %v6451_v33  ;;  %1592 = vmatpush.bf16.msra.mxu1 %v6470_v1  ;;  %v5331_v33 = vld [vmem:[#allocation7 + $0x244] sm:$0xf]  ;;  %v6487_v1 = vor.u32 %v5299_v50, %v4204_v26 }
 0x236   :  { %1687 = vmatpush.bf16.msrb.mxu0 %v6439_v55  ;;  %v6465_v55 = vor.u32 %v5343_v23, %v4380_v49  ;;  %v5303_v23 = vld [vmem:[#allocation7 + $0x164] sm:$0xf]  ;;  %v4220_v49 = vld [vmem:[#allocation7 + $0x170] sm:$0xf0]  ;;  %v6492_v46 = vor.u32 %v5331_v33, %v4332_v7 }
 0x237   :  { %7708 = vst [vmem:[#allocation97_spill] sm:$0xff] %v6487_v1  ;;  %v5295_v26 = vld [vmem:[#allocation7 + $0x124] sm:$0xf]  ;;  %v4172_v33 = vld [vmem:[#allocation7 + $0x110] sm:$0xf0] }
 0x238   :  { %7701 = vst [vmem:[#allocation90_spill] sm:$0xff] %v6465_v55  ;;  %v5291_v7 = vld [vmem:[#allocation7 + $0x104] sm:$0xf] }
 0x239   :  { %1688 = vmatmul.bf16.vlgmr.msrb.gmra.mxu0 %v6320_v47  ;;  %1604 = vmatpush.bf16.msra.mxu2 %v6465_v55  ;;  %v5379_v47 = vld [vmem:[#allocation7 + $0x3c4] sm:$0xf]  ;;  %v6478_v55 = vor.u32 %v5303_v23, %v4220_v49  ;;  %7710 = vst [vmem:[#allocation99_spill] sm:$0xff] %v6492_v46  ;;  %v4316_v49 = vld [vmem:[#allocation7 + $0x230] sm:$0xf0] }
 0x23a   :  { %v6474_v61 = vor.u32 %v5379_v47, %v4524_v2  ;;  %v5371_v47 = vld [vmem:[#allocation7 + $0x384] sm:$0xf]  ;;  %v4492_v2 = vld [vmem:[#allocation7 + $0x390] sm:$0xf0]  ;;  %v6499_v50 = vor.u32 %v5327_v57, %v4316_v49 }
 0x23b   :  { %7705 = vst [vmem:[#allocation94_spill] sm:$0xff] %v6478_v55  ;;  %1593 = vmatpush.bf16.msra.mxu1 %v6478_v55  ;;  %v6489_v23 = vor.u32 %v5371_v47, %v4492_v2  ;;  %v4188_v47 = vld [vmem:[#allocation7 + $0x130] sm:$0xf0] }
 0x23c   :  { %7704 = vst [vmem:[#allocation93_spill] sm:$0xff] %v6474_v61  ;;  %1616 = vmatpush.bf16.msrb.mxu3 %v6474_v61  ;;  %v6501_v2 = vor.u32 %v5295_v26, %v4188_v47  ;;  %v5359_v26 = vld [vmem:[#allocation7 + $0x324] sm:$0xf]  ;;  %v4444_v47 = vld [vmem:[#allocation7 + $0x330] sm:$0xf0] }
 0x23d   :  { %1605 = vmatpush.bf16.msra.mxu2 %v6472_v19  ;;  %7709 = vst [vmem:[#allocation98_spill] sm:$0xff] %v6489_v23  ;;  %v6496_v19 = vor.u32 %v5367_v20, %v4476_v52  ;;  %v4300_v20 = vld [vmem:[#allocation7 + $0x210] sm:$0xf0]  ;;  %v5363_v52 = vld [vmem:[#allocation7 + $0x344] sm:$0xf] }
 0x23e   :  { %7712 = vst [vmem:[#allocation101_spill] sm:$0xff] %v6499_v50 }
 0x23f   :  { %1594 = vmatpush.bf16.msra.mxu1 %v6487_v1  ;;  %7711 = vst [vmem:[#allocation100_spill] sm:$0xff] %v6496_v19  ;;  %v5323_v1 = vld [vmem:[#allocation7 + $0x204] sm:$0xf] }
 0x240   :  { %1617 = vmatpush.bf16.msrb.mxu3 %v6480_v4  ;;  %7713 = vst [vmem:[#allocation102_spill] sm:$0xff] %v6501_v2  ;;  %v6508_v57 = vor.u32 %v5323_v1, %v4300_v20  ;;  %v4290_v1 = vld [vmem:[#allocation7 + $0x1e8] sm:$0xf]  ;;  %v5386_v4 = vld [vmem:[#allocation7 + $0x3f4] sm:$0xf0] }
 0x241   :  { %1606 = vmatpush.bf16.msra.mxu2 %v6483_v0  ;;  %v6506_v0 = vor.u32 %v5291_v7, %v4172_v33  ;;  %v5355_v7 = vld [vmem:[#allocation7 + $0x304] sm:$0xf]  ;;  %v4428_v33 = vld [vmem:[#allocation7 + $0x310] sm:$0xf0]  ;;  %v4418_v20 = vld [vmem:[#allocation7 + $0x2e8] sm:$0xf] }
 0x242   :  { %7715 = vst [vmem:[#allocation104_spill] sm:$0xff] %v6508_v57 }
 0x243   :  { %1595 = vmatpush.bf16.msra.mxu1 %v6501_v2  ;;  %7714 = vst [vmem:[#allocation103_spill] sm:$0xff] %v6506_v0  ;;  %v6518_v2 = vor.u32 %v5355_v7, %v4428_v33  ;;  %v5318_v33 = vld [vmem:[#allocation7 + $0x1d4] sm:$0xf0] }
 0x244   :  { %1618 = vmatpush.bf16.msrb.mxu3 %v6489_v23  ;;  %v5350_v23 = vld [vmem:[#allocation7 + $0x2d4] sm:$0xf0] }
 0x245   :  { %1607 = vmatpush.bf16.msra.mxu2 %v6492_v46  ;;  %v4460_v46 = vld [vmem:[#allocation7 + $0x350] sm:$0xf0]  ;;  %7718 = vst [vmem:[#allocation107_spill] sm:$0xff] %v6518_v2 }
 0x246   :  { %v6510_v49 = vor.u32 %v5363_v52, %v4460_v46  ;;  %v5322_v46 = vld [vmem:[#allocation7 + $0x1f4] sm:$0xf0] }
 0x247   :  { %1596 = vmatpush.bf16.msra.mxu1 %v6506_v0  ;;  %v5354_v52 = vld [vmem:[#allocation7 + $0x2f4] sm:$0xf0] }
 0x248   :  { %1619 = vmatpush.bf16.msrb.mxu3 %v6496_v19  ;;  %7716 = vst [vmem:[#allocation105_spill] sm:$0xff] %v6510_v49 }
 0x249   :  { %1608 = vmatpush.bf16.msra.mxu2 %v6499_v50  ;;  %v6515_v50 = vor.u32 %v5359_v26, %v4444_v47  ;;  %v6523_v26 = vor.u32 %v5322_v46, %v4290_v1  ;;  %v6525_v47 = vor.u32 %v5354_v52, %v4418_v20  ;;  %v4258_v1 = vld [vmem:[#allocation7 + $0x1a8] sm:$0xf] }
 0x24a   :  { %v4386_v46 = vld [vmem:[#allocation7 + $0x2a8] sm:$0xf] }
 0x24b   :  { %7717 = vst [vmem:[#allocation106_spill] sm:$0xff] %v6515_v50  ;;  %v4546_v52 = vld [vmem:[#allocation7 + $0x3e8] sm:$0xf] }
 0x24c   :  { %1620 = vmatpush.bf16.msrb.mxu3 %v6510_v49  ;;  %7719 = vst [vmem:[#allocation108_spill] sm:$0xff] %v6523_v26 }
 0x24d   :  { %1609 = vmatpush.bf16.msra.mxu2 %v6508_v57  ;;  %7720 = vst [vmem:[#allocation109_spill] sm:$0xff] %v6525_v47 }
 0x250   :  { %1621 = vmatpush.bf16.msrb.mxu3 %v6515_v50  ;;  %v4274_v50 = vld [vmem:[#allocation7 + $0x1c8] sm:$0xf] }
 0x254   :  { %1622 = vmatpush.bf16.msrb.mxu3 %v6518_v2  ;;  %v4402_v2 = vld [vmem:[#allocation7 + $0x2c8] sm:$0xf] }
 0x267   :  { %v866_v0 = vpop.permute.xlu1 %865  ;;  %v871_v57 = vpop.permute.xlu0 %870 }
 0x268   :  { %v869_v49 = vmul.f32 %v866_v0, %v6309_v35  ;;  %v874_v19 = vmul.f32 %v871_v57, %v6309_v35  ;;  %v6535_v0 = vor.u32 %v5318_v33, %v4274_v50  ;;  %v6537_v57 = vor.u32 %v5350_v23, %v4402_v2  ;;  %v4242_v50 = vld [vmem:[#allocation7 + $0x188] sm:$0xf]  ;;  %v5310_v33 = vld [vmem:[#allocation7 + $0x194] sm:$0xf0] }
 0x269   :  { %v6548_v2 = vor.u32 %v5386_v4, %v4546_v52  ;;  %v6560_v4 = vor.u32 %v5382_v9, %v4530_v63  ;;  %v4514_v52 = vld [vmem:[#allocation7 + $0x3a8] sm:$0xf]  ;;  %v5302_v9 = vld [vmem:[#allocation7 + $0x154] sm:$0xf0] }
 0x26a   :  { %v6527_v55 = vpack.c.bf16 %v869_v49, %v869_v49  ;;  %v6529_v7 = vpack.c.bf16 %v874_v19, %v874_v19  ;;  %7721 = vst [vmem:[#allocation110_spill] sm:$0xff] %v6535_v0  ;;  %v5314_v49 = vld [vmem:[#allocation7 + $0x1b4] sm:$0xf0]  ;;  %v4338_v63 = vld [vmem:[#allocation7 + $0x248] sm:$0xf] }
 0x26b   :  { %7722 = vst [vmem:[#allocation111_spill] sm:$0xff] %v6537_v57  ;;  %v5346_v19 = vld [vmem:[#allocation7 + $0x2b4] sm:$0xf0] }
 0x26c   :  { %1545 = vmatmul.bf16.vlgmr.msrb.gmra.mxu1 %v6527_v55  ;;  %1558 = vmatmul.bf16.vlgmr.msrb.gmra.mxu2 %v6529_v7  ;;  %7725 = vst [vmem:[#allocation114_spill] sm:$0xff] %v6548_v2 }
 0x26d   :  { %1641 = vmatpush.bf16.msrb.mxu1 %v6523_v26  ;;  %1654 = vmatpush.bf16.msrb.mxu2 %v6525_v47  ;;  %v6542_v26 = vor.u32 %v5314_v49, %v4258_v1  ;;  %v6544_v47 = vor.u32 %v5346_v19, %v4386_v46  ;;  %v6555_v1 = vor.u32 %v5342_v51, %v4370_v14  ;;  %v4226_v49 = vld [vmem:[#allocation7 + $0x168] sm:$0xf]  ;;  %v5306_v46 = vld [vmem:[#allocation7 + $0x174] sm:$0xf0] }
 0x26e   :  { %7728 = vst [vmem:[#allocation117_spill] sm:$0xff] %v6560_v4  ;;  %v4354_v19 = vld [vmem:[#allocation7 + $0x268] sm:$0xf] }
 0x26f   :  { %v876_v20 = vpop.permute.xlu0 %875  ;;  %7723 = vst [vmem:[#allocation112_spill] sm:$0xff] %v6542_v26  ;;  %v4210_v14 = vld [vmem:[#allocation7 + $0x148] sm:$0xf] }
 0x270   :  { %v879_v61 = vmul.f32 %v876_v20, %v6309_v35  ;;  %7724 = vst [vmem:[#allocation113_spill] sm:$0xff] %v6544_v47  ;;  %v6553_v35 = vor.u32 %v5310_v33, %v4242_v50  ;;  %v5338_v20 = vld [vmem:[#allocation7 + $0x274] sm:$0xf0]  ;;  %v6564_v50 = vor.u32 %v5306_v46, %v4226_v49  ;;  %v6575_v49 = vor.u32 %v5302_v9, %v4210_v14 }
 0x271   :  { %1642 = vmatpush.bf16.msrb.mxu1 %v6535_v0  ;;  %1655 = vmatpush.bf16.msrb.mxu2 %v6537_v57  ;;  %7727 = vst [vmem:[#allocation116_spill] sm:$0xff] %v6555_v1  ;;  %v5378_v57 = vld [vmem:[#allocation7 + $0x3b4] sm:$0xf0]  ;;  %v6566_v51 = vor.u32 %v5338_v20, %v4354_v19  ;;  %v4194_v19 = vld [vmem:[#allocation7 + $0x128] sm:$0xf] }
 0x272   :  { %v6546_v23 = vpack.c.bf16 %v879_v61, %v879_v61  ;;  %7726 = vst [vmem:[#allocation115_spill] sm:$0xff] %v6553_v35  ;;  %v6569_v33 = vor.u32 %v5378_v57, %v4514_v52  ;;  %v5298_v52 = vld [vmem:[#allocation7 + $0x134] sm:$0xf0] }
 0x273   :  { %7729 = vst [vmem:[#allocation118_spill] sm:$0xff] %v6564_v50  ;;  %v5370_v0 = vld [vmem:[#allocation7 + $0x374] sm:$0xf0] }
 0x274   :  { %1571 = vmatmul.bf16.vlgmr.msra.gmra.mxu3 %v6546_v23  ;;  %7730 = vst [vmem:[#allocation119_spill] sm:$0xff] %v6566_v51  ;;  %v5294_v9 = vld [vmem:[#allocation7 + $0x114] sm:$0xf0] }
 0x275   :  { %1643 = vmatpush.bf16.msrb.mxu1 %v6542_v26  ;;  %1656 = vmatpush.bf16.msrb.mxu2 %v6544_v47  ;;  %7731 = vst [vmem:[#allocation120_spill] sm:$0xff] %v6569_v33  ;;  %v5334_v47 = vld [vmem:[#allocation7 + $0x254] sm:$0xf0] }
 0x276   :  { %1667 = vmatpush.bf16.msra.mxu3 %v6548_v2  ;;  %v6558_v61 = vpop.f32.mrf.mxu0  ;;  %v4498_v2 = vld [vmem:[#allocation7 + $0x388] sm:$0xf]  ;;  %v5374_v26 = vld [vmem:[#allocation7 + $0x394] sm:$0xf0]  ;;  %7732 = vst [vmem:[#allocation121_spill] sm:$0xff] %v6575_v49  ;;  %v6577_v46 = vor.u32 %v5334_v47, %v4338_v63 }
 0x277   :  { %v6580_v20 = vor.u32 %v5374_v26, %v4498_v2  ;;  %v4178_v47 = vld [vmem:[#allocation7 + $0x108] sm:$0xf]  ;;  %v5326_v2 = vld [vmem:[#allocation7 + $0x214] sm:$0xf0] }
 0x278   :  { %7733 = vst [vmem:[#allocation122_spill] sm:$0xff] %v6577_v46  ;;  %v4306_v26 = vld [vmem:[#allocation7 + $0x208] sm:$0xf] }
 0x279   :  { %1644 = vmatpush.bf16.msrb.mxu1 %v6553_v35  ;;  %1657 = vmatpush.bf16.msrb.mxu2 %v6555_v1  ;;  %7734 = vst [vmem:[#allocation123_spill] sm:$0xff] %v6580_v20  ;;  %v4322_v1 = vld [vmem:[#allocation7 + $0x228] sm:$0xf] }
 0x27a   :  { %1668 = vmatpush.bf16.msra.mxu3 %v6560_v4  ;;  %v5330_v4 = vld [vmem:[#allocation7 + $0x234] sm:$0xf0]  ;;  %v4482_v35 = vld [vmem:[#allocation7 + $0x368] sm:$0xf] }
 0x27b   :  { %v6586_v14 = vor.u32 %v5330_v4, %v4322_v1  ;;  %v6589_v63 = vor.u32 %v5370_v0, %v4482_v35  ;;  %v6594_v1 = vor.u32 %v5294_v9, %v4178_v47  ;;  %v6596_v4 = vor.u32 %v5326_v2, %v4306_v26  ;;  %v5312_v47 = vld [vmem:[#allocation7 + $0x1ac] sm:$0xf]  ;;  %v4260_v9 = vld [vmem:[#allocation7 + $0x1b8] sm:$0xf0] }
 0x27c   :  { %1597 = vmatmul.bf16.vlgmr.msra.gmra.mxu1 %v6527_v55  ;;  %1610 = vmatmul.bf16.vlgmr.msra.gmra.mxu2 %v6529_v7  ;;  %v5344_v26 = vld [vmem:[#allocation7 + $0x2ac] sm:$0xf]  ;;  %v4388_v2 = vld [vmem:[#allocation7 + $0x2b8] sm:$0xf0] }
 0x27d   :  { %1645 = vmatpush.bf16.msrb.mxu1 %v6564_v50  ;;  %1658 = vmatpush.bf16.msrb.mxu2 %v6566_v51  ;;  %v6584_v51 = vor.u32 %v5298_v52, %v4194_v19  ;;  %7736 = vst [vmem:[#allocation125_spill] sm:$0xff] %v6586_v14  ;;  %v5320_v50 = vld [vmem:[#allocation7 + $0x1ec] sm:$0xf]  ;;  %v4450_v52 = vld [vmem:[#allocation7 + $0x328] sm:$0xf] }
 0x27e   :  { %1669 = vmatpush.bf16.msra.mxu3 %v6569_v33  ;;  %v1535_v57 = vpop.f32.mrf.mxu0  ;;  %7737 = vst [vmem:[#allocation126_spill] sm:$0xff] %v6589_v63  ;;  %v5366_v33 = vld [vmem:[#allocation7 + $0x354] sm:$0xf0]  ;;  %v6603_v19 = vor.u32 %v5320_v50, %v4292_v34  ;;  %v4434_v50 = vld [vmem:[#allocation7 + $0x308] sm:$0xf] }
 0x27f   :  { %7735 = vst [vmem:[#allocation124_spill] sm:$0xff] %v6584_v51  ;;  %v4466_v57 = vld [vmem:[#allocation7 + $0x348] sm:$0xf] }
 0x280   :  { %7738 = vst [vmem:[#allocation127_spill] sm:$0xff] %v6594_v1  ;;  %v6601_v35 = vor.u32 %v5366_v33, %v4466_v57  ;;  %v6611_v33 = vor.u32 %v5362_v32, %v4450_v52  ;;  %v5384_v57 = vld [vmem:[#allocation7 + $0x3ec] sm:$0xf] }
 0x281   :  { %1646 = vmatpush.bf16.msrb.mxu1 %v6575_v49  ;;  %1659 = vmatpush.bf16.msrb.mxu2 %v6577_v46  ;;  %v5352_v49 = vld [vmem:[#allocation7 + $0x2ec] sm:$0xf]  ;;  %v4420_v46 = vld [vmem:[#allocation7 + $0x2f8] sm:$0xf0]  ;;  %7739 = vst [vmem:[#allocation128_spill] sm:$0xff] %v6596_v4 }
 0x282   :  { %1670 = vmatpush.bf16.msra.mxu3 %v6580_v20  ;;  %7740 = vst [vmem:[#allocation129_spill] sm:$0xff] %v6601_v35  ;;  %v6605_v20 = vor.u32 %v5352_v49, %v4420_v46  ;;  %v5358_v49 = vld [vmem:[#allocation7 + $0x314] sm:$0xf0]  ;;  %v5308_v52 = vld [vmem:[#allocation7 + $0x18c] sm:$0xf] }
 0x283   :  { %7741 = vst [vmem:[#allocation130_spill] sm:$0xff] %v6603_v19 }
 0x284   :  { %1623 = vmatmul.bf16.vlgmr.msrb.gmra.mxu3 %v6546_v23  ;;  %7742 = vst [vmem:[#allocation131_spill] sm:$0xff] %v6605_v20 }
 0x285   :  { %1647 = vmatpush.bf16.msrb.mxu1 %v6584_v51  ;;  %1660 = vmatpush.bf16.msrb.mxu2 %v6586_v14  ;;  %v4276_v51 = vld [vmem:[#allocation7 + $0x1d8] sm:$0xf0]  ;;  %7743 = vst [vmem:[#allocation132_spill] sm:$0xff] %v6611_v33 }
 0x286   :  { %1671 = vmatpush.bf16.msra.mxu3 %v6589_v63  ;;  %v6599_v0 = vpop.f32.mrf.mxu0  ;;  %v4404_v14 = vld [vmem:[#allocation7 + $0x2d8] sm:$0xf0]  ;;  %v6613_v34 = vor.u32 %v5316_v28, %v4276_v51  ;;  %v6622_v28 = vor.u32 %v5358_v49, %v4434_v50  ;;  %v6624_v51 = vor.u32 %v5312_v47, %v4260_v9  ;;  %v5304_v47 = vld [vmem:[#allocation7 + $0x16c] sm:$0xf] }
 0x287   :  { %v6616_v46 = vor.u32 %v5348_v39, %v4404_v14  ;;  %v6627_v39 = vor.u32 %v5344_v26, %v4388_v2  ;;  %v4372_v63 = vld [vmem:[#allocation7 + $0x298] sm:$0xf0]  ;;  %v5336_v26 = vld [vmem:[#allocation7 + $0x26c] sm:$0xf] }
 0x288   :  { %7744 = vst [vmem:[#allocation133_spill] sm:$0xff] %v6613_v34  ;;  %v4228_v9 = vld [vmem:[#allocation7 + $0x178] sm:$0xf0] }
 0x289   :  { %1648 = vmatpush.bf16.msrb.mxu1 %v6594_v1  ;;  %1661 = vmatpush.bf16.msrb.mxu2 %v6596_v4  ;;  %7745 = vst [vmem:[#allocation134_spill] sm:$0xff] %v6616_v46  ;;  %v4548_v4 = vld [vmem:[#allocation7 + $0x3f8] sm:$0xf0] }
 0x28a   :  { %1672 = vmatpush.bf16.msra.mxu3 %v6601_v35  ;;  %7746 = vst [vmem:[#allocation135_spill] sm:$0xff] %v6622_v28  ;;  %v6629_v14 = vor.u32 %v5384_v57, %v4548_v4  ;;  %v5340_v35 = vld [vmem:[#allocation7 + $0x28c] sm:$0xf]  ;;  %v4532_v1 = vld [vmem:[#allocation7 + $0x3d8] sm:$0xf0] }
 0x28b   :  { %7747 = vst [vmem:[#allocation136_spill] sm:$0xff] %v6624_v51  ;;  %v6637_v49 = vor.u32 %v5340_v35, %v4372_v63  ;;  %v4356_v2 = vld [vmem:[#allocation7 + $0x278] sm:$0xf0]  ;;  %v5376_v57 = vld [vmem:[#allocation7 + $0x3ac] sm:$0xf] }
 0x28c   :  { %1649 = vmatmul.bf16.vlgmr.msrb.gmra.mxu1 %v6527_v55  ;;  %1662 = vmatmul.bf16.vlgmr.msrb.gmra.mxu2 %v6529_v7  ;;  %7748 = vst [vmem:[#allocation137_spill] sm:$0xff] %v6627_v39  ;;  %v6649_v63 = vor.u32 %v5336_v26, %v4356_v2  ;;  %v5300_v35 = vld [vmem:[#allocation7 + $0x14c] sm:$0xf]  ;;  %v4196_v2 = vld [vmem:[#allocation7 + $0x138] sm:$0xf0] }
 0x28d   :  { %1693 = vmatpush.bf16.msra.mxu1 %v6603_v19  ;;  %1706 = vmatpush.bf16.msra.mxu2 %v6605_v20  ;;  %7749 = vst [vmem:[#allocation138_spill] sm:$0xff] %v6629_v14  ;;  %v4244_v20 = vld [vmem:[#allocation7 + $0x198] sm:$0xf0]  ;;  %v5380_v19 = vld [vmem:[#allocation7 + $0x3cc] sm:$0xf] }
 0x28e   :  { %1673 = vmatpush.bf16.msra.mxu3 %v6611_v33  ;;  %v1587_v32 = vpop.f32.mrf.mxu0  ;;  %v6633_v50 = vor.u32 %v5308_v52, %v4244_v20  ;;  %7751 = vst [vmem:[#allocation140_spill] sm:$0xff] %v6637_v49  ;;  %v6639_v4 = vor.u32 %v5380_v19, %v4532_v1  ;;  %v6645_v52 = vor.u32 %v5304_v47, %v4228_v9  ;;  %v4212_v19 = vld [vmem:[#allocation7 + $0x158] sm:$0xf0]  ;;  %v5296_v26 = vld [vmem:[#allocation7 + $0x12c] sm:$0xf] }
 0x28f   :  { %v4516_v32 = vld [vmem:[#allocation7 + $0x3b8] sm:$0xf0]  ;;  %7754 = vst [vmem:[#allocation143_spill] sm:$0xff] %v6649_v63  ;;  %v6654_v33 = vor.u32 %v5300_v35, %v4212_v19 }
 0x290   :  { %7750 = vst [vmem:[#allocation139_spill] sm:$0xff] %v6633_v50  ;;  %v6651_v1 = vor.u32 %v5376_v57, %v4516_v32  ;;  %v5328_v57 = vld [vmem:[#allocation7 + $0x22c] sm:$0xf]  ;;  %v4324_v32 = vld [vmem:[#allocation7 + $0x238] sm:$0xf0] }
 0x291   :  { %1694 = vmatpush.bf16.msra.mxu1 %v6613_v34  ;;  %1707 = vmatpush.bf16.msra.mxu2 %v6616_v46  ;;  %7752 = vst [vmem:[#allocation141_spill] sm:$0xff] %v6639_v4  ;;  %v4340_v46 = vld [vmem:[#allocation7 + $0x258] sm:$0xf0]  ;;  %v6667_v35 = vor.u32 %v5328_v57, %v4324_v32  ;;  %v5356_v57 = vld [vmem:[#allocation7 + $0x30c] sm:$0xf]  ;;  %v6760_v34 = vld [vmem:[#allocation5 + $0x170] sm:$0xff] }
 0x292   :  { %1674 = vmatpush.bf16.msra.mxu3 %v6622_v28  ;;  %7753 = vst [vmem:[#allocation142_spill] sm:$0xff] %v6645_v52  ;;  %v4500_v28 = vld [vmem:[#allocation7 + $0x398] sm:$0xf0] }
 0x293   :  { %7755 = vst [vmem:[#allocation144_spill] sm:$0xff] %v6651_v1  ;;  %v4308_v19 = vld [vmem:[#allocation7 + $0x218] sm:$0xf0] }
 0x294   :  { %7756 = vst [vmem:[#allocation145_spill] sm:$0xff] %v6654_v33  ;;  %v4436_v32 = vld [vmem:[#allocation7 + $0x318] sm:$0xf0] }
 0x295   :  { %1695 = vmatpush.bf16.msra.mxu1 %v6624_v51  ;;  %1708 = vmatpush.bf16.msra.mxu2 %v6627_v39  ;;  %v5332_v39 = vld [vmem:[#allocation7 + $0x24c] sm:$0xf]  ;;  %7760 = vst [vmem:[#allocation149_spill] sm:$0xff] %v6667_v35  ;;  %v6757_v51 = vld [vmem:[#allocation5 + $0xb8] sm:$0xff] }
 0x296   :  { %1719 = vmatpush.bf16.msrb.mxu3 %v6629_v14  ;;  %v6643_v20 = vpop.f32.mrf.mxu0  ;;  %v5372_v14 = vld [vmem:[#allocation7 + $0x38c] sm:$0xf]  ;;  %v6658_v47 = vor.u32 %v5332_v39, %v4340_v46  ;;  %v4180_v39 = vld [vmem:[#allocation7 + $0x118] sm:$0xf0] }
 0x297   :  { %1675 = vmatmul.bf16.vlgmr.msra.gmra.mxu3 %v6546_v23  ;;  %v6660_v9 = vor.u32 %v5372_v14, %v4500_v28  ;;  %v5292_v28 = vld [vmem:[#allocation7 + $0x10c] sm:$0xf] }
 0x298   :  { %7757 = vst [vmem:[#allocation146_spill] sm:$0xff] %v6658_v47  ;;  %v5324_v14 = vld [vmem:[#allocation7 + $0x20c] sm:$0xf] }
 0x299   :  { %1696 = vmatpush.bf16.msra.mxu1 %v6633_v50  ;;  %1709 = vmatpush.bf16.msra.mxu2 %v6637_v49  ;;  %7758 = vst [vmem:[#allocation147_spill] sm:$0xff] %v6660_v9  ;;  %v5368_v49 = vld [vmem:[#allocation7 + $0x36c] sm:$0xf] }
 0x29a   :  { %1720 = vmatpush.bf16.msrb.mxu3 %v6639_v4  ;;  %v4484_v4 = vld [vmem:[#allocation7 + $0x378] sm:$0xf0] }
 0x29b   :  { %v6669_v46 = vor.u32 %v5368_v49, %v4484_v4  ;;  %v5360_v49 = vld [vmem:[#allocation7 + $0x32c] sm:$0xf]  ;;  %v4452_v4 = vld [vmem:[#allocation7 + $0x338] sm:$0xf0] }
 0x29d   :  { %1697 = vmatpush.bf16.msra.mxu1 %v6645_v52  ;;  %1710 = vmatpush.bf16.msra.mxu2 %v6649_v63  ;;  %v6663_v52 = vor.u32 %v5296_v26, %v4196_v2  ;;  %7761 = vst [vmem:[#allocation150_spill] sm:$0xff] %v6669_v46  ;;  %v5364_v63 = vld [vmem:[#allocation7 + $0x34c] sm:$0xf]  ;;  %v6683_v2 = vor.u32 %v5360_v49, %v4452_v4  ;;  %v6705_v49 = vld [vmem:[#allocation5 + $0x1d0] sm:$0xff]  ;;  %v6715_v4 = vld [vmem:[#allocation5 + $0xf8] sm:$0xff] }
 0x29e   :  { %1721 = vmatpush.bf16.msrb.mxu3 %v6651_v1  ;;  %v1639_v50 = vpop.f32.mrf.mxu0  ;;  %v4468_v1 = vld [vmem:[#allocation7 + $0x358] sm:$0xf0] }
 0x29f   :  { %7759 = vst [vmem:[#allocation148_spill] sm:$0xff] %v6663_v52  ;;  %v6676_v50 = vor.u32 %v5324_v14, %v4308_v19  ;;  %v6678_v26 = vor.u32 %v5364_v63, %v4468_v1  ;;  %v6693_v63 = vld [vmem:[#allocation5 + $0xe0] sm:$0xff]  ;;  %v6697_v1 = vor.u32 %v5356_v57, %v4436_v32  ;;  %v6702_v19 = vld [vmem:[#allocation5 + $0xd0] sm:$0xff] }
 0x2a0   :  { %7765 = vst [vmem:[#allocation154_spill] sm:$0xff] %v6683_v2  ;;  %v6699_v14 = vld [vmem:[#allocation5 + $0x1e0] sm:$0xff]  ;;  %v6718_v57 = vld [vmem:[#allocation5 + $0xb0] sm:$0xff] }
 0x2a1   :  { %1698 = vmatpush.bf16.msra.mxu1 %v6654_v33  ;;  %1711 = vmatpush.bf16.msra.mxu2 %v6658_v47  ;;  %v6672_v33 = vor.u32 %v5292_v28, %v4180_v39  ;;  %7763 = vst [vmem:[#allocation152_spill] sm:$0xff] %v6676_v50  ;;  %v6685_v28 = vld [vmem:[#allocation5 + $0xf0] sm:$0xff]  ;;  %v6739_v47 = vld [vmem:[#allocation5 + $0xd8] sm:$0xff] }
 0x2a2   :  { %1722 = vmatpush.bf16.msrb.mxu3 %v6660_v9  ;;  %7764 = vst [vmem:[#allocation153_spill] sm:$0xff] %v6678_v26  ;;  %v6688_v39 = vld [vmem:[#allocation5 + $0x1f0] sm:$0xff]  ;;  %v6748_v9 = vld [vmem:[#allocation5 + $0xc8] sm:$0xff] }
 0x2a3   :  { %7762 = vst [vmem:[#allocation151_spill] sm:$0xff] %v6672_v33  ;;  %v6721_v32 = vld [vmem:[#allocation5 + $0x1b0] sm:$0xff] }
 0x2a4   :  { %7766 = vst [vmem:[#allocation155_spill] sm:$0xff] %v6697_v1 }
 0x2a5   :  { %1699 = vmatpush.bf16.msra.mxu1 %v6663_v52  ;;  %1712 = vmatpush.bf16.msra.mxu2 %v6667_v35  ;;  %v6733_v35 = vld [vmem:[#allocation5 + $0x1a0] sm:$0xff]  ;;  %v6754_v52 = vld [vmem:[#allocation5 + $0x70] sm:$0xff] }
 0x2a6   :  { %1723 = vmatpush.bf16.msrb.mxu3 %v6669_v46  ;;  %v6745_v46 = vld [vmem:[#allocation5 + $0x80] sm:$0xff] }
 0x2a9   :  { %1700 = vmatpush.bf16.msra.mxu1 %v6672_v33  ;;  %1713 = vmatpush.bf16.msra.mxu2 %v6676_v50  ;;  %v6725_v50 = vld [vmem:[#allocation5 + $0xa0] sm:$0xff] }
 0x2aa   :  { %1724 = vmatpush.bf16.msrb.mxu3 %v6678_v26  ;;  %v6736_v26 = vld [vmem:[#allocation5 + $0x90] sm:$0xff]  ;;  %v6751_v33 = vld [vmem:[#allocation5 + $0x180] sm:$0xff] }
 0x2ac   :  { %1701 = vmatmul.bf16.vlgmr.msra.gmra.mxu1 %v6527_v55  ;;  %1714 = vmatmul.bf16.vlgmr.msra.gmra.mxu2 %v6529_v7  ;;  %v6708_v55 = vld [vmem:[#allocation5 + $0xc0] sm:$0xff] }
 0x2ad   :  { %1824 = vmatpush.msrb.mxu1 %v6685_v28  ;;  %1844 = vmatpush.msrb.mxu2 %v6688_v39  ;;  %v6712_v7 = vld [vmem:[#allocation5 + $0x1c0] sm:$0xff] }
 0x2ae   :  { %1725 = vmatpush.bf16.msrb.mxu3 %v6683_v2  ;;  %v6730_v2 = vld [vmem:[#allocation5 + $0xe8] sm:$0xff] }
 0x2af   :  { %1825 = vmatpush.msrb.mxu1 %v6693_v63  ;;  %1845 = vmatpush.msrb.mxu2 %v6699_v14 }
 0x2b1   :  { %1826 = vmatpush.msrb.mxu1 %v6702_v19  ;;  %1846 = vmatpush.msrb.mxu2 %v6705_v49 }
 0x2b2   :  { %1726 = vmatpush.bf16.msrb.mxu3 %v6697_v1 }
 0x2b3   :  { %1827 = vmatpush.msrb.mxu1 %v6708_v55  ;;  %1847 = vmatpush.msrb.mxu2 %v6712_v7 }
 0x2b5   :  { %1828 = vmatpush.msrb.mxu1 %v6718_v57  ;;  %1848 = vmatpush.msrb.mxu2 %v6721_v32 }
 0x2b6   :  { %1864 = vmatpush.msra.mxu3 %v6715_v4  ;;  %v6728_v1 = vpop.f32.mrf.mxu0 }
 0x2b7   :  { %1727 = vmatmul.bf16.vlgmr.msrb.gmra.mxu3 %v6546_v23  ;;  %1829 = vmatpush.msrb.mxu1 %v6725_v50  ;;  %v6742_v23 = vld [vmem:[#allocation5 + $0x190] sm:$0xff] }
 0x2b8   :  { %1865 = vmatpush.msra.mxu3 %v6730_v2  ;;  %1849 = vmatpush.msrb.mxu2 %v6733_v35 }
 0x2b9   :  { %1830 = vmatpush.msrb.mxu1 %v6736_v26 }
 0x2ba   :  { %1866 = vmatpush.msra.mxu3 %v6739_v47  ;;  %1850 = vmatpush.msrb.mxu2 %v6742_v23 }
 0x2bb   :  { %1831 = vmatpush.msrb.mxu1 %v6745_v46 }
 0x2bc   :  { %1867 = vmatpush.msra.mxu3 %v6748_v9  ;;  %1851 = vmatpush.msrb.mxu2 %v6751_v33 }
 0x2bd   :  { %1832 = vmatpush.msrb.mxu1 %v6754_v52 }
 0x2be   :  { %1868 = vmatpush.msra.mxu3 %v6757_v51  ;;  %1852 = vmatpush.msrb.mxu2 %v6760_v34  ;;  %v1691_v10 = vpop.f32.mrf.mxu0 }
 0x2bf   :  { %1833 = vmatpush.msrb.mxu1 %v6763_v59  ;;  %v6781_v10 = vld [vmem:[#allocation5 + $0x40] sm:$0xff] }
 0x2c0   :  { %1869 = vmatpush.msra.mxu3 %v6766_v30  ;;  %1853 = vmatpush.msrb.mxu2 %v6769_v16 }
 0x2c1   :  { %1834 = vmatpush.msrb.mxu1 %v6772_v40 }
 0x2c2   :  { %1870 = vmatpush.msra.mxu3 %v6775_v56  ;;  %1854 = vmatpush.msrb.mxu2 %v6778_v45 }
 0x2c3   :  { %1835 = vmatpush.msrb.mxu1 %v6781_v10 }
 0x2c4   :  { %1871 = vmatpush.msra.mxu3 %v6784_v6  ;;  %1855 = vmatpush.msrb.mxu2 %v6787_v29 }
 0x2c5   :  { %1836 = vmatpush.msrb.mxu1 %v6790_v17 }
 0x2c6   :  { %1872 = vmatpush.msra.mxu3 %v6793_v38  ;;  %1856 = vmatpush.msrb.mxu2 %v6796_v60 }
 0x2c7   :  { %1837 = vmatpush.msrb.mxu1 %v6799_v54 }
 0x2c8   :  { %1873 = vmatpush.msra.mxu3 %v6802_v12  ;;  %1857 = vmatpush.msrb.mxu2 %v6805_v43  ;;  %v4693_v12 = vld [vmem:[#allocation11 + $0xd8] sm:$0xf0] }
 0x2c9   :  { %1838 = vmatpush.msrb.mxu1 %v6808_v37 }
 0x2ca   :  { %1874 = vmatpush.msra.mxu3 %v6811_v62  ;;  %1858 = vmatpush.msrb.mxu2 %v6814_v25 }
 0x2cb   :  { %1839 = vmatpush.msrb.mxu1 %v6817_v22 }
 0x2cc   :  { %1875 = vmatpush.msra.mxu3 %v6820_v27  ;;  %1859 = vmatpush.msrb.mxu2 %v6823_v24 }
 0x2ce   :  { %1876 = vmatpush.msra.mxu3 %v6826_v21  ;;  %v5419_v21 = vld [vmem:[#allocation10 + $0x38] sm:$0xff] }
 0x2cf   :  { %1809 = vmatpush.bf16.msra.mxu0 %v5419_v21 }
 0x2d0   :  { %1877 = vmatpush.msra.mxu3 %v6829_v18 }
 0x2d2   :  { %1878 = vmatpush.msra.mxu3 %v6832_v15 }
 0x2d4   :  { %1879 = vmatpush.msra.mxu3 %v6835_v11  ;;  %v5418_v11 = vld [vmem:[#allocation10 + $0x30] sm:$0xff] }
 0x2d5   :  { %1810 = vmatpush.bf16.msra.mxu0 %v5418_v11  ;;  %v5413_v11 = vld [vmem:[#allocation10 + $0x8] sm:$0xff] }
 0x2e9   :  { %v1546_v8 = vpop.f32.mrf.mxu1 }
 0x2ef   :  { %v1559_v5 = vpop.f32.mrf.mxu2 }
 0x2f1   :  { %v1548_v3 = vpop.f32.mrf.mxu1 }
 0x2f2   :  { %v5417_v3 = vld [vmem:[#allocation10 + $0x28] sm:$0xff] }
 0x2f3   :  { %1811 = vmatpush.bf16.msra.mxu0 %v5417_v3 }
 0x2f7   :  { %v1561_v58 = vpop.f32.mrf.mxu2  ;;  %v1572_v53 = vpop.f32.mrf.mxu3 }
 0x2f8   :  { %v5416_v58 = vld [vmem:[#allocation10 + $0x20] sm:$0xff] }
 0x2f9   :  { %v1598_v48 = vpop.f32.mrf.mxu1  ;;  %1812 = vmatpush.bf16.msra.mxu0 %v5416_v58 }
 0x2ff   :  { %v1574_v44 = vpop.f32.mrf.mxu3  ;;  %v1611_v41 = vpop.f32.mrf.mxu2 }
 0x300   :  { %v5415_v44 = vld [vmem:[#allocation10 + $0x18] sm:$0xff] }
 0x301   :  { %v1600_v36 = vpop.f32.mrf.mxu1  ;;  %1813 = vmatpush.bf16.msra.mxu0 %v5415_v44  ;;  %v5412_v44 = vld [vmem:[#allocation10] sm:$0xff] }
 0x302   :  { %v1599_v36 = vadd.f32 %v1598_v48, %v6599_v0 }
 0x307   :  { %v1613_v24 = vpop.f32.mrf.mxu2  ;;  %v1624_v25 = vpop.f32.mrf.mxu3 }
 0x308   :  { %v5414_v24 = vld [vmem:[#allocation10 + $0x10] sm:$0xff] }
 0x309   :  { %v1650_v31 = vpop.f32.mrf.mxu1  ;;  %1814 = vmatpush.bf16.msra.mxu0 %v5414_v24  ;;  %v6854_v24 = vld [vmem:[#allocation5 + $0x1b8] sm:$0xff] }
 0x30a   :  { %v1651_v27 = vadd.f32 %v1650_v31, %v6643_v20  ;;  %v6842_v31 = vld [vmem:[#allocation5 + $0x1f8] sm:$0xff] }
 0x30d   :  { %1815 = vmatpush.bf16.msra.mxu0 %v5413_v11  ;;  %v6864_v11 = vld [vmem:[#allocation5 + $0x188] sm:$0xff] }
 0x30f   :  { %v1626_v43 = vpop.f32.mrf.mxu3  ;;  %v1663_v18 = vpop.f32.mrf.mxu2 }
 0x310   :  { %v1664_v3 = vadd.f32 %v1663_v18, %v1651_v27 }
 0x311   :  { %v1652_v22 = vpop.f32.mrf.mxu1  ;;  %1816 = vmatpush.bf16.msra.mxu0 %v5412_v44  ;;  %v6867_v44 = vld [vmem:[#allocation5 + $0x178] sm:$0xff] }
 0x312   :  { %v1547_v22 = vadd.f32 %v1546_v8, %v6558_v61 }
 0x315   :  { %1884 = vmatpush.msrb.mxu0 %v6842_v31 }
 0x317   :  { %v1665_v15 = vpop.f32.mrf.mxu2 }
 0x318   :  { %v1612_v15 = vadd.f32 %v1611_v41, %v1599_v36 }
 0x31a   :  { %v1676_v60 = vpop.f32.mrf.mxu3  ;;  %v1625_v54 = vadd.f32 %v1624_v25, %v1612_v15  ;;  %v6845_v25 = vld [vmem:[#allocation5 + $0x1e8] sm:$0xff]  ;;  %v868_v15 = vpop.permute.xlu1 %867 }
 0x31b   :  { %v1677_v62 = vadd.f32 %v1676_v60, %v1664_v3  ;;  %1885 = vmatpush.msrb.mxu0 %v6845_v25 }
 0x322   :  { %v1678_v37 = vpop.f32.mrf.mxu3 }
 0x323   :  { %v1560_v37 = vadd.f32 %v1559_v5, %v1547_v22 }
 0x325   :  { %v1573_v45 = vadd.f32 %v1572_v53, %v1560_v37 }
 0x327   :  { %v1732_v48 = vmax.f32 %v1573_v45, %v1625_v54 }
 0x329   :  { %v1702_v29 = vpop.f32.mrf.mxu1  ;;  %v1733_v8 = vmax.f32 %v1732_v48, %v1677_v62 }
 0x32a   :  { %v1703_v58 = vadd.f32 %v1702_v29, %v6728_v1  ;;  %v6848_v29 = vld [vmem:[#allocation5 + $0x1d8] sm:$0xff]  ;;  %v6851_v1 = vld [vmem:[#allocation5 + $0x1c8] sm:$0xff] }
 0x32b   :  { %1886 = vmatpush.msrb.mxu0 %v6848_v29 }
 0x32d   :  { %1887 = vmatpush.msrb.mxu0 %v6851_v1 }
 0x32f   :  { %v1715_v43 = vpop.f32.mrf.mxu2  ;;  %1888 = vmatpush.msrb.mxu0 %v6854_v24 }
 0x330   :  { %v1716_v0 = vadd.f32 %v1715_v43, %v1703_v58  ;;  %v873_v43 = vpop.permute.xlu2 %872 }
 0x331   :  { %v1704_v21 = vpop.f32.mrf.mxu1 }
 0x337   :  { %v1717_v17 = vpop.f32.mrf.mxu2 }
 0x33a   :  { %v1728_v16 = vpop.f32.mrf.mxu3 }
 0x33b   :  { %v1729_v41 = vadd.f32 %v1728_v16, %v1716_v0 }
 0x33d   :  { %v1734_v5 = vmax.f32 %v1733_v8, %v1729_v41 }
 0x33f   :  { %v1735_v53 = vsub.f32 %v1573_v45, %v1734_v5  ;;  %v1738_v18 = vsub.f32 %v1625_v54, %v1734_v5  ;;  %v1741_v27 = vsub.f32 %v1677_v62, %v1734_v5  ;;  %v1744_v60 = vsub.f32 %v1729_v41, %v1734_v5  ;;  %v6857_v54 = vld [vmem:[#allocation5 + $0x1a8] sm:$0xff]  ;;  %v6860_v62 = vld [vmem:[#allocation5 + $0x198] sm:$0xff] }
 0x340   :  { %1889 = vmatpush.msrb.mxu0 %v6857_v54  ;;  %v6870_v41 = vld [vmem:[#allocation5 + $0x168] sm:$0xff] }
 0x341   :  { %v1736_v17 = vmul.f32 1.442695, %v1735_v53  ;;  %v1739_v16 = vmul.f32 1.442695, %v1738_v18  ;;  %v1742_v61 = vmul.f32 1.442695, %v1741_v27 }
 0x342   :  { %v1730_v20 = vpop.f32.mrf.mxu3  ;;  %v1745_v36 = vmul.f32 1.442695, %v1744_v60  ;;  %1890 = vmatpush.msrb.mxu0 %v6860_v62  ;;  %v6873_v53 = vld [vmem:[#allocation5 + $0x158] sm:$0xff]  ;;  %v6876_v27 = vld [vmem:[#allocation5 + $0x148] sm:$0xff]  ;;  %v878_v60 = vpop.permute.xlu2 %877 }
 0x343   :  { %5612 = vpow2.f32 %v1736_v17  ;;  %v6882_v20 = vld [vmem:[#allocation5 + $0x128] sm:$0xff] }
 0x344   :  { %5614 = vpow2.f32 %v1739_v16  ;;  %1891 = vmatpush.msrb.mxu0 %v6864_v11  ;;  %v6879_v16 = vld [vmem:[#allocation5 + $0x138] sm:$0xff]  ;;  %7786 = vst [vmem:[#allocation175_spill] sm:$0xff] %v6882_v20 }
 0x345   :  { %5616 = vpow2.f32 %v1742_v61  ;;  %7785 = vst [vmem:[#allocation174_spill] sm:$0xff] %v6879_v16 }
 0x346   :  { %5618 = vpow2.f32 %v1745_v36  ;;  %1892 = vmatpush.msrb.mxu0 %v6867_v44 }
 0x348   :  { %1893 = vmatpush.msrb.mxu0 %v6870_v41 }
 0x349   :  { %v5613_v45 = vpop.eup %5612 }
 0x34a   :  { %v5615_v22 = vpop.eup %5614  ;;  %v1751_v21 = vmul.f32 %v5613_v45, %v6311_v42  ;;  %1894 = vmatpush.msrb.mxu0 %v6873_v53 }
 0x34b   :  { %v1747_v37 = vadd.f32 %v5615_v22, %v5613_v45  ;;  %v1752_v3 = vmul.f32 %v5615_v22, %v868_v15  ;;  %v5617_v58 = vpop.eup %5616  ;;  %v6888_v15 = vld [vmem:[#allocation5 + $0x108] sm:$0xff] }
 0x34c   :  { %v5619_v0 = vpop.eup %5618  ;;  %v1754_v42 = vmul.f32 %v5617_v58, %v873_v43  ;;  %1895 = vmatpush.msrb.mxu0 %v6876_v27  ;;  %v6885_v43 = vld [vmem:[#allocation5 + $0x118] sm:$0xff]  ;;  %7788 = vst [vmem:[#allocation177_spill] sm:$0xff] %v6888_v15 }
 0x34d   :  { %v1748_v48 = vadd.f32 %v5617_v58, %v1747_v37  ;;  %v1753_v8 = vadd.f32 %v1752_v3, %v1751_v21  ;;  %v1756_v17 = vmul.f32 %v5619_v0, %v878_v60  ;;  %7787 = vst [vmem:[#allocation176_spill] sm:$0xff] %v6885_v43  ;;  %v1760_v21 = vld [vmem:[%s7457_s5 + $0x4] ss:$0 sm:$0xff]  ;;  %v4701_v60 = vld [vmem:[#allocation11 + $0xf0] sm:$0xf0] }
 0x34e   :  { %1896 = vmatpush.msrb.mxu0 %v6879_v16  ;;  %v5445_v16 = vld [vmem:[#allocation11 + $0xcc] sm:$0xf] }
 0x34f   :  { %v1749_v5 = vadd.f32 %v5619_v0, %v1748_v48  ;;  %v1755_v18 = vadd.f32 %v1754_v42, %v1753_v8  ;;  %v4699_v8 = vld [vmem:[#allocation11 + $0xe0] sm:$0xf]  ;;  %v5448_v42 = vld [vmem:[#allocation11 + $0xe4] sm:$0xf] }
 0x350   :  { %1897 = vmatpush.msrb.mxu0 %v6882_v20  ;;  %v5447_v20 = vld [vmem:[#allocation11 + $0xd4] sm:$0xf0] }
 0x351   :  { %5620 = vrcp.f32 %v1749_v5  ;;  %v1757_v61 = vadd.f32 %v1756_v17, %v1755_v18  ;;  %v5450_v5 = vld [vmem:[#allocation11 + $0xec] sm:$0xf0]  ;;  %v4707_v17 = vld [vmem:[#allocation11 + $0xe8] sm:$0xf] }
 0x352   :  { %1898 = vmatpush.msrb.mxu0 %v6885_v43  ;;  %v4700_v18 = vor.u32 %v5450_v5, %v4699_v8  ;;  %v4691_v43 = vld [vmem:[#allocation11 + $0xc8] sm:$0xf] }
 0x353   :  { %v4692_v5 = vor.u32 %v5447_v20, %v4691_v43  ;;  %v4651_v43 = vld [vmem:[#allocation11 + $0x80] sm:$0xf] }
 0x354   :  { %1899 = vmatpush.msrb.mxu0 %v6888_v15  ;;  %2091 = vmatpush.bf16.msra.mxu1 %v4700_v18  ;;  %v5444_v15 = vld [vmem:[#allocation11 + $0xc4] sm:$0xf]  ;;  %v4667_v18 = vld [vmem:[#allocation11 + $0xa0] sm:$0xf] }
 0x357   :  { %v5621_v36 = vpop.eup %5620 }
 0x358   :  { %v1758_v45 = vmul.f32 %v5621_v36, %v1757_v61  ;;  %v5451_v61 = vld [vmem:[#allocation11 + $0xf4] sm:$0xf0]  ;;  %v4704_v36 = vor.u32 %v5448_v42, %v4701_v60  ;;  %v4696_v42 = vor.u32 %v5445_v16, %v4693_v12  ;;  %v5442_v60 = vld [vmem:[#allocation11 + $0xac] sm:$0xf0]  ;;  %v5436_v16 = vld [vmem:[#allocation11 + $0x84] sm:$0xf] }
 0x359   :  { %v5438_v12 = vld [vmem:[#allocation11 + $0x8c] sm:$0xf0] }
 0x35a   :  { %v1759_v22 = vpack.c.bf16 %v1758_v45, %v1758_v45  ;;  %v5449_v45 = vld [vmem:[#allocation11 + $0xec] sm:$0xf]  ;;  %2104 = vmatpush.bf16.msra.mxu2 %v4704_v36  ;;  %v4669_v36 = vld [vmem:[#allocation11 + $0xb0] sm:$0xf0] }
 0x35c   :  { %1817 = vmatmul.bf16.vlgmr.msra.gmra.mxu0 %v1759_v22  ;;  %v4709_v22 = vld [vmem:[#allocation11 + $0xf8] sm:$0xf0] }
 0x3d9   :  { %v1818_v37 = vpop.f32.mrf.mxu0 }
 0x3da   :  { %v1819_v3 = vadd.f32 %v1818_v37, %v1760_v21  ;;  %v4712_v21 = vor.u32 %v5449_v45, %v4709_v22  ;;  %v4683_v37 = vld [vmem:[#allocation11 + $0xc0] sm:$0xf]  ;;  %v5443_v45 = vld [vmem:[#allocation11 + $0xb4] sm:$0xf0] }
 0x3dc   :  { %v6895_v58 = vadd.f32 %v1819_v3, %v6251_v13  ;;  %v4708_v13 = vor.u32 %v5451_v61, %v4707_v17  ;;  %v5446_v3 = vld [vmem:[#allocation11 + $0xcc] sm:$0xf0]  ;;  %2130 = vmatpush.bf16.msra.mxu0 %v4712_v21  ;;  %v5440_v17 = vld [vmem:[#allocation11 + $0xa4] sm:$0xf]  ;;  %v4668_v61 = vor.u32 %v5442_v60, %v4667_v18  ;;  %v5437_v18 = vld [vmem:[#allocation11 + $0x8c] sm:$0xf] }
 0x3dd   :  { %v4672_v22 = vor.u32 %v5440_v17, %v4669_v36  ;;  %v4661_v60 = vld [vmem:[#allocation11 + $0x98] sm:$0xf0]  ;;  %v5434_v36 = vld [vmem:[#allocation11 + $0x6c] sm:$0xf0] }
 0x3de   :  { %1840 = vmatmul.f32.vlgmr.msrb.gmra.mxu1 %v6895_v58  ;;  %1880 = vmatmul.f32.vlgmr.msra.gmra.mxu3 %v6895_v58  ;;  %v1823_v48 = vmul.f32 %v6895_v58, %v6895_v58  ;;  %v4664_v17 = vor.u32 %v5437_v18, %v4661_v60  ;;  %v5431_v18 = vld [vmem:[#allocation11 + $0x54] sm:$0xf0] }
 0x3df   :  { %2117 = vmatpush.bf16.msrb.mxu3 %v4708_v13  ;;  %v4675_v13 = vld [vmem:[#allocation11 + $0xa8] sm:$0xf] }
 0x3e0   :  { %1860 = vmatmul.f32.vlgmr.msrb.gmra.mxu2 %v1823_v48  ;;  %1900 = vmatmul.f32.vlgmr.msrb.gmra.mxu0 %v1823_v48  ;;  %v4684_v48 = vor.u32 %v5446_v3, %v4683_v37  ;;  %v4676_v21 = vor.u32 %v5443_v45, %v4675_v13  ;;  %v5441_v37 = vld [vmem:[#allocation11 + $0xac] sm:$0xf]  ;;  %v4677_v3 = vld [vmem:[#allocation11 + $0xb8] sm:$0xf0]  ;;  %v5432_v13 = vld [vmem:[#allocation11 + $0x64] sm:$0xf] }
 0x3e1   :  { %v1820_v0 = vpop.f32.mrf.mxu0  ;;  %2131 = vmatpush.bf16.msra.mxu0 %v4696_v42  ;;  %v4680_v20 = vor.u32 %v5441_v37, %v4677_v3  ;;  %v5435_v37 = vld [vmem:[#allocation11 + $0x74] sm:$0xf0] }
 0x3e2   :  { %v4685_v0 = vld [vmem:[#allocation11 + $0xd0] sm:$0xf0]  ;;  %2092 = vmatpush.bf16.msra.mxu1 %v4684_v48 }
 0x3e3   :  { %v4688_v8 = vor.u32 %v5444_v15, %v4685_v0  ;;  %2118 = vmatpush.bf16.msrb.mxu3 %v4692_v5  ;;  %v4652_v15 = vor.u32 %v5438_v12, %v4651_v43  ;;  %v4653_v48 = vld [vmem:[#allocation11 + $0x90] sm:$0xf0]  ;;  %v4659_v0 = vld [vmem:[#allocation11 + $0x88] sm:$0xf]  ;;  %v5433_v43 = vld [vmem:[#allocation11 + $0x6c] sm:$0xf] }
 0x3e4   :  { %v4656_v5 = vor.u32 %v5436_v16, %v4653_v48  ;;  %v4645_v12 = vld [vmem:[#allocation11 + $0x78] sm:$0xf0]  ;;  %v5430_v48 = vld [vmem:[#allocation11 + $0x4c] sm:$0xf0] }
 0x3e5   :  { %2105 = vmatpush.bf16.msra.mxu2 %v4688_v8  ;;  %2132 = vmatpush.bf16.msra.mxu0 %v4680_v20  ;;  %v5439_v8 = vld [vmem:[#allocation11 + $0x94] sm:$0xf0]  ;;  %v4648_v16 = vor.u32 %v5433_v43, %v4645_v12 }
 0x3e6   :  { %2093 = vmatpush.bf16.msra.mxu1 %v4668_v61  ;;  %v4660_v42 = vor.u32 %v5439_v8, %v4659_v0  ;;  %v4635_v61 = vld [vmem:[#allocation11 + $0x60] sm:$0xf]  ;;  %v5428_v0 = vld [vmem:[#allocation11 + $0x44] sm:$0xf]  ;;  %v5427_v43 = vld [vmem:[#allocation11 + $0x34] sm:$0xf0] }
 0x3e7   :  { %2119 = vmatpush.bf16.msrb.mxu3 %v4676_v21  ;;  %v4636_v45 = vor.u32 %v5434_v36, %v4635_v61  ;;  %v4643_v21 = vld [vmem:[#allocation11 + $0x68] sm:$0xf]  ;;  %v5429_v61 = vld [vmem:[#allocation11 + $0x4c] sm:$0xf]  ;;  %v4629_v36 = vld [vmem:[#allocation11 + $0x58] sm:$0xf0] }
 0x3e8   :  { %v4644_v20 = vor.u32 %v5435_v37, %v4643_v21  ;;  %v5424_v21 = vld [vmem:[#allocation11 + $0x24] sm:$0xf] }
 0x3e9   :  { %2106 = vmatpush.bf16.msra.mxu2 %v4672_v22  ;;  %2133 = vmatpush.bf16.msra.mxu0 %v4664_v17  ;;  %v4637_v22 = vld [vmem:[#allocation11 + $0x70] sm:$0xf0] }
 0x3ea   :  { %2094 = vmatpush.bf16.msra.mxu1 %v4652_v15  ;;  %v4640_v3 = vor.u32 %v5432_v13, %v4637_v22  ;;  %v4619_v15 = vld [vmem:[#allocation11 + $0x40] sm:$0xf]  ;;  %v4632_v13 = vor.u32 %v5429_v61, %v4629_v36  ;;  %v5426_v22 = vld [vmem:[#allocation11 + $0x2c] sm:$0xf0]  ;;  %v5423_v61 = vld [vmem:[#allocation11 + $0x14] sm:$0xf0] }
 0x3eb   :  { %2120 = vmatpush.bf16.msrb.mxu3 %v4660_v42  ;;  %v4620_v8 = vor.u32 %v5430_v48, %v4619_v15  ;;  %v4627_v42 = vld [vmem:[#allocation11 + $0x48] sm:$0xf]  ;;  %v5425_v15 = vld [vmem:[#allocation11 + $0x2c] sm:$0xf]  ;;  %v4613_v48 = vld [vmem:[#allocation11 + $0x38] sm:$0xf0] }
 0x3ec   :  { %v4628_v17 = vor.u32 %v5431_v18, %v4627_v42  ;;  %v5420_v42 = vld [vmem:[#allocation11 + $0x4] sm:$0xf] }
 0x3ed   :  { %2107 = vmatpush.bf16.msra.mxu2 %v4656_v5  ;;  %2134 = vmatpush.bf16.msra.mxu0 %v4648_v16  ;;  %v4621_v5 = vld [vmem:[#allocation11 + $0x50] sm:$0xf0] }
 0x3ee   :  { %2095 = vmatpush.bf16.msra.mxu1 %v4636_v45  ;;  %v4624_v60 = vor.u32 %v5428_v0, %v4621_v5  ;;  %v4603_v45 = vld [vmem:[#allocation11 + $0x20] sm:$0xf]  ;;  %v4616_v0 = vor.u32 %v5425_v15, %v4613_v48  ;;  %v5422_v5 = vld [vmem:[#allocation11 + $0xc] sm:$0xf0]  ;;  %v5467_v15 = vld [vmem:[#allocation13 + $0x78] sm:$0xff] }
 0x3ef   :  { %2121 = vmatpush.bf16.msrb.mxu3 %v4644_v20  ;;  %v4604_v37 = vor.u32 %v5426_v22, %v4603_v45  ;;  %v4611_v20 = vld [vmem:[#allocation11 + $0x28] sm:$0xf]  ;;  %v5421_v45 = vld [vmem:[#allocation11 + $0xc] sm:$0xf]  ;;  %v4597_v22 = vld [vmem:[#allocation11 + $0x18] sm:$0xf0] }
 0x3f0   :  { %v4612_v16 = vor.u32 %v5427_v43, %v4611_v20  ;;  %v5459_v43 = vld [vmem:[#allocation13 + $0x38] sm:$0xff] }
 0x3f1   :  { %2108 = vmatpush.bf16.msra.mxu2 %v4640_v3  ;;  %2135 = vmatpush.bf16.msra.mxu0 %v4632_v13  ;;  %v4605_v3 = vld [vmem:[#allocation11 + $0x30] sm:$0xf0]  ;;  %v5475_v48 = vld [vmem:[#allocation13 + $0xb8] sm:$0xff] }
 0x3f2   :  { %2096 = vmatpush.bf16.msra.mxu1 %v4620_v8  ;;  %v4608_v12 = vor.u32 %v5424_v21, %v4605_v3  ;;  %v4587_v8 = vld [vmem:[#allocation11] sm:$0xf]  ;;  %v4600_v21 = vor.u32 %v5421_v45, %v4597_v22 }
 0x3f3   :  { %2122 = vmatpush.bf16.msrb.mxu3 %v4628_v17  ;;  %v4588_v18 = vor.u32 %v5422_v5, %v4587_v8  ;;  %v4595_v17 = vld [vmem:[#allocation11 + $0x8] sm:$0xf]  ;;  %v5458_v8 = vld [vmem:[#allocation13 + $0x30] sm:$0xff] }
 0x3f4   :  { %v4596_v13 = vor.u32 %v5423_v61, %v4595_v17  ;;  %v5482_v5 = vld [vmem:[#allocation13 + $0xf0] sm:$0xff] }
 0x3f5   :  { %2109 = vmatpush.bf16.msra.mxu2 %v4624_v60  ;;  %2136 = vmatpush.bf16.msra.mxu0 %v4616_v0  ;;  %v4589_v60 = vld [vmem:[#allocation11 + $0x10] sm:$0xf0] }
 0x3f6   :  { %2097 = vmatpush.bf16.msra.mxu1 %v4604_v37  ;;  %v4592_v36 = vor.u32 %v5420_v42, %v4589_v60  ;;  %v5474_v17 = vld [vmem:[#allocation13 + $0xb0] sm:$0xff] }
 0x3f7   :  { %2123 = vmatpush.bf16.msrb.mxu3 %v4612_v16 }
 0x3f9   :  { %2110 = vmatpush.bf16.msra.mxu2 %v4608_v12  ;;  %2137 = vmatpush.bf16.msra.mxu0 %v4600_v21  ;;  %v5483_v12 = vld [vmem:[#allocation13 + $0xf8] sm:$0xff] }
 0x3fa   :  { %2098 = vmatpush.bf16.msra.mxu1 %v4588_v18  ;;  %v5466_v18 = vld [vmem:[#allocation13 + $0x70] sm:$0xff] }
 0x3fb   :  { %2124 = vmatpush.bf16.msrb.mxu3 %v4596_v13  ;;  %v5481_v13 = vld [vmem:[#allocation13 + $0xe8] sm:$0xff] }
 0x3fd   :  { %2111 = vmatpush.bf16.msra.mxu2 %v4592_v36  ;;  %2399 = vmatpush.bf16.msrb.mxu0 %v5483_v12  ;;  %v5457_v36 = vld [vmem:[#allocation13 + $0x28] sm:$0xff] }
 0x3fe   :  { %2360 = vmatpush.bf16.msrb.mxu1 %v5459_v43 }
 0x3ff   :  { %2386 = vmatpush.bf16.msra.mxu3 %v5475_v48 }
 0x401   :  { %2373 = vmatpush.bf16.msrb.mxu2 %v5467_v15  ;;  %2400 = vmatpush.bf16.msrb.mxu0 %v5482_v5  ;;  %v5480_v5 = vld [vmem:[#allocation13 + $0xe0] sm:$0xff] }
 0x402   :  { %2361 = vmatpush.bf16.msrb.mxu1 %v5458_v8  ;;  %v5456_v8 = vld [vmem:[#allocation13 + $0x20] sm:$0xff] }
 0x403   :  { %2387 = vmatpush.bf16.msra.mxu3 %v5474_v17  ;;  %v5479_v17 = vld [vmem:[#allocation13 + $0xd8] sm:$0xff] }
 0x405   :  { %2374 = vmatpush.bf16.msrb.mxu2 %v5466_v18  ;;  %2401 = vmatpush.bf16.msrb.mxu0 %v5481_v13  ;;  %v5455_v18 = vld [vmem:[#allocation13 + $0x18] sm:$0xff]  ;;  %v5478_v13 = vld [vmem:[#allocation13 + $0xd0] sm:$0xff] }
 0x406   :  { %2362 = vmatpush.bf16.msrb.mxu1 %v5457_v36  ;;  %v5454_v36 = vld [vmem:[#allocation13 + $0x10] sm:$0xff] }
 0x409   :  { %2402 = vmatpush.bf16.msrb.mxu0 %v5480_v5 }
 0x40a   :  { %2363 = vmatpush.bf16.msrb.mxu1 %v5456_v8  ;;  %v5468_v8 = vld [vmem:[#allocation13 + $0x80] sm:$0xff] }
 0x40d   :  { %2403 = vmatpush.bf16.msrb.mxu0 %v5479_v17  ;;  %v7802_v17 = vld [vmem:[#allocation160_spill] sm:$0xff] }
 0x40e   :  { %2364 = vmatpush.bf16.msrb.mxu1 %v5455_v18  ;;  %v7801_v18 = vld [vmem:[#allocation170_spill] sm:$0xff] }
 0x411   :  { %2404 = vmatpush.bf16.msrb.mxu0 %v5478_v13  ;;  %v7804_v13 = vld [vmem:[#allocation177_spill] sm:$0xff] }
 0x412   :  { %2365 = vmatpush.bf16.msrb.mxu1 %v5454_v36  ;;  %v7803_v36 = vld [vmem:[#allocation167_spill] sm:$0xff] }
 0x45b   :  { %v1841_v3 = vpop.f32.mrf.mxu1 }
 0x45d   :  { %v1901_v0 = vpop.f32.mrf.mxu0 }
 0x461   :  { %v1881_v37 = vpop.f32.mrf.mxu3 }
 0x462   :  { %v1902_v42 = vadd.f32 %v1901_v0, %v1881_v37 }
 0x463   :  { %v1861_v20 = vpop.f32.mrf.mxu2 }
 0x464   :  { %v1862_v16 = vadd.f32 %v1861_v20, %v1841_v3 }
 0x466   :  { %v1904_v60 = vmul.f32 %v1862_v16, %v1862_v16  ;;  %v1906_v12 = vsub.f32 %v6895_v58, %v1862_v16  ;;  %v5464_v16 = vld [vmem:[#allocation13 + $0x60] sm:$0xff] }
 0x468   :  { %v1905_v61 = vsub.f32 %v1902_v42, %v1904_v60  ;;  %v5465_v42 = vld [vmem:[#allocation13 + $0x68] sm:$0xff] }
 0x469   :  { %v5473_v60 = vld [vmem:[#allocation13 + $0xa8] sm:$0xff]  ;;  %2375 = vmatpush.bf16.msrb.mxu2 %v5465_v42 }
 0x46a   :  { %v1907_v45 = vadd.f32 1e-05, %v1905_v61  ;;  %2388 = vmatpush.bf16.msra.mxu3 %v5473_v60  ;;  %v5472_v61 = vld [vmem:[#allocation13 + $0xa0] sm:$0xff] }
 0x46c   :  { %5622 = vrsqrt.f32 %v1907_v45  ;;  %vm1914_vm5 = vweird.f32 %v1907_v45 }
 0x46d   :  { %2376 = vmatpush.bf16.msrb.mxu2 %v5464_v16 }
 0x46e   :  { %2389 = vmatpush.bf16.msra.mxu3 %v5472_v61 }
 0x472   :  { %v5623_v22 = vpop.eup %5622 }
 0x473   :  { %v1909_v21 = vmul.f32 %v5623_v22, %v1907_v45  ;;  %vm1915_vm4 = vweird.f32 %v5623_v22  ;;  %v5463_v45 = vld [vmem:[#allocation13 + $0x58] sm:$0xff] }
 0x474   :  { %vm1916_vm6 = vmor %vm1914_vm5, %vm1915_vm4  ;;  %2377 = vmatpush.bf16.msrb.mxu2 %v5463_v45 }
 0x475   :  { %v1910_v3 = vmul.f32 %v5623_v22, %v1909_v21  ;;  %v5453_v21 = vld [vmem:[#allocation13 + $0x8] sm:$0xff] }
 0x476   :  { %2366 = vmatpush.bf16.msrb.mxu1 %v5453_v21 }
 0x477   :  { %v1911_v37 = vmul.f32 0.5, %v1910_v3  ;;  %v5477_v3 = vld [vmem:[#allocation13 + $0xc8] sm:$0xff] }
 0x478   :  { %2405 = vmatpush.bf16.msrb.mxu0 %v5477_v3  ;;  %v7806_v3 = vld [vmem:[#allocation163_spill] sm:$0xff] }
 0x479   :  { %v1912_v20 = vsub.f32 1.5, %v1911_v37  ;;  %v5462_v37 = vld [vmem:[#allocation13 + $0x50] sm:$0xff] }
 0x47a   :  { %2378 = vmatpush.bf16.msrb.mxu2 %v5462_v37 }
 0x47b   :  { %v1913_v43 = vmul.f32 %v5623_v22, %v1912_v20  ;;  %v5470_v20 = vld [vmem:[#allocation13 + $0x90] sm:$0xff] }
 0x47d   :  { %v1917_v15 = vsel %vm1916_vm6, %v5623_v22, %v1913_v43  ;;  %v5471_v22 = vld [vmem:[#allocation13 + $0x98] sm:$0xff]  ;;  %v5452_v43 = vld [vmem:[#allocation13] sm:$0xff] }
 0x47e   :  { %v1918_v48 = vmul.f32 %v1917_v15, %v1906_v12  ;;  %2390 = vmatpush.bf16.msra.mxu3 %v5471_v22  ;;  %v5476_v12 = vld [vmem:[#allocation13 + $0xc0] sm:$0xff]  ;;  %2367 = vmatpush.bf16.msrb.mxu1 %v5452_v43  ;;  %v5461_v15 = vld [vmem:[#allocation13 + $0x48] sm:$0xff] }
 0x47f   :  { %2406 = vmatpush.bf16.msrb.mxu0 %v5476_v12  ;;  %2379 = vmatpush.bf16.msrb.mxu2 %v5461_v15  ;;  %v7805_v22 = vld [vmem:[#allocation171_spill] sm:$0xff]  ;;  %v7808_v43 = vld [vmem:[#allocation28_spill] sm:$0xff]  ;;  %v7809_v15 = vld [vmem:[#allocation166_spill] sm:$0xff] }
 0x480   :  { %v1919_v0 = vpack.c.bf16 %v1918_v48, %v1918_v48  ;;  %v5469_v48 = vld [vmem:[#allocation13 + $0x88] sm:$0xff] }
 0x482   :  { %2099 = vmatmul.bf16.vlgmr.msra.gmra.mxu1 %v1919_v0  ;;  %2112 = vmatmul.bf16.vlgmr.msra.gmra.mxu2 %v1919_v0 }
 0x483   :  { %2125 = vmatmul.bf16.vlgmr.msrb.gmra.mxu3 %v1919_v0  ;;  %2138 = vmatmul.bf16.vlgmr.msra.gmra.mxu0 %v1919_v0  ;;  %v5460_v0 = vld [vmem:[#allocation13 + $0x40] sm:$0xff] }
 0x484   :  { %2391 = vmatpush.bf16.msra.mxu3 %v5470_v20  ;;  %2558 = vmatpush.msra.mxu1 %v6685_v28  ;;  %v4584_v28 = vld [vmem:[%s7457_s5 + $0x5] ss:$8 sm:$0xf] }
 0x485   :  { %2618 = vmatpush.msra.mxu0 %v6842_v31  ;;  %2380 = vmatpush.bf16.msrb.mxu2 %v5460_v0  ;;  %v7793_v31 = vld [vmem:[#allocation165_spill] sm:$0xff]  ;;  %v7807_v20 = vld [vmem:[#allocation172_spill] sm:$0xff] }
 0x486   :  { %2559 = vmatpush.msra.mxu1 %v6693_v63  ;;  %v1923_v63 = vperm.slane %v4584_v28, 0  ;;  %v7810_v0 = vld [vmem:[#allocation173_spill] sm:$0xff] }
 0x487   :  { %2619 = vmatpush.msra.mxu0 %v6845_v25  ;;  %v7794_v25 = vld [vmem:[#allocation157_spill] sm:$0xff] }
 0x488   :  { %2392 = vmatpush.bf16.msra.mxu3 %v5469_v48  ;;  %2560 = vmatpush.msra.mxu1 %v6702_v19  ;;  %v1926_v19 = vperm.slane %v4584_v28, 3 }
 0x489   :  { %2620 = vmatpush.msra.mxu0 %v6848_v29  ;;  %2578 = vmatpush.msra.mxu2 %v6688_v39 }
 0x48a   :  { %2561 = vmatpush.msra.mxu1 %v6708_v55 }
 0x48b   :  { %2621 = vmatpush.msra.mxu0 %v6851_v1  ;;  %2579 = vmatpush.msra.mxu2 %v6699_v14  ;;  %v7795_v1 = vld [vmem:[#allocation161_spill] sm:$0xff] }
 0x48c   :  { %2393 = vmatpush.bf16.msra.mxu3 %v5468_v8  ;;  %2562 = vmatpush.msra.mxu1 %v6718_v57  ;;  %v7790_v57 = vld [vmem:[#allocation156_spill] sm:$0xff] }
 0x48d   :  { %2622 = vmatpush.msra.mxu0 %v6854_v24  ;;  %2580 = vmatpush.msra.mxu2 %v6705_v49  ;;  %v1925_v49 = vperm.slane %v4584_v28, 2  ;;  %v7796_v24 = vld [vmem:[#allocation175_spill] sm:$0xff] }
 0x48e   :  { %2563 = vmatpush.msra.mxu1 %v6725_v50  ;;  %v1924_v50 = vperm.slane %v4584_v28, 1  ;;  %v7811_v28 = vld [vmem:[#allocation169_spill] sm:$0xff] }
 0x48f   :  { %2623 = vmatpush.msra.mxu0 %v6857_v54  ;;  %2581 = vmatpush.msra.mxu2 %v6712_v7 }
 0x490   :  { %2598 = vmatpush.msrb.mxu3 %v6715_v4  ;;  %2564 = vmatpush.msra.mxu1 %v6736_v26 }
 0x491   :  { %2624 = vmatpush.msra.mxu0 %v6860_v62  ;;  %2582 = vmatpush.msra.mxu2 %v6721_v32  ;;  %v7791_v32 = vld [vmem:[#allocation159_spill] sm:$0xff]  ;;  %v7797_v62 = vld [vmem:[#allocation168_spill] sm:$0xff] }
 0x492   :  { %2599 = vmatpush.msrb.mxu3 %v6730_v2  ;;  %2565 = vmatpush.msra.mxu1 %v6745_v46 }
 0x493   :  { %2625 = vmatpush.msra.mxu0 %v6864_v11  ;;  %2583 = vmatpush.msra.mxu2 %v6733_v35  ;;  %v7798_v11 = vld [vmem:[#allocation158_spill] sm:$0xff] }
 0x494   :  { %2600 = vmatpush.msrb.mxu3 %v6739_v47  ;;  %2566 = vmatpush.msra.mxu1 %v6754_v52 }
 0x495   :  { %2626 = vmatpush.msra.mxu0 %v6867_v44  ;;  %2584 = vmatpush.msra.mxu2 %v6742_v23  ;;  %v7792_v23 = vld [vmem:[#allocation174_spill] sm:$0xff] }
 0x496   :  { %2601 = vmatpush.msrb.mxu3 %v6748_v9  ;;  %2567 = vmatpush.msra.mxu1 %v6763_v59 }
 0x497   :  { %2627 = vmatpush.msra.mxu0 %v6870_v41  ;;  %2585 = vmatpush.msra.mxu2 %v6751_v33  ;;  %v7789_v33 = vld [vmem:[#allocation162_spill] sm:$0xff] }
 0x498   :  { %2602 = vmatpush.msrb.mxu3 %v6757_v51  ;;  %2568 = vmatpush.msra.mxu1 %v6772_v40 }
 0x499   :  { %2628 = vmatpush.msra.mxu0 %v6873_v53  ;;  %2586 = vmatpush.msra.mxu2 %v6760_v34  ;;  %v7799_v53 = vld [vmem:[#allocation164_spill] sm:$0xff] }
 0x49a   :  { %2603 = vmatpush.msrb.mxu3 %v6766_v30  ;;  %2569 = vmatpush.msra.mxu1 %v6781_v10 }
 0x49b   :  { %2629 = vmatpush.msra.mxu0 %v6876_v27  ;;  %2587 = vmatpush.msra.mxu2 %v7790_v57  ;;  %v7800_v27 = vld [vmem:[#allocation176_spill] sm:$0xff] }
 0x49c   :  { %2604 = vmatpush.msrb.mxu3 %v6775_v56  ;;  %2570 = vmatpush.msra.mxu1 %v7791_v32  ;;  %v7819_v57 = vld [vmem:[#allocation36_spill] sm:$0xff]  ;;  %v7821_v32 = vld [vmem:[#allocation38_spill] sm:$0xff] }
 0x49d   :  { %2630 = vmatpush.msra.mxu0 %v7792_v23  ;;  %2588 = vmatpush.msra.mxu2 %v7794_v25  ;;  %v7822_v23 = vld [vmem:[#allocation39_spill] sm:$0xff]  ;;  %v4928_v25 = vld [vmem:[#allocation14 + $0xa8] sm:$0xf] }
 0x49e   :  { %2605 = vmatpush.msrb.mxu3 %v6784_v6  ;;  %2571 = vmatpush.msra.mxu1 %v7795_v1 }
 0x49f   :  { %2631 = vmatpush.msra.mxu0 %v7796_v24  ;;  %2589 = vmatpush.msra.mxu2 %v7798_v11  ;;  %v4930_v24 = vld [vmem:[#allocation14 + $0xb4] sm:$0xf0] }
 0x4a0   :  { %2606 = vmatpush.msrb.mxu3 %v6793_v38  ;;  %2572 = vmatpush.msra.mxu1 %v7799_v53  ;;  %v5503_v53 = vld [vmem:[#allocation14 + $0x98] sm:$0xf0] }
 0x4a1   :  { %2632 = vmatpush.msra.mxu0 %v7800_v27  ;;  %2590 = vmatpush.msra.mxu2 %v7802_v17  ;;  %v5502_v27 = vld [vmem:[#allocation14 + $0x94] sm:$0xf] }
 0x4a2   :  { %2607 = vmatpush.msrb.mxu3 %v7789_v33  ;;  %2573 = vmatpush.msra.mxu1 %v7803_v36  ;;  %v5500_v36 = vld [vmem:[#allocation14 + $0x80] sm:$0xf0] }
 0x4a3   :  { %2633 = vmatpush.msra.mxu0 %v7804_v13  ;;  %2591 = vmatpush.msra.mxu2 %v7806_v3  ;;  %v5499_v13 = vld [vmem:[#allocation14 + $0x7c] sm:$0xf]  ;;  %v5501_v3 = vld [vmem:[#allocation14 + $0x88] sm:$0xf0] }
 0x4a4   :  { %2608 = vmatpush.msrb.mxu3 %v7793_v31  ;;  %v7826_v31 = vld [vmem:[#allocation43_spill] sm:$0xff] }
 0x4a5   :  { %2592 = vmatpush.msra.mxu2 %v7809_v15  ;;  %v5496_v15 = vld [vmem:[#allocation14 + $0x64] sm:$0xf] }
 0x4a6   :  { %2609 = vmatpush.msrb.mxu3 %v7797_v62  ;;  %v5507_v62 = vld [vmem:[#allocation14 + $0xb8] sm:$0xf0] }
 0x4a7   :  { %2593 = vmatpush.msra.mxu2 %v7811_v28  ;;  %v5498_v28 = vld [vmem:[#allocation14 + $0x70] sm:$0xf0] }
 0x4a8   :  { %2610 = vmatpush.msrb.mxu3 %v7801_v18  ;;  %v5504_v18 = vld [vmem:[#allocation14 + $0xa0] sm:$0xf0] }
 0x4aa   :  { %2611 = vmatpush.msrb.mxu3 %v7805_v22  ;;  %v4906_v22 = vld [vmem:[#allocation14 + $0x84] sm:$0xf0] }
 0x4ac   :  { %2612 = vmatpush.msrb.mxu3 %v7807_v20 }
 0x4ae   :  { %2613 = vmatpush.msrb.mxu3 %v7810_v0  ;;  %v4894_v0 = vld [vmem:[#allocation14 + $0x6c] sm:$0xf0] }
 0x4ff   :  { %v2100_v39 = vpop.f32.mrf.mxu1 }
 0x500   :  { %v2101_v2 = vadd.f32 %v2100_v39, %v1923_v63  ;;  %v2139_v14 = vpop.f32.mrf.mxu0  ;;  %v7812_v63 = vld [vmem:[#allocation29_spill] sm:$0xff]  ;;  %v7814_v39 = vld [vmem:[#allocation31_spill] sm:$0xff] }
 0x501   :  { %v2140_v55 = vadd.f32 %v2139_v14, %v1926_v19  ;;  %v7813_v19 = vld [vmem:[#allocation30_spill] sm:$0xff]  ;;  %v7816_v14 = vld [vmem:[#allocation33_spill] sm:$0xff] }
 0x502   :  { %v2143_v47 = vmul.f32 0.5, %v2101_v2 }
 0x503   :  { %v2146_v9 = vmul.f32 0.5, %v2140_v55 }
 0x504   :  { %5624 = vtanh.f32 %v2143_v47  ;;  %v7818_v47 = vld [vmem:[#allocation35_spill] sm:$0xff] }
 0x505   :  { %5626 = vtanh.f32 %v2146_v9  ;;  %v2113_v51 = vpop.f32.mrf.mxu2 }
 0x506   :  { %v2114_v46 = vadd.f32 %v2113_v51, %v1924_v50  ;;  %v2126_v26 = vpop.f32.mrf.mxu3 }
 0x507   :  { %v2127_v30 = vadd.f32 %v2126_v26, %v1925_v49  ;;  %v2102_v7 = vpop.f32.mrf.mxu1  ;;  %v2167_v49 = vld [vmem:[%s7457_s5 + $0x6] ss:$0 sm:$0xff] }
 0x508   :  { %v2144_v52 = vmul.f32 0.5, %v2114_v46  ;;  %v2141_v35 = vpop.f32.mrf.mxu0 }
 0x509   :  { %v2145_v56 = vmul.f32 0.5, %v2127_v30 }
 0x50a   :  { %v5625_v59 = vpop.eup %5624  ;;  %5628 = vtanh.f32 %v2144_v52 }
 0x50b   :  { %v5627_v6 = vpop.eup %5626  ;;  %v2151_v4 = vmul.f32 0.5, %v5625_v59  ;;  %5630 = vtanh.f32 %v2145_v56 }
 0x50c   :  { %v2154_v40 = vmul.f32 0.5, %v5627_v6 }
 0x50d   :  { %v2155_v38 = vadd.f32 0.5, %v2151_v4  ;;  %v2115_v34 = vpop.f32.mrf.mxu2 }
 0x50e   :  { %v2158_v10 = vadd.f32 0.5, %v2154_v40  ;;  %v2128_v29 = vpop.f32.mrf.mxu3  ;;  %v7820_v40 = vld [vmem:[#allocation37_spill] sm:$0xff]  ;;  %v7825_v34 = vld [vmem:[#allocation42_spill] sm:$0xff] }
 0x50f   :  { %v2159_v54 = vmul.f32 %v2155_v38, %v2101_v2  ;;  %v7815_v2 = vld [vmem:[#allocation32_spill] sm:$0xff]  ;;  %v7824_v38 = vld [vmem:[#allocation41_spill] sm:$0xff] }
 0x510   :  { %v5629_v44 = vpop.eup %5628  ;;  %v2162_v41 = vmul.f32 %v2158_v10, %v2140_v55  ;;  %v7817_v55 = vld [vmem:[#allocation34_spill] sm:$0xff]  ;;  %v5506_v10 = vld [vmem:[#allocation14 + $0xb0] sm:$0xf0]  ;;  %v5505_v29 = vld [vmem:[#allocation14 + $0xac] sm:$0xf] }
 0x511   :  { %v5631_v5 = vpop.eup %5630  ;;  %v2163_v42 = vpack.c.bf16 %v2159_v54, %v2159_v54  ;;  %v2152_v60 = vmul.f32 0.5, %v5629_v44  ;;  %v4929_v1 = vor.u32 %v5506_v10, %v4928_v25  ;;  %v4936_v54 = vld [vmem:[#allocation14 + $0xb0] sm:$0xf]  ;;  %v4933_v11 = vor.u32 %v5505_v29, %v4930_v24  ;;  %v4844_v25 = vld [vmem:[#allocation14] sm:$0xf] }
 0x512   :  { %v2166_v16 = vpack.c.bf16 %v2162_v41, %v2162_v41  ;;  %v2153_v61 = vmul.f32 0.5, %v5631_v5  ;;  %v4937_v44 = vor.u32 %v5507_v62, %v4936_v54  ;;  %v4916_v41 = vld [vmem:[#allocation14 + $0x90] sm:$0xf]  ;;  %v5485_v10 = vld [vmem:[#allocation14 + $0x8] sm:$0xf0] }
 0x513   :  { %v2156_v45 = vadd.f32 0.5, %v2152_v60  ;;  %2368 = vmatmul.bf16.vlgmr.msrb.gmra.mxu1 %v2163_v42  ;;  %v4917_v5 = vor.u32 %v5503_v53, %v4916_v41  ;;  %v4918_v42 = vld [vmem:[#allocation14 + $0x9c] sm:$0xf0]  ;;  %v4924_v60 = vld [vmem:[#allocation14 + $0x98] sm:$0xf] }
 0x514   :  { %v2157_v21 = vadd.f32 0.5, %v2153_v61  ;;  %2407 = vmatmul.bf16.vlgmr.msrb.gmra.mxu0 %v2166_v16  ;;  %2791 = vmatpush.bf16.msrb.mxu1 %v4929_v1  ;;  %v4921_v17 = vor.u32 %v5502_v27, %v4918_v42  ;;  %v4925_v16 = vor.u32 %v5504_v18, %v4924_v60  ;;  %v4904_v61 = vld [vmem:[#allocation14 + $0x78] sm:$0xf]  ;;  %v5484_v29 = vld [vmem:[#allocation14 + $0x4] sm:$0xf]  ;;  %v4845_v1 = vor.u32 %v5485_v10, %v4844_v25  ;;  %v7828_v42 = vld [vmem:[#allocation52_spill] sm:$0xff] }
 0x515   :  { %v2160_v37 = vmul.f32 %v2156_v45, %v2114_v46  ;;  %2850 = vmatpush.bf16.msrb.mxu0 %v7808_v43  ;;  %v4905_v45 = vor.u32 %v5500_v36, %v4904_v61  ;;  %v4892_v43 = vld [vmem:[#allocation14 + $0x60] sm:$0xf]  ;;  %v4846_v24 = vld [vmem:[#allocation14 + $0xc] sm:$0xf0]  ;;  %v4852_v54 = vld [vmem:[#allocation14 + $0x8] sm:$0xf] }
 0x516   :  { %v2161_v12 = vmul.f32 %v2157_v21, %v2127_v30  ;;  %v4912_v21 = vld [vmem:[#allocation14 + $0x80] sm:$0xf]  ;;  %v5486_v62 = vld [vmem:[#allocation14 + $0x10] sm:$0xf0]  ;;  %v7829_v18 = vld [vmem:[#allocation60_spill] sm:$0xff] }
 0x517   :  { %v2164_v48 = vpack.c.bf16 %v2160_v37, %v2160_v37  ;;  %v4909_v37 = vor.u32 %v5499_v13, %v4906_v22  ;;  %v4913_v20 = vor.u32 %v5501_v3, %v4912_v21  ;;  %v7830_v36 = vld [vmem:[#allocation55_spill] sm:$0xff]  ;;  %v7831_v13 = vld [vmem:[#allocation56_spill] sm:$0xff]  ;;  %v7832_v22 = vld [vmem:[#allocation61_spill] sm:$0xff] }
 0x518   :  { %v2165_v8 = vpack.c.bf16 %v2161_v12, %v2161_v12  ;;  %2792 = vmatpush.bf16.msrb.mxu1 %v4917_v5  ;;  %v5497_v12 = vld [vmem:[#allocation14 + $0x68] sm:$0xf0]  ;;  %v7827_v5 = vld [vmem:[#allocation51_spill] sm:$0xff]  ;;  %v7833_v3 = vld [vmem:[#allocation58_spill] sm:$0xff] }
 0x519   :  { %2381 = vmatmul.bf16.vlgmr.msrb.gmra.mxu2 %v2164_v48  ;;  %2851 = vmatpush.bf16.msrb.mxu0 %v7812_v63  ;;  %v4893_v48 = vor.u32 %v5497_v12, %v4892_v43  ;;  %v4897_v63 = vor.u32 %v5496_v15, %v4894_v0  ;;  %v7836_v43 = vld [vmem:[#allocation63_spill] sm:$0xff]  ;;  %v7837_v12 = vld [vmem:[#allocation64_spill] sm:$0xff]  ;;  %v7838_v15 = vld [vmem:[#allocation69_spill] sm:$0xff] }
 0x51a   :  { %2394 = vmatmul.bf16.vlgmr.msra.gmra.mxu3 %v2165_v8  ;;  %2804 = vmatpush.bf16.msrb.mxu2 %v4933_v11  ;;  %v4900_v8 = vld [vmem:[#allocation14 + $0x68] sm:$0xf]  ;;  %v4849_v11 = vor.u32 %v5484_v29, %v4846_v24  ;;  %v7862_v25 = vld [vmem:[#allocation98_spill] sm:$0xff]  ;;  %v7866_v24 = vld [vmem:[#allocation97_spill] sm:$0xff] }
 0x51b   :  { %2817 = vmatpush.bf16.msra.mxu3 %v4937_v44  ;;  %v4853_v44 = vor.u32 %v5486_v62, %v4852_v54  ;;  %v7863_v10 = vld [vmem:[#allocation94_spill] sm:$0xff]  ;;  %v7864_v29 = vld [vmem:[#allocation96_spill] sm:$0xff]  ;;  %v7867_v54 = vld [vmem:[#allocation99_spill] sm:$0xff] }
 0x51c   :  { %2793 = vmatpush.bf16.msrb.mxu1 %v4905_v45  ;;  %v7868_v62 = vld [vmem:[#allocation105_spill] sm:$0xff] }
 0x51d   :  { %2852 = vmatpush.bf16.msrb.mxu0 %v7813_v19  ;;  %v4901_v19 = vor.u32 %v5498_v28, %v4900_v8  ;;  %v7839_v8 = vld [vmem:[#allocation67_spill] sm:$0xff]  ;;  %v7840_v28 = vld [vmem:[#allocation68_spill] sm:$0xff] }
 0x51e   :  { %2805 = vmatpush.bf16.msrb.mxu2 %v4921_v17 }
 0x51f   :  { %2818 = vmatpush.bf16.msra.mxu3 %v4925_v16 }
 0x520   :  { %2794 = vmatpush.bf16.msrb.mxu1 %v4893_v48 }
 0x521   :  { %2853 = vmatpush.bf16.msrb.mxu0 %v7814_v39  ;;  %v4880_v39 = vld [vmem:[#allocation14 + $0x48] sm:$0xf] }
 0x522   :  { %2806 = vmatpush.bf16.msrb.mxu2 %v4909_v37  ;;  %v7834_v37 = vld [vmem:[#allocation59_spill] sm:$0xff] }
 0x523   :  { %2819 = vmatpush.bf16.msra.mxu3 %v4913_v20  ;;  %v7835_v20 = vld [vmem:[#allocation65_spill] sm:$0xff] }
 0x525   :  { %2854 = vmatpush.bf16.msrb.mxu0 %v7815_v2  ;;  %v5494_v2 = vld [vmem:[#allocation14 + $0x50] sm:$0xf0] }
 0x526   :  { %2807 = vmatpush.bf16.msrb.mxu2 %v4897_v63  ;;  %v7841_v63 = vld [vmem:[#allocation73_spill] sm:$0xff] }
 0x527   :  { %2820 = vmatpush.bf16.msra.mxu3 %v4901_v19 }
 0x529   :  { %2855 = vmatpush.bf16.msrb.mxu0 %v7816_v14  ;;  %v5493_v14 = vld [vmem:[#allocation14 + $0x4c] sm:$0xf] }
 0x52d   :  { %2856 = vmatpush.bf16.msrb.mxu0 %v7817_v55  ;;  %v4881_v55 = vor.u32 %v5494_v2, %v4880_v39  ;;  %v7842_v2 = vld [vmem:[#allocation71_spill] sm:$0xff] }
 0x52f   :  { %2795 = vmatpush.bf16.msrb.mxu1 %v4881_v55  ;;  %v7844_v55 = vld [vmem:[#allocation77_spill] sm:$0xff] }
 0x531   :  { %2857 = vmatpush.bf16.msrb.mxu0 %v7818_v47  ;;  %v4882_v47 = vld [vmem:[#allocation14 + $0x54] sm:$0xf0] }
 0x590   :  { %v2369_v50 = vpop.f32.mrf.mxu1 }
 0x591   :  { %v2408_v9 = vpop.f32.mrf.mxu0  ;;  %v2370_v26 = vadd.f32 %v2369_v50, %v2167_v49  ;;  %v4888_v50 = vld [vmem:[#allocation14 + $0x50] sm:$0xf]  ;;  %v4885_v49 = vor.u32 %v5493_v14, %v4882_v47  ;;  %v7843_v14 = vld [vmem:[#allocation72_spill] sm:$0xff] }
 0x593   :  { %2808 = vmatpush.bf16.msrb.mxu2 %v4885_v49  ;;  %v7846_v49 = vld [vmem:[#allocation76_spill] sm:$0xff] }
 0x598   :  { %v2371_v51 = vpop.f32.mrf.mxu1 }
 0x599   :  { %v2410_v46 = vpop.f32.mrf.mxu0 }
 0x59a   :  { %v4868_v46 = vld [vmem:[#allocation14 + $0x30] sm:$0xf] }
 0x59c   :  { %v2382_v30 = vpop.f32.mrf.mxu2 }
 0x59d   :  { %v2383_v7 = vadd.f32 %v2382_v30, %v2370_v26  ;;  %v2395_v52 = vpop.f32.mrf.mxu3  ;;  %v5491_v26 = vld [vmem:[#allocation14 + $0x38] sm:$0xf0]  ;;  %v5490_v30 = vld [vmem:[#allocation14 + $0x34] sm:$0xf] }
 0x59f   :  { %v2396_v35 = vadd.f32 %v2395_v52, %v2383_v7  ;;  %v4869_v7 = vor.u32 %v5491_v26, %v4868_v46  ;;  %v4870_v52 = vld [vmem:[#allocation14 + $0x3c] sm:$0xf0]  ;;  %v7847_v46 = vld [vmem:[#allocation84_spill] sm:$0xff] }
 0x5a1   :  { %v2409_v56 = vadd.f32 %v2408_v9, %v2396_v35  ;;  %v5495_v9 = vld [vmem:[#allocation14 + $0x58] sm:$0xf0]  ;;  %v4876_v35 = vld [vmem:[#allocation14 + $0x38] sm:$0xf]  ;;  %2796 = vmatpush.bf16.msrb.mxu1 %v4869_v7  ;;  %v7848_v7 = vld [vmem:[#allocation79_spill] sm:$0xff] }
 0x5a2   :  { %v4889_v51 = vor.u32 %v5495_v9, %v4888_v50  ;;  %v7845_v9 = vld [vmem:[#allocation75_spill] sm:$0xff] }
 0x5a3   :  { %v6981_v59 = vadd.f32 %v2409_v56, %v6895_v58  ;;  %v7823_v58 = vld [vmem:[#allocation40_spill] sm:$0xff]  ;;  %v5492_v56 = vld [vmem:[#allocation14 + $0x40] sm:$0xf0] }
 0x5a4   :  { %v2384_v6 = vpop.f32.mrf.mxu2  ;;  %2821 = vmatpush.bf16.msra.mxu3 %v4889_v51 }
 0x5a5   :  { %v2397_v4 = vpop.f32.mrf.mxu3  ;;  %2574 = vmatmul.f32.vlgmr.msra.gmra.mxu1 %v6981_v59  ;;  %2614 = vmatmul.f32.vlgmr.msrb.gmra.mxu3 %v6981_v59  ;;  %v2557_v33 = vmul.f32 %v6981_v59, %v6981_v59  ;;  %v4873_v6 = vor.u32 %v5490_v30, %v4870_v52  ;;  %v7849_v52 = vld [vmem:[#allocation80_spill] sm:$0xff] }
 0x5a6   :  { %v4877_v4 = vor.u32 %v5492_v56, %v4876_v35  ;;  %v7850_v56 = vld [vmem:[#allocation87_spill] sm:$0xff] }
 0x5a7   :  { %2594 = vmatmul.f32.vlgmr.msra.gmra.mxu2 %v2557_v33  ;;  %2634 = vmatmul.f32.vlgmr.msra.gmra.mxu0 %v2557_v33  ;;  %v4856_v33 = vld [vmem:[#allocation14 + $0x18] sm:$0xf] }
 0x5a8   :  { %2902 = vmatpush.bf16.msra.mxu0 %v7819_v57  ;;  %2809 = vmatpush.bf16.msrb.mxu2 %v4873_v6  ;;  %v5488_v57 = vld [vmem:[#allocation14 + $0x20] sm:$0xf0]  ;;  %v7851_v6 = vld [vmem:[#allocation81_spill] sm:$0xff] }
 0x5a9   :  { %2822 = vmatpush.bf16.msra.mxu3 %v4877_v4  ;;  %v7852_v4 = vld [vmem:[#allocation83_spill] sm:$0xff] }
 0x5ac   :  { %2903 = vmatpush.bf16.msra.mxu0 %v7820_v40  ;;  %v5487_v40 = vld [vmem:[#allocation14 + $0x1c] sm:$0xf] }
 0x5b0   :  { %2904 = vmatpush.bf16.msra.mxu0 %v7821_v32  ;;  %v4857_v32 = vor.u32 %v5488_v57, %v4856_v33  ;;  %v7853_v33 = vld [vmem:[#allocation88_spill] sm:$0xff]  ;;  %v7854_v57 = vld [vmem:[#allocation85_spill] sm:$0xff] }
 0x5b2   :  { %2797 = vmatpush.bf16.msrb.mxu1 %v4857_v32  ;;  %v7856_v32 = vld [vmem:[#allocation93_spill] sm:$0xff] }
 0x5b4   :  { %2905 = vmatpush.bf16.msra.mxu0 %v7822_v23  ;;  %v4858_v23 = vld [vmem:[#allocation14 + $0x24] sm:$0xf0] }
 0x5b6   :  { %2798 = vmatpush.bf16.msrb.mxu1 %v4845_v1  ;;  %v7865_v1 = vld [vmem:[#allocation100_spill] sm:$0xff] }
 0x5b8   :  { %2906 = vmatpush.bf16.msra.mxu0 %v7823_v58  ;;  %v4864_v58 = vld [vmem:[#allocation14 + $0x20] sm:$0xf] }
 0x5ba   :  { %2863 = vmatpush.bf16.msra.mxu1 %v7827_v5  ;;  %v7874_v5 = vld [vmem:[#allocation107_spill] sm:$0xff] }
 0x5bc   :  { %2907 = vmatpush.bf16.msra.mxu0 %v7824_v38  ;;  %v5489_v38 = vld [vmem:[#allocation14 + $0x28] sm:$0xf0] }
 0x5be   :  { %2864 = vmatpush.bf16.msra.mxu1 %v7830_v36 }
 0x5c0   :  { %2908 = vmatpush.bf16.msra.mxu0 %v7825_v34  ;;  %v4861_v34 = vor.u32 %v5487_v40, %v4858_v23  ;;  %v7855_v40 = vld [vmem:[#allocation86_spill] sm:$0xff]  ;;  %v7857_v23 = vld [vmem:[#allocation89_spill] sm:$0xff] }
 0x5c2   :  { %2810 = vmatpush.bf16.msrb.mxu2 %v4861_v34  ;;  %2865 = vmatpush.bf16.msra.mxu1 %v7833_v3  ;;  %v7860_v34 = vld [vmem:[#allocation91_spill] sm:$0xff] }
 0x5c4   :  { %2909 = vmatpush.bf16.msra.mxu0 %v7826_v31  ;;  %v4865_v31 = vor.u32 %v5489_v38, %v4864_v58  ;;  %v7858_v58 = vld [vmem:[#allocation90_spill] sm:$0xff]  ;;  %v7859_v38 = vld [vmem:[#allocation95_spill] sm:$0xff] }
 0x5c6   :  { %2823 = vmatpush.bf16.msra.mxu3 %v4865_v31  ;;  %2811 = vmatpush.bf16.msrb.mxu2 %v4849_v11  ;;  %v7861_v31 = vld [vmem:[#allocation92_spill] sm:$0xff]  ;;  %v7869_v11 = vld [vmem:[#allocation102_spill] sm:$0xff] }
 0x5c7   :  { %2866 = vmatpush.bf16.msra.mxu1 %v7836_v43 }
 0x5ca   :  { %2824 = vmatpush.bf16.msra.mxu3 %v4853_v44  ;;  %2876 = vmatpush.bf16.msra.mxu2 %v7828_v42  ;;  %v7870_v44 = vld [vmem:[#allocation101_spill] sm:$0xff]  ;;  %v4841_v42 = vld [vmem:[%s7457_s5 + $0x7] ss:$8 sm:$0x7] }
 0x5cb   :  { %2867 = vmatpush.bf16.msra.mxu1 %v7839_v8  ;;  %v7879_v8 = vld [vmem:[#allocation48_spill] sm:$0xff] }
 0x5ce   :  { %2889 = vmatpush.bf16.msrb.mxu3 %v7829_v18  ;;  %2877 = vmatpush.bf16.msra.mxu2 %v7831_v13  ;;  %v2657_v18 = vperm.slane %v4841_v42, 0 }
 0x5cf   :  { %2868 = vmatpush.bf16.msra.mxu1 %v7842_v2  ;;  %v7884_v2 = vld [vmem:[#allocation57_spill] sm:$0xff] }
 0x5d2   :  { %2890 = vmatpush.bf16.msrb.mxu3 %v7832_v22  ;;  %2878 = vmatpush.bf16.msra.mxu2 %v7834_v37  ;;  %v7875_v37 = vld [vmem:[#allocation44_spill] sm:$0xff] }
 0x5d3   :  { %2869 = vmatpush.bf16.msra.mxu1 %v7845_v9  ;;  %v7889_v9 = vld [vmem:[#allocation78_spill] sm:$0xff] }
 0x5d6   :  { %2891 = vmatpush.bf16.msrb.mxu3 %v7835_v20  ;;  %2879 = vmatpush.bf16.msra.mxu2 %v7837_v12 }
 0x5d7   :  { %2870 = vmatpush.bf16.msra.mxu1 %v7848_v7  ;;  %v7892_v7 = vld [vmem:[#allocation110_spill] sm:$0xff] }
 0x5da   :  { %2892 = vmatpush.bf16.msrb.mxu3 %v7838_v15  ;;  %2880 = vmatpush.bf16.msra.mxu2 %v7840_v28  ;;  %v7876_v15 = vld [vmem:[#allocation45_spill] sm:$0xff] }
 0x5db   :  { %v7880_v28 = vld [vmem:[#allocation49_spill] sm:$0xff] }
 0x5de   :  { %2893 = vmatpush.bf16.msrb.mxu3 %v7841_v63  ;;  %2881 = vmatpush.bf16.msra.mxu2 %v7843_v14  ;;  %v7881_v63 = vld [vmem:[#allocation50_spill] sm:$0xff] }
 0x5df   :  { %v7885_v14 = vld [vmem:[#allocation62_spill] sm:$0xff] }
 0x5e2   :  { %2894 = vmatpush.bf16.msrb.mxu3 %v7844_v55  ;;  %2882 = vmatpush.bf16.msra.mxu2 %v7846_v49  ;;  %v7886_v55 = vld [vmem:[#allocation66_spill] sm:$0xff] }
 0x5e3   :  { %v7890_v49 = vld [vmem:[#allocation82_spill] sm:$0xff] }
 0x5e6   :  { %2895 = vmatpush.bf16.msrb.mxu3 %v7847_v46  ;;  %2883 = vmatpush.bf16.msra.mxu2 %v7849_v52  ;;  %v7893_v52 = vld [vmem:[#allocation112_spill] sm:$0xff] }
 0x5ea   :  { %2896 = vmatpush.bf16.msrb.mxu3 %v7850_v56  ;;  %v7895_v56 = vld [vmem:[#allocation118_spill] sm:$0xff] }
 0x622   :  { %v2575_v41 = vpop.f32.mrf.mxu1 }
 0x624   :  { %v2635_v17 = vpop.f32.mrf.mxu0 }
 0x628   :  { %v2615_v53 = vpop.f32.mrf.mxu3 }
 0x629   :  { %v2636_v16 = vadd.f32 %v2635_v17, %v2615_v53  ;;  %v7872_v53 = vld [vmem:[#allocation103_spill] sm:$0xff]  ;;  %v2658_v17 = vperm.slane %v4841_v42, 1 }
 0x62a   :  { %v2595_v27 = vpop.f32.mrf.mxu2 }
 0x62b   :  { %v2596_v60 = vadd.f32 %v2595_v27, %v2575_v41  ;;  %v7871_v41 = vld [vmem:[#allocation106_spill] sm:$0xff]  ;;  %v7873_v27 = vld [vmem:[#allocation104_spill] sm:$0xff] }
 0x62d   :  { %v2638_v61 = vmul.f32 %v2596_v60, %v2596_v60  ;;  %v2640_v51 = vsub.f32 %v6981_v59, %v2596_v60 }
 0x62f   :  { %v2639_v45 = vsub.f32 %v2636_v16, %v2638_v61 }
 0x631   :  { %v2641_v21 = vadd.f32 1e-05, %v2639_v45 }
 0x633   :  { %5632 = vrsqrt.f32 %v2641_v21  ;;  %vm2648_vm8 = vweird.f32 %v2641_v21 }
 0x639   :  { %v5633_v48 = vpop.eup %5632 }
 0x63a   :  { %v2643_v0 = vmul.f32 %v5633_v48, %v2641_v21  ;;  %vm2649_vm7 = vweird.f32 %v5633_v48  ;;  %v2659_v21 = vperm.slane %v4841_v42, 2  ;;  %v7912_v42 = vld [vmem:[#allocation139_spill] sm:$0xff] }
 0x63b   :  { %vm2650_vm9 = vmor %vm2648_vm8, %vm2649_vm7 }
 0x63c   :  { %v2644_v19 = vmul.f32 %v5633_v48, %v2643_v0  ;;  %v7878_v0 = vld [vmem:[#allocation47_spill] sm:$0xff] }
 0x63e   :  { %v2645_v39 = vmul.f32 0.5, %v2644_v19  ;;  %v7882_v19 = vld [vmem:[#allocation53_spill] sm:$0xff] }
 0x640   :  { %v2646_v47 = vsub.f32 1.5, %v2645_v39  ;;  %v7883_v39 = vld [vmem:[#allocation54_spill] sm:$0xff] }
 0x642   :  { %v2647_v50 = vmul.f32 %v5633_v48, %v2646_v47  ;;  %v7887_v47 = vld [vmem:[#allocation70_spill] sm:$0xff] }
 0x644   :  { %v2651_v26 = vsel %vm2650_vm9, %v5633_v48, %v2647_v50  ;;  %v7877_v48 = vld [vmem:[#allocation46_spill] sm:$0xff] }
 0x645   :  { %v2652_v30 = vmul.f32 %v2651_v26, %v2640_v51  ;;  %v7888_v50 = vld [vmem:[#allocation74_spill] sm:$0xff] }
 0x647   :  { %v2653_v35 = vpack.c.bf16 %v2652_v30, %v2652_v30  ;;  %v7891_v30 = vld [vmem:[#allocation108_spill] sm:$0xff] }
 0x649   :  { %2799 = vmatmul.bf16.vlgmr.msrb.gmra.mxu1 %v2653_v35  ;;  %2812 = vmatmul.bf16.vlgmr.msrb.gmra.mxu2 %v2653_v35 }
 0x64a   :  { %2825 = vmatmul.bf16.vlgmr.msra.gmra.mxu3 %v2653_v35  ;;  %2915 = vmatpush.bf16.msrb.mxu1 %v7851_v6  ;;  %v7894_v35 = vld [vmem:[#allocation115_spill] sm:$0xff] }
 0x64b   :  { %2928 = vmatpush.bf16.msrb.mxu2 %v7852_v4  ;;  %2941 = vmatpush.bf16.msra.mxu3 %v7853_v33 }
 0x64e   :  { %2916 = vmatpush.bf16.msrb.mxu1 %v7854_v57 }
 0x64f   :  { %2929 = vmatpush.bf16.msrb.mxu2 %v7855_v40  ;;  %2942 = vmatpush.bf16.msra.mxu3 %v7856_v32  ;;  %v7896_v40 = vld [vmem:[#allocation121_spill] sm:$0xff] }
 0x652   :  { %2917 = vmatpush.bf16.msrb.mxu1 %v7857_v23 }
 0x653   :  { %2930 = vmatpush.bf16.msrb.mxu2 %v7858_v58  ;;  %2943 = vmatpush.bf16.msra.mxu3 %v7859_v38  ;;  %v7897_v58 = vld [vmem:[#allocation124_spill] sm:$0xff]  ;;  %v7898_v38 = vld [vmem:[#allocation109_spill] sm:$0xff] }
 0x656   :  { %2918 = vmatpush.bf16.msrb.mxu1 %v7860_v34  ;;  %v7899_v34 = vld [vmem:[#allocation114_spill] sm:$0xff] }
 0x657   :  { %2931 = vmatpush.bf16.msrb.mxu2 %v7861_v31  ;;  %2944 = vmatpush.bf16.msra.mxu3 %v7862_v25  ;;  %v7900_v31 = vld [vmem:[#allocation127_spill] sm:$0xff] }
 0x658   :  { %v7901_v25 = vld [vmem:[#allocation111_spill] sm:$0xff] }
 0x65a   :  { %2919 = vmatpush.bf16.msrb.mxu1 %v7863_v10  ;;  %v7902_v10 = vld [vmem:[#allocation117_spill] sm:$0xff] }
 0x65b   :  { %2932 = vmatpush.bf16.msrb.mxu2 %v7864_v29  ;;  %2945 = vmatpush.bf16.msra.mxu3 %v7865_v1  ;;  %v7903_v29 = vld [vmem:[#allocation130_spill] sm:$0xff]  ;;  %v7904_v1 = vld [vmem:[#allocation113_spill] sm:$0xff] }
 0x65e   :  { %2920 = vmatpush.bf16.msrb.mxu1 %v7866_v24  ;;  %v7905_v24 = vld [vmem:[#allocation120_spill] sm:$0xff] }
 0x65f   :  { %2933 = vmatpush.bf16.msrb.mxu2 %v7867_v54  ;;  %2946 = vmatpush.bf16.msra.mxu3 %v7868_v62  ;;  %v7906_v62 = vld [vmem:[#allocation133_spill] sm:$0xff] }
 0x662   :  { %2921 = vmatpush.bf16.msrb.mxu1 %v7869_v11  ;;  %v7907_v11 = vld [vmem:[#allocation116_spill] sm:$0xff] }
 0x663   :  { %2934 = vmatpush.bf16.msrb.mxu2 %v7870_v44  ;;  %2947 = vmatpush.bf16.msra.mxu3 %v7871_v41  ;;  %v7908_v44 = vld [vmem:[#allocation123_spill] sm:$0xff]  ;;  %v7909_v41 = vld [vmem:[#allocation136_spill] sm:$0xff] }
 0x666   :  { %2922 = vmatpush.bf16.msrb.mxu1 %v7872_v53  ;;  %v7910_v53 = vld [vmem:[#allocation119_spill] sm:$0xff] }
 0x667   :  { %2935 = vmatpush.bf16.msrb.mxu2 %v7873_v27  ;;  %2948 = vmatpush.bf16.msra.mxu3 %v7874_v5  ;;  %v7911_v27 = vld [vmem:[#allocation126_spill] sm:$0xff] }
 0x6c6   :  { %v2800_v60 = vpop.f32.mrf.mxu1 }
 0x6c7   :  { %v2801_v61 = vadd.f32 %v2800_v60, %v2657_v18  ;;  %v7913_v60 = vld [vmem:[#allocation122_spill] sm:$0xff]  ;;  %v7914_v18 = vld [vmem:[#allocation129_spill] sm:$0xff] }
 0x6cc   :  { %v2813_v16 = vpop.f32.mrf.mxu2 }
 0x6cd   :  { %v2814_v36 = vadd.f32 %v2813_v16, %v2658_v17  ;;  %v2826_v13 = vpop.f32.mrf.mxu3  ;;  %v7915_v17 = vld [vmem:[#allocation142_spill] sm:$0xff]  ;;  %v7916_v16 = vld [vmem:[#allocation125_spill] sm:$0xff] }
 0x6ce   :  { %v2802_v45 = vpop.f32.mrf.mxu1  ;;  %v7051_v43 = vadd.f32 %v2826_v13, %v2659_v21  ;;  %v7918_v13 = vld [vmem:[#allocation145_spill] sm:$0xff]  ;;  %v7921_v21 = vld [vmem:[#allocation148_spill] sm:$0xff] }
 0x6cf   :  { %2831 = vrot.lane.b32.xlu2 %v2814_v36, %s6103_s15  ;;  %2841 = vrot.lane.b32.xlu1 %v2814_v36, %s6104_s17  ;;  %v2830_v22 = vmul.f32 %v2814_v36, %v2801_v61  ;;  %v7919_v45 = vld [vmem:[#allocation128_spill] sm:$0xff] }
 0x6d0   :  { %2836 = vrot.lane.b32.xlu0 %v2814_v36, %s6096_s6 }
 0x6d1   :  { %v2846_v3 = vpack.c.bf16 %v2830_v22, %v2830_v22  ;;  %v7920_v22 = vld [vmem:[#allocation135_spill] sm:$0xff] }
 0x6d3   :  { %2858 = vmatmul.bf16.vlgmr.msrb.gmra.mxu0 %v2846_v3 }
 0x6d4   :  { %2954 = vmatpush.bf16.msrb.mxu0 %v7875_v37  ;;  %v2815_v20 = vpop.f32.mrf.mxu2  ;;  %v7923_v37 = vld [vmem:[#allocation138_spill] sm:$0xff] }
 0x6d5   :  { %v2828_v12 = vpop.f32.mrf.mxu3 }
 0x6d6   :  { %v7924_v12 = vld [vmem:[#allocation151_spill] sm:$0xff] }
 0x6d7   :  { %2843 = vrot.lane.b32.xlu2 %v7051_v43, %s6104_s17  ;;  %2838 = vrot.lane.b32.xlu1 %v7051_v43, %s6096_s6 }
 0x6d8   :  { %2833 = vrot.lane.b32.xlu0 %v7051_v43, %s6103_s15  ;;  %2955 = vmatpush.bf16.msrb.mxu0 %v7876_v15  ;;  %v7925_v15 = vld [vmem:[#allocation134_spill] sm:$0xff] }
 0x6dc   :  { %2956 = vmatpush.bf16.msrb.mxu0 %v7877_v48  ;;  %v7926_v48 = vld [vmem:[#allocation141_spill] sm:$0xff] }
 0x6e0   :  { %2957 = vmatpush.bf16.msrb.mxu0 %v7878_v0  ;;  %v7124_v0 = vld [vmem:[#allocation5 + $0xf0] sm:$0xff] }
 0x6e3   :  { %2910 = vmatmul.bf16.vlgmr.msra.gmra.mxu0 %v2846_v3 }
 0x6e4   :  { %2958 = vmatpush.bf16.msrb.mxu0 %v7879_v8  ;;  %v7927_v8 = vld [vmem:[#allocation137_spill] sm:$0xff] }
 0x6e8   :  { %2959 = vmatpush.bf16.msrb.mxu0 %v7880_v28  ;;  %v7128_v28 = vld [vmem:[#allocation5 + $0xe0] sm:$0xff] }
 0x6ec   :  { %2960 = vmatpush.bf16.msrb.mxu0 %v7881_v63  ;;  %v7928_v63 = vld [vmem:[#allocation144_spill] sm:$0xff] }
 0x6f0   :  { %2961 = vmatpush.bf16.msrb.mxu0 %v7882_v19  ;;  %v7132_v19 = vld [vmem:[#allocation5 + $0xd0] sm:$0xff] }
 0x6f3   :  { %2962 = vmatmul.bf16.vlgmr.msrb.gmra.mxu0 %v2846_v3 }
 0x6f4   :  { %3006 = vmatpush.bf16.msra.mxu0 %v7883_v39 }
 0x6f8   :  { %3007 = vmatpush.bf16.msra.mxu0 %v7884_v2  ;;  %v7929_v2 = vld [vmem:[#allocation140_spill] sm:$0xff] }
 0x6fc   :  { %3008 = vmatpush.bf16.msra.mxu0 %v7885_v14  ;;  %v7138_v14 = vld [vmem:[#allocation5 + $0xc0] sm:$0xff] }
 0x700   :  { %3009 = vmatpush.bf16.msra.mxu0 %v7886_v55  ;;  %v7930_v55 = vld [vmem:[#allocation147_spill] sm:$0xff] }
 0x704   :  { %3010 = vmatpush.bf16.msra.mxu0 %v7887_v47  ;;  %v7142_v47 = vld [vmem:[#allocation5 + $0xb0] sm:$0xff] }
 0x708   :  { %3011 = vmatpush.bf16.msra.mxu0 %v7888_v50  ;;  %v7931_v50 = vld [vmem:[#allocation143_spill] sm:$0xff] }
 0x70c   :  { %3012 = vmatpush.bf16.msra.mxu0 %v7889_v9  ;;  %v7146_v9 = vld [vmem:[#allocation5 + $0xa0] sm:$0xff] }
 0x710   :  { %3013 = vmatpush.bf16.msra.mxu0 %v7890_v49  ;;  %v7932_v49 = vld [vmem:[#allocation150_spill] sm:$0xff] }
 0x713   :  { %3014 = vmatmul.bf16.vlgmr.msra.gmra.mxu0 %v2846_v3  ;;  %v7922_v3 = vld [vmem:[#allocation131_spill] sm:$0xff] }
 0x729   :  { %v2832_v51 = vpop.permute.xlu2 %2831 }
 0x72a   :  { %v2835_v46 = vmul.f32 %v2832_v51, %v2801_v61  ;;  %v7150_v51 = vld [vmem:[#allocation5 + $0x90] sm:$0xff] }
 0x72c   :  { %v2847_v26 = vpack.c.bf16 %v2835_v46, %v2835_v46 }
 0x72e   :  { %2871 = vmatmul.bf16.vlgmr.msra.gmra.mxu1 %v2847_v26 }
 0x72f   :  { %2967 = vmatpush.bf16.msra.mxu1 %v7891_v30  ;;  %v7154_v30 = vld [vmem:[#allocation5 + $0x80] sm:$0xff] }
 0x733   :  { %2968 = vmatpush.bf16.msra.mxu1 %v7892_v7  ;;  %v7934_v7 = vld [vmem:[#allocation153_spill] sm:$0xff] }
 0x737   :  { %2969 = vmatpush.bf16.msra.mxu1 %v7893_v52  ;;  %v7158_v52 = vld [vmem:[#allocation5 + $0x70] sm:$0xff] }
 0x73b   :  { %2970 = vmatpush.bf16.msra.mxu1 %v7894_v35  ;;  %v7935_v35 = vld [vmem:[#allocation149_spill] sm:$0xff] }
 0x73e   :  { %2923 = vmatmul.bf16.vlgmr.msrb.gmra.mxu1 %v2847_v26 }
 0x73f   :  { %2971 = vmatpush.bf16.msra.mxu1 %v7895_v56  ;;  %v7162_v56 = vld [vmem:[#allocation5 + $0x60] sm:$0xff] }
 0x741   :  { %v2842_v6 = vpop.permute.xlu1 %2841 }
 0x742   :  { %v2845_v4 = vmul.f32 %v2842_v6, %v2801_v61  ;;  %v2837_v33 = vpop.permute.xlu0 %2836  ;;  %v7936_v6 = vld [vmem:[#allocation154_spill] sm:$0xff] }
 0x743   :  { %v2840_v57 = vmul.f32 %v2837_v33, %v2801_v61  ;;  %2972 = vmatpush.bf16.msra.mxu1 %v7896_v40  ;;  %v7917_v61 = vld [vmem:[#allocation132_spill] sm:$0xff]  ;;  %v7938_v40 = vld [vmem:[#allocation155_spill] sm:$0xff] }
 0x744   :  { %v7080_v32 = vpack.c.bf16 %v2845_v4, %v2845_v4  ;;  %v7166_v4 = vld [vmem:[#allocation5 + $0x50] sm:$0xff]  ;;  %v7937_v33 = vld [vmem:[#allocation152_spill] sm:$0xff] }
 0x745   :  { %v7082_v23 = vpack.c.bf16 %v2840_v57, %v2840_v57  ;;  %v7170_v57 = vld [vmem:[#allocation5 + $0x40] sm:$0xff] }
 0x746   :  { %2897 = vmatmul.bf16.vlgmr.msrb.gmra.mxu3 %v7080_v32 }
 0x747   :  { %2884 = vmatmul.bf16.vlgmr.msra.gmra.mxu2 %v7082_v23  ;;  %2973 = vmatpush.bf16.msra.mxu1 %v7897_v58  ;;  %v7174_v58 = vld [vmem:[#allocation5 + $0x1f0] sm:$0xff] }
 0x748   :  { %2980 = vmatpush.bf16.msra.mxu2 %v7898_v38  ;;  %2993 = vmatpush.bf16.msrb.mxu3 %v7899_v34  ;;  %v7177_v38 = vld [vmem:[#allocation5 + $0xf8] sm:$0xff]  ;;  %v7180_v34 = vld [vmem:[#allocation5 + $0x30] sm:$0xff] }
 0x749   :  { %7939 = vst [vmem:[#allocation162_spill] sm:$0xff] %v7180_v34 }
 0x74b   :  { %2974 = vmatpush.bf16.msra.mxu1 %v7900_v31  ;;  %v7185_v31 = vld [vmem:[#allocation5 + $0x1e0] sm:$0xff] }
 0x74c   :  { %2981 = vmatpush.bf16.msra.mxu2 %v7901_v25  ;;  %2994 = vmatpush.bf16.msrb.mxu3 %v7902_v10  ;;  %v7188_v25 = vld [vmem:[#allocation5 + $0xe8] sm:$0xff]  ;;  %v7191_v10 = vld [vmem:[#allocation5 + $0x20] sm:$0xff] }
 0x74d   :  { %7940 = vst [vmem:[#allocation156_spill] sm:$0xff] %v7191_v10 }
 0x74e   :  { %2975 = vmatmul.bf16.vlgmr.msra.gmra.mxu1 %v2847_v26 }
 0x74f   :  { %3019 = vmatpush.bf16.msrb.mxu1 %v7903_v29  ;;  %v7194_v29 = vld [vmem:[#allocation5 + $0x1d0] sm:$0xff] }
 0x750   :  { %2982 = vmatpush.bf16.msra.mxu2 %v7904_v1  ;;  %2995 = vmatpush.bf16.msrb.mxu3 %v7905_v24  ;;  %v7095_v54 = vpop.f32.mrf.mxu0  ;;  %v7197_v1 = vld [vmem:[#allocation5 + $0xd8] sm:$0xff]  ;;  %v7206_v24 = vld [vmem:[#allocation5 + $0xc8] sm:$0xff] }
 0x753   :  { %3020 = vmatpush.bf16.msrb.mxu1 %v7906_v62  ;;  %v7209_v62 = vld [vmem:[#allocation5] sm:$0xff] }
 0x754   :  { %2983 = vmatpush.bf16.msra.mxu2 %v7907_v11  ;;  %2996 = vmatpush.bf16.msrb.mxu3 %v7908_v44  ;;  %7942 = vst [vmem:[#allocation174_spill] sm:$0xff] %v7209_v62  ;;  %v7212_v11 = vld [vmem:[#allocation5 + $0x1b0] sm:$0xff]  ;;  %v7215_v44 = vld [vmem:[#allocation5 + $0xb8] sm:$0xff] }
 0x756   :  { %2949 = vmatmul.bf16.vlgmr.msra.gmra.mxu3 %v7080_v32 }
 0x757   :  { %3021 = vmatpush.bf16.msrb.mxu1 %v7909_v41  ;;  %2936 = vmatmul.bf16.vlgmr.msrb.gmra.mxu2 %v7082_v23 }
 0x758   :  { %2984 = vmatpush.bf16.msra.mxu2 %v7910_v53  ;;  %2997 = vmatpush.bf16.msrb.mxu3 %v7911_v27  ;;  %v2861_v5 = vpop.f32.mrf.mxu0  ;;  %v7220_v53 = vld [vmem:[#allocation5 + $0x1a0] sm:$0xff]  ;;  %v7223_v27 = vld [vmem:[#allocation5 + $0xa8] sm:$0xff] }
 0x759   :  { %v7226_v5 = vld [vmem:[#allocation5 + $0x190] sm:$0xff] }
 0x75b   :  { %3022 = vmatpush.bf16.msrb.mxu1 %v7912_v42  ;;  %v7229_v42 = vld [vmem:[#allocation5 + $0x98] sm:$0xff] }
 0x75c   :  { %2985 = vmatpush.bf16.msra.mxu2 %v7913_v60  ;;  %2998 = vmatpush.bf16.msrb.mxu3 %v7914_v18  ;;  %v7232_v60 = vld [vmem:[#allocation5 + $0x180] sm:$0xff]  ;;  %v7235_v18 = vld [vmem:[#allocation5 + $0x88] sm:$0xff] }
 0x75f   :  { %3023 = vmatpush.bf16.msrb.mxu1 %v7915_v17  ;;  %v7238_v17 = vld [vmem:[#allocation5 + $0x170] sm:$0xff] }
 0x760   :  { %2986 = vmatpush.bf16.msra.mxu2 %v7916_v16  ;;  %2999 = vmatpush.bf16.msrb.mxu3 %v7917_v61  ;;  %v7111_v36 = vpop.f32.mrf.mxu0  ;;  %v7241_v16 = vld [vmem:[#allocation5 + $0x78] sm:$0xff] }
 0x763   :  { %3024 = vmatpush.bf16.msrb.mxu1 %v7918_v13  ;;  %v7244_v13 = vld [vmem:[#allocation5 + $0x160] sm:$0xff] }
 0x764   :  { %2987 = vmatpush.bf16.msra.mxu2 %v7919_v45  ;;  %3000 = vmatpush.bf16.msrb.mxu3 %v7920_v22  ;;  %7943 = vst [vmem:[#allocation165_spill] sm:$0xff] %v7244_v13  ;;  %v7247_v45 = vld [vmem:[#allocation5 + $0x68] sm:$0xff]  ;;  %v7250_v22 = vld [vmem:[#allocation5 + $0x150] sm:$0xff] }
 0x765   :  { %7944 = vst [vmem:[#allocation157_spill] sm:$0xff] %v7247_v45 }
 0x766   :  { %7945 = vst [vmem:[#allocation161_spill] sm:$0xff] %v7250_v22 }
 0x767   :  { %3025 = vmatpush.bf16.msrb.mxu1 %v7921_v21  ;;  %2988 = vmatmul.bf16.vlgmr.msra.gmra.mxu2 %v7082_v23  ;;  %v7253_v21 = vld [vmem:[#allocation5 + $0x58] sm:$0xff] }
 0x768   :  { %3032 = vmatpush.bf16.msrb.mxu2 %v7922_v3  ;;  %3045 = vmatpush.bf16.msra.mxu3 %v7923_v37  ;;  %v2913_v20 = vpop.f32.mrf.mxu0  ;;  %7946 = vst [vmem:[#allocation175_spill] sm:$0xff] %v7253_v21  ;;  %v7256_v3 = vld [vmem:[#allocation5 + $0x140] sm:$0xff]  ;;  %v7259_v37 = vld [vmem:[#allocation5 + $0x48] sm:$0xff] }
 0x769   :  { %3001 = vmatmul.bf16.vlgmr.msrb.gmra.mxu3 %v7080_v32  ;;  %7947 = vst [vmem:[#allocation168_spill] sm:$0xff] %v7256_v3  ;;  %v7262_v20 = vld [vmem:[#allocation5 + $0x130] sm:$0xff] }
 0x76a   :  { %7948 = vst [vmem:[#allocation158_spill] sm:$0xff] %v7259_v37 }
 0x76b   :  { %3026 = vmatpush.bf16.msrb.mxu1 %v7924_v12  ;;  %7949 = vst [vmem:[#allocation164_spill] sm:$0xff] %v7262_v20  ;;  %v7265_v12 = vld [vmem:[#allocation5 + $0x38] sm:$0xff] }
 0x76c   :  { %3033 = vmatpush.bf16.msrb.mxu2 %v7925_v15  ;;  %3046 = vmatpush.bf16.msra.mxu3 %v7926_v48  ;;  %7950 = vst [vmem:[#allocation176_spill] sm:$0xff] %v7265_v12  ;;  %v7268_v15 = vld [vmem:[#allocation5 + $0x120] sm:$0xff]  ;;  %v7271_v48 = vld [vmem:[#allocation5 + $0x28] sm:$0xff] }
 0x76d   :  { %7951 = vst [vmem:[#allocation170_spill] sm:$0xff] %v7268_v15 }
 0x76e   :  { %3027 = vmatmul.bf16.vlgmr.msrb.gmra.mxu1 %v2847_v26  ;;  %v7933_v26 = vld [vmem:[#allocation146_spill] sm:$0xff]  ;;  %7952 = vst [vmem:[#allocation160_spill] sm:$0xff] %v7271_v48 }
 0x76f   :  { %3150 = vmatpush.msra.mxu1 %v7124_v0 }
 0x770   :  { %3034 = vmatpush.bf16.msrb.mxu2 %v7927_v8  ;;  %3047 = vmatpush.bf16.msra.mxu3 %v7928_v63  ;;  %v7135_v39 = vpop.f32.mrf.mxu0  ;;  %v7274_v8 = vld [vmem:[#allocation5 + $0x110] sm:$0xff]  ;;  %v7277_v63 = vld [vmem:[#allocation5 + $0x18] sm:$0xff] }
 0x771   :  { %3151 = vmatpush.msra.mxu1 %v7128_v28  ;;  %7953 = vst [vmem:[#allocation167_spill] sm:$0xff] %v7274_v8 }
 0x772   :  { %7954 = vst [vmem:[#allocation177_spill] sm:$0xff] %v7277_v63 }
 0x773   :  { %3152 = vmatpush.msra.mxu1 %v7132_v19 }
 0x774   :  { %3035 = vmatpush.bf16.msrb.mxu2 %v7929_v2  ;;  %3048 = vmatpush.bf16.msra.mxu3 %v7930_v55  ;;  %v7280_v2 = vld [vmem:[#allocation5 + $0x100] sm:$0xff]  ;;  %v7283_v55 = vld [vmem:[#allocation5 + $0x8] sm:$0xff] }
 0x775   :  { %3153 = vmatpush.msra.mxu1 %v7138_v14  ;;  %7955 = vst [vmem:[#allocation171_spill] sm:$0xff] %v7280_v2 }
 0x776   :  { %7956 = vst [vmem:[#allocation163_spill] sm:$0xff] %v7283_v55 }
 0x777   :  { %3154 = vmatpush.msra.mxu1 %v7142_v47 }
 0x778   :  { %3036 = vmatpush.bf16.msrb.mxu2 %v7931_v50  ;;  %3049 = vmatpush.bf16.msra.mxu3 %v7932_v49  ;;  %v2965_v46 = vpop.f32.mrf.mxu0 }
 0x779   :  { %3155 = vmatpush.msra.mxu1 %v7146_v9 }
 0x77b   :  { %3156 = vmatpush.msra.mxu1 %v7150_v51 }
 0x77c   :  { %3037 = vmatpush.bf16.msrb.mxu2 %v7933_v26  ;;  %3050 = vmatpush.bf16.msra.mxu3 %v7934_v7 }
 0x77d   :  { %3157 = vmatpush.msra.mxu1 %v7154_v30 }
 0x77f   :  { %3158 = vmatpush.msra.mxu1 %v7158_v52 }
 0x780   :  { %3038 = vmatpush.bf16.msrb.mxu2 %v7935_v35  ;;  %3051 = vmatpush.bf16.msra.mxu3 %v7936_v6 }
 0x781   :  { %3159 = vmatpush.msra.mxu1 %v7162_v56 }
 0x783   :  { %3160 = vmatpush.msra.mxu1 %v7166_v4 }
 0x784   :  { %3039 = vmatpush.bf16.msrb.mxu2 %v7937_v33  ;;  %3052 = vmatpush.bf16.msra.mxu3 %v7938_v40 }
 0x785   :  { %3161 = vmatpush.msra.mxu1 %v7170_v57 }
 0x787   :  { %3162 = vmatpush.msra.mxu1 %v7180_v34  ;;  %3040 = vmatmul.bf16.vlgmr.msrb.gmra.mxu2 %v7082_v23  ;;  %v7203_v23 = vld [vmem:[#allocation5 + $0x1c0] sm:$0xff]  ;;  %v5543_v34 = vld [vmem:[#allocation17 + $0xd4] sm:$0xf0] }
 0x788   :  { %3170 = vmatpush.msra.mxu2 %v7174_v58  ;;  %3190 = vmatpush.msrb.mxu3 %v7177_v38 }
 0x789   :  { %3053 = vmatmul.bf16.vlgmr.msra.gmra.mxu3 %v7080_v32  ;;  %3163 = vmatpush.msra.mxu1 %v7191_v10  ;;  %v7200_v32 = vld [vmem:[#allocation5 + $0x10] sm:$0xff]  ;;  %v5515_v10 = vld [vmem:[#allocation16 + $0x38] sm:$0xff] }
 0x78a   :  { %3171 = vmatpush.msra.mxu2 %v7185_v31  ;;  %3191 = vmatpush.msrb.mxu3 %v7188_v25  ;;  %7941 = vst [vmem:[#allocation159_spill] sm:$0xff] %v7200_v32 }
 0x78b   :  { %3164 = vmatpush.msra.mxu1 %v7200_v32  ;;  %3135 = vmatpush.bf16.msrb.mxu0 %v5515_v10 }
 0x78c   :  { %3172 = vmatpush.msra.mxu2 %v7194_v29  ;;  %3192 = vmatpush.msrb.mxu3 %v7197_v1 }
 0x78d   :  { %3165 = vmatpush.msra.mxu1 %v7209_v62 }
 0x78e   :  { %3173 = vmatpush.msra.mxu2 %v7203_v23  ;;  %3193 = vmatpush.msrb.mxu3 %v7206_v24 }
 0x790   :  { %3174 = vmatpush.msra.mxu2 %v7212_v11  ;;  %3194 = vmatpush.msrb.mxu3 %v7215_v44  ;;  %v7218_v41 = vpop.f32.mrf.mxu0 }
 0x792   :  { %3175 = vmatpush.msra.mxu2 %v7220_v53  ;;  %3195 = vmatpush.msrb.mxu3 %v7223_v27 }
 0x794   :  { %3176 = vmatpush.msra.mxu2 %v7226_v5  ;;  %3196 = vmatpush.msrb.mxu3 %v7229_v42 }
 0x796   :  { %3177 = vmatpush.msra.mxu2 %v7232_v60  ;;  %3197 = vmatpush.msrb.mxu3 %v7235_v18 }
 0x798   :  { %3178 = vmatpush.msra.mxu2 %v7238_v17  ;;  %3198 = vmatpush.msrb.mxu3 %v7241_v16  ;;  %v3017_v61 = vpop.f32.mrf.mxu0 }
 0x79a   :  { %3179 = vmatpush.msra.mxu2 %v7244_v13  ;;  %3199 = vmatpush.msrb.mxu3 %v7247_v45  ;;  %v5541_v13 = vld [vmem:[#allocation17 + $0xcc] sm:$0xf]  ;;  %v5079_v45 = vld [vmem:[#allocation17 + $0xd8] sm:$0xf0] }
 0x79c   :  { %3180 = vmatpush.msra.mxu2 %v7250_v22  ;;  %3200 = vmatpush.msrb.mxu3 %v7253_v21  ;;  %v5542_v22 = vld [vmem:[#allocation17 + $0xcc] sm:$0xf0]  ;;  %v5540_v21 = vld [vmem:[#allocation17 + $0xc4] sm:$0xf] }
 0x79e   :  { %3181 = vmatpush.msra.mxu2 %v7256_v3  ;;  %3201 = vmatpush.msrb.mxu3 %v7259_v37 }
 0x7a0   :  { %3182 = vmatpush.msra.mxu2 %v7262_v20  ;;  %3202 = vmatpush.msrb.mxu3 %v7265_v12 }
 0x7a2   :  { %3183 = vmatpush.msra.mxu2 %v7268_v15  ;;  %3203 = vmatpush.msrb.mxu3 %v7271_v48 }
 0x7a4   :  { %3184 = vmatpush.msra.mxu2 %v7274_v8  ;;  %3204 = vmatpush.msrb.mxu3 %v7277_v63 }
 0x7a6   :  { %3185 = vmatpush.msra.mxu2 %v7280_v2  ;;  %3205 = vmatpush.msrb.mxu3 %v7283_v55 }
 0x7ab   :  { %v2872_v50 = vpop.f32.mrf.mxu1 }
 0x7ac   :  { %v2873_v8 = vadd.f32 %v2872_v50, %v7095_v54  ;;  %v5508_v50 = vld [vmem:[#allocation16] sm:$0xff] }
 0x7b3   :  { %v2874_v49 = vpop.f32.mrf.mxu1 }
 0x7bb   :  { %v2924_v46 = vpop.f32.mrf.mxu1 }
 0x7bc   :  { %v2925_v63 = vadd.f32 %v2924_v46, %v7111_v36  ;;  %v5513_v36 = vld [vmem:[#allocation16 + $0x28] sm:$0xff] }
 0x7c3   :  { %v2926_v26 = vpop.f32.mrf.mxu1 }
 0x7c9   :  { %v2898_v7 = vpop.f32.mrf.mxu3 }
 0x7ca   :  { %v2885_v35 = vpop.f32.mrf.mxu2 }
 0x7cb   :  { %v2976_v6 = vpop.f32.mrf.mxu1  ;;  %v2886_v15 = vadd.f32 %v2885_v35, %v2873_v8  ;;  %v5512_v8 = vld [vmem:[#allocation16 + $0x20] sm:$0xff] }
 0x7cd   :  { %v2899_v20 = vadd.f32 %v2898_v7, %v2886_v15  ;;  %v5510_v15 = vld [vmem:[#allocation16 + $0x10] sm:$0xff] }
 0x7d1   :  { %v2900_v33 = vpop.f32.mrf.mxu3 }
 0x7d2   :  { %v2887_v40 = vpop.f32.mrf.mxu2  ;;  %v5514_v33 = vld [vmem:[#allocation16 + $0x30] sm:$0xff] }
 0x7d3   :  { %v2978_v61 = vpop.f32.mrf.mxu1  ;;  %3136 = vmatpush.bf16.msrb.mxu0 %v5514_v33 }
 0x7d7   :  { %3137 = vmatpush.bf16.msrb.mxu0 %v5513_v36 }
 0x7d9   :  { %v2950_v2 = vpop.f32.mrf.mxu3 }
 0x7da   :  { %v2937_v48 = vpop.f32.mrf.mxu2 }
 0x7db   :  { %v2938_v62 = vadd.f32 %v2937_v48, %v2925_v63  ;;  %3138 = vmatpush.bf16.msrb.mxu0 %v5512_v8  ;;  %v5511_v48 = vld [vmem:[#allocation16 + $0x18] sm:$0xff]  ;;  %v5509_v63 = vld [vmem:[#allocation16 + $0x8] sm:$0xff] }
 0x7dd   :  { %v2951_v55 = vadd.f32 %v2950_v2, %v2938_v62  ;;  %v2977_v62 = vadd.f32 %v2976_v6, %v7135_v39  ;;  %v7293_v6 = vld [vmem:[#allocation5 + $0x1e8] sm:$0xff] }
 0x7df   :  { %v3058_v12 = vmax.f32 %v2899_v20, %v2951_v55  ;;  %3139 = vmatpush.bf16.msrb.mxu0 %v5511_v48 }
 0x7e1   :  { %v2952_v49 = vpop.f32.mrf.mxu3 }
 0x7e2   :  { %v2939_v32 = vpop.f32.mrf.mxu2 }
 0x7e3   :  { %3140 = vmatpush.bf16.msrb.mxu0 %v5510_v15  ;;  %v7299_v15 = vld [vmem:[#allocation5 + $0x1c8] sm:$0xff] }
 0x7e7   :  { %3141 = vmatpush.bf16.msrb.mxu0 %v5509_v63 }
 0x7ea   :  { %v2989_v3 = vpop.f32.mrf.mxu2 }
 0x7eb   :  { %v3028_v26 = vpop.f32.mrf.mxu1  ;;  %v2990_v32 = vadd.f32 %v2989_v3, %v2977_v62  ;;  %3142 = vmatpush.bf16.msrb.mxu0 %v5508_v50 }
 0x7ec   :  { %v3002_v37 = vpop.f32.mrf.mxu3  ;;  %v3029_v2 = vadd.f32 %v3028_v26, %v7218_v41 }
 0x7ed   :  { %v3003_v10 = vadd.f32 %v3002_v37, %v2990_v32  ;;  %v7308_v32 = vld [vmem:[#allocation5 + $0x198] sm:$0xff] }
 0x7ef   :  { %v3059_v49 = vmax.f32 %v3058_v12, %v3003_v10 }
 0x7f2   :  { %v2991_v61 = vpop.f32.mrf.mxu2 }
 0x7f3   :  { %v3030_v40 = vpop.f32.mrf.mxu1 }
 0x7f4   :  { %v3004_v54 = vpop.f32.mrf.mxu3  ;;  %v7290_v40 = vld [vmem:[#allocation5 + $0x1f8] sm:$0xff] }
 0x7f5   :  { %3210 = vmatpush.msra.mxu0 %v7290_v40  ;;  %v7296_v54 = vld [vmem:[#allocation5 + $0x1d8] sm:$0xff] }
 0x7f7   :  { %3211 = vmatpush.msra.mxu0 %v7293_v6 }
 0x7f9   :  { %3212 = vmatpush.msra.mxu0 %v7296_v54 }
 0x7fb   :  { %3213 = vmatpush.msra.mxu0 %v7299_v15 }
 0x80a   :  { %v3041_v46 = vpop.f32.mrf.mxu2 }
 0x80b   :  { %v3042_v7 = vadd.f32 %v3041_v46, %v3029_v2  ;;  %v7312_v46 = vld [vmem:[#allocation5 + $0x188] sm:$0xff] }
 0x80c   :  { %v3054_v35 = vpop.f32.mrf.mxu3 }
 0x80d   :  { %v3055_v33 = vadd.f32 %v3054_v35, %v3042_v7 }
 0x80f   :  { %v3060_v39 = vmax.f32 %v3059_v49, %v3055_v33 }
 0x811   :  { %v3061_v3 = vsub.f32 %v2899_v20, %v3060_v39  ;;  %v3064_v41 = vsub.f32 %v2951_v55, %v3060_v39  ;;  %v3067_v37 = vsub.f32 %v3003_v10, %v3060_v39  ;;  %v3070_v26 = vsub.f32 %v3055_v33, %v3060_v39  ;;  %v7302_v20 = vld [vmem:[#allocation5 + $0x1b8] sm:$0xff]  ;;  %v7305_v55 = vld [vmem:[#allocation5 + $0x1a8] sm:$0xff]  ;;  %v2834_v10 = vpop.permute.xlu0 %2833  ;;  %v2839_v39 = vpop.permute.xlu1 %2838 }
 0x812   :  { %v3043_v61 = vpop.f32.mrf.mxu2  ;;  %3214 = vmatpush.msra.mxu0 %v7302_v20 }
 0x813   :  { %v3062_v12 = vmul.f32 1.442695, %v3061_v3  ;;  %v3065_v36 = vmul.f32 1.442695, %v3064_v41  ;;  %v3068_v8 = vmul.f32 1.442695, %v3067_v37  ;;  %v2844_v61 = vpop.permute.xlu2 %2843 }
 0x814   :  { %v3056_v48 = vpop.f32.mrf.mxu3  ;;  %v3071_v62 = vmul.f32 1.442695, %v3070_v26  ;;  %3215 = vmatpush.msra.mxu0 %v7305_v55  ;;  %v7315_v3 = vld [vmem:[#allocation5 + $0x178] sm:$0xff] }
 0x815   :  { %5634 = vpow2.f32 %v3062_v12  ;;  %v7318_v12 = vld [vmem:[#allocation5 + $0x168] sm:$0xff]  ;;  %v7321_v48 = vld [vmem:[#allocation5 + $0x158] sm:$0xff] }
 0x816   :  { %5636 = vpow2.f32 %v3065_v36  ;;  %3216 = vmatpush.msra.mxu0 %v7308_v32 }
 0x817   :  { %5638 = vpow2.f32 %v3068_v8 }
 0x818   :  { %5640 = vpow2.f32 %v3071_v62  ;;  %3217 = vmatpush.msra.mxu0 %v7312_v46 }
 0x81a   :  { %3218 = vmatpush.msra.mxu0 %v7315_v3 }
 0x81b   :  { %v5635_v63 = vpop.eup %5634 }
 0x81c   :  { %v5637_v2 = vpop.eup %5636  ;;  %v3077_v50 = vmul.f32 %v5635_v63, %v7051_v43  ;;  %3219 = vmatpush.msra.mxu0 %v7318_v12 }
 0x81d   :  { %v5639_v7 = vpop.eup %5638  ;;  %v3073_v35 = vadd.f32 %v5637_v2, %v5635_v63  ;;  %v3078_v49 = vmul.f32 %v5637_v2, %v2834_v10  ;;  %v7324_v63 = vld [vmem:[#allocation5 + $0x148] sm:$0xff]  ;;  %v7327_v2 = vld [vmem:[#allocation5 + $0x138] sm:$0xff] }
 0x81e   :  { %v5641_v33 = vpop.eup %5640  ;;  %v3080_v26 = vmul.f32 %v5639_v7, %v2839_v39  ;;  %3220 = vmatpush.msra.mxu0 %v7321_v48  ;;  %7957 = vst [vmem:[#allocation172_spill] sm:$0xff] %v7327_v2  ;;  %v7330_v10 = vld [vmem:[#allocation5 + $0x128] sm:$0xff]  ;;  %v3086_v39 = vld [vmem:[%s7457_s5 + $0x20] ss:$0 sm:$0xff] }
 0x81f   :  { %v3074_v41 = vadd.f32 %v5639_v7, %v3073_v35  ;;  %v3079_v37 = vadd.f32 %v3078_v49, %v3077_v50  ;;  %v3082_v8 = vmul.f32 %v5641_v33, %v2844_v61  ;;  %7958 = vst [vmem:[#allocation28_spill] sm:$0xff] %v7330_v10  ;;  %v7333_v35 = vld [vmem:[#allocation5 + $0x118] sm:$0xff] }
 0x820   :  { %3221 = vmatpush.msra.mxu0 %v7324_v63  ;;  %7959 = vst [vmem:[#allocation166_spill] sm:$0xff] %v7333_v35 }
 0x821   :  { %v3075_v43 = vadd.f32 %v5641_v33, %v3074_v41  ;;  %v3081_v36 = vadd.f32 %v3080_v26, %v3079_v37  ;;  %v7336_v33 = vld [vmem:[#allocation5 + $0x108] sm:$0xff] }
 0x822   :  { %3222 = vmatpush.msra.mxu0 %v7327_v2  ;;  %7960 = vst [vmem:[#allocation173_spill] sm:$0xff] %v7336_v33  ;;  %v5077_v2 = vld [vmem:[#allocation17 + $0xc8] sm:$0xf] }
 0x823   :  { %5642 = vrcp.f32 %v3075_v43  ;;  %v3083_v62 = vadd.f32 %v3082_v8, %v3081_v36  ;;  %v5085_v36 = vld [vmem:[#allocation17 + $0xe0] sm:$0xf]  ;;  %v5546_v8 = vld [vmem:[#allocation17 + $0xec] sm:$0xf0] }
 0x824   :  { %3223 = vmatpush.msra.mxu0 %v7330_v10  ;;  %v5069_v10 = vld [vmem:[#allocation17 + $0xc0] sm:$0xf] }
 0x826   :  { %3224 = vmatpush.msra.mxu0 %v7333_v35 }
 0x828   :  { %3225 = vmatpush.msra.mxu0 %v7336_v33  ;;  %v5095_v33 = vld [vmem:[#allocation17 + $0xf8] sm:$0xf0] }
 0x829   :  { %v5643_v50 = vpop.eup %5642 }
 0x82a   :  { %v3084_v7 = vmul.f32 %v5643_v50, %v3083_v62  ;;  %v5544_v62 = vld [vmem:[#allocation17 + $0xe4] sm:$0xf]  ;;  %v5086_v50 = vor.u32 %v5546_v8, %v5085_v36  ;;  %v5078_v8 = vor.u32 %v5543_v34, %v5077_v2 }
 0x82c   :  { %v3085_v49 = vpack.c.bf16 %v3084_v7, %v3084_v7  ;;  %v5087_v7 = vld [vmem:[#allocation17 + $0xf0] sm:$0xf0]  ;;  %3417 = vmatpush.bf16.msrb.mxu1 %v5086_v50  ;;  %v5053_v50 = vld [vmem:[#allocation17 + $0xa0] sm:$0xf] }
 0x82e   :  { %3143 = vmatmul.bf16.vlgmr.msrb.gmra.mxu0 %v3085_v49  ;;  %v5093_v49 = vld [vmem:[#allocation17 + $0xe8] sm:$0xf] }
 0x8ab   :  { %v3144_v41 = vpop.f32.mrf.mxu0 }
 0x8ac   :  { %v3145_v37 = vadd.f32 %v3144_v41, %v3086_v39  ;;  %v5547_v39 = vld [vmem:[#allocation17 + $0xf4] sm:$0xf0]  ;;  %v5090_v41 = vor.u32 %v5544_v62, %v5087_v7  ;;  %v5082_v62 = vor.u32 %v5541_v13, %v5079_v45  ;;  %v5536_v7 = vld [vmem:[#allocation17 + $0xa4] sm:$0xf]  ;;  %v5534_v13 = vld [vmem:[#allocation17 + $0x8c] sm:$0xf0] }
 0x8ad   :  { %v5532_v45 = vld [vmem:[#allocation17 + $0x84] sm:$0xf] }
 0x8ae   :  { %v7343_v26 = vadd.f32 %v3145_v37, %v6981_v59  ;;  %v5094_v59 = vor.u32 %v5547_v39, %v5093_v49  ;;  %v5545_v37 = vld [vmem:[#allocation17 + $0xec] sm:$0xf]  ;;  %3430 = vmatpush.bf16.msrb.mxu2 %v5090_v41  ;;  %v5055_v39 = vld [vmem:[#allocation17 + $0xb0] sm:$0xf0]  ;;  %v5061_v41 = vld [vmem:[#allocation17 + $0xa8] sm:$0xf] }
 0x8af   :  { %v5098_v35 = vor.u32 %v5545_v37, %v5095_v33  ;;  %v5538_v33 = vld [vmem:[#allocation17 + $0xac] sm:$0xf0]  ;;  %v5063_v37 = vld [vmem:[#allocation17 + $0xb8] sm:$0xf0] }
 0x8b0   :  { %3166 = vmatmul.f32.vlgmr.msra.gmra.mxu1 %v7343_v26  ;;  %3206 = vmatmul.f32.vlgmr.msrb.gmra.mxu3 %v7343_v26  ;;  %v3149_v61 = vmul.f32 %v7343_v26, %v7343_v26  ;;  %v5054_v49 = vor.u32 %v5538_v33, %v5053_v50  ;;  %v5533_v50 = vld [vmem:[#allocation17 + $0x8c] sm:$0xf]  ;;  %v5047_v33 = vld [vmem:[#allocation17 + $0x98] sm:$0xf0] }
 0x8b1   :  { %3443 = vmatpush.bf16.msra.mxu3 %v5094_v59  ;;  %3456 = vmatpush.bf16.msrb.mxu0 %v5098_v35  ;;  %v5539_v35 = vld [vmem:[#allocation17 + $0xb4] sm:$0xf0]  ;;  %v5537_v59 = vld [vmem:[#allocation17 + $0xac] sm:$0xf] }
 0x8b2   :  { %3186 = vmatmul.f32.vlgmr.msra.gmra.mxu2 %v3149_v61  ;;  %3226 = vmatmul.f32.vlgmr.msra.gmra.mxu0 %v3149_v61  ;;  %v5070_v61 = vor.u32 %v5542_v22, %v5069_v10  ;;  %v5058_v22 = vor.u32 %v5536_v7, %v5055_v39  ;;  %v5062_v10 = vor.u32 %v5539_v35, %v5061_v41  ;;  %v5530_v39 = vld [vmem:[#allocation17 + $0x6c] sm:$0xf0]  ;;  %v5528_v41 = vld [vmem:[#allocation17 + $0x64] sm:$0xf] }
 0x8b3   :  { %v3146_v43 = vpop.f32.mrf.mxu0  ;;  %v5066_v34 = vor.u32 %v5537_v59, %v5063_v37  ;;  %v5050_v7 = vor.u32 %v5533_v50, %v5047_v33  ;;  %v5531_v59 = vld [vmem:[#allocation17 + $0x74] sm:$0xf0] }
 0x8b4   :  { %v5071_v43 = vld [vmem:[#allocation17 + $0xd0] sm:$0xf0]  ;;  %3418 = vmatpush.bf16.msrb.mxu1 %v5070_v61  ;;  %v5527_v50 = vld [vmem:[#allocation17 + $0x54] sm:$0xf0] }
 0x8b5   :  { %v5074_v36 = vor.u32 %v5540_v21, %v5071_v43  ;;  %3444 = vmatpush.bf16.msra.mxu3 %v5078_v8  ;;  %3457 = vmatpush.bf16.msrb.mxu0 %v5082_v62  ;;  %v5037_v21 = vld [vmem:[#allocation17 + $0x80] sm:$0xf]  ;;  %v5039_v61 = vld [vmem:[#allocation17 + $0x90] sm:$0xf0]  ;;  %v5045_v43 = vld [vmem:[#allocation17 + $0x88] sm:$0xf] }
 0x8b6   :  { %v5038_v2 = vor.u32 %v5534_v13, %v5037_v21  ;;  %v5042_v8 = vor.u32 %v5532_v45, %v5039_v61  ;;  %v5529_v21 = vld [vmem:[#allocation17 + $0x6c] sm:$0xf]  ;;  %v5031_v13 = vld [vmem:[#allocation17 + $0x78] sm:$0xf0]  ;;  %v5526_v61 = vld [vmem:[#allocation17 + $0x4c] sm:$0xf0] }
 0x8b7   :  { %3431 = vmatpush.bf16.msrb.mxu2 %v5074_v36  ;;  %v5535_v36 = vld [vmem:[#allocation17 + $0x94] sm:$0xf0]  ;;  %v5034_v45 = vor.u32 %v5529_v21, %v5031_v13 }
 0x8b8   :  { %3419 = vmatpush.bf16.msrb.mxu1 %v5054_v49  ;;  %v5046_v62 = vor.u32 %v5535_v36, %v5045_v43  ;;  %v5021_v49 = vld [vmem:[#allocation17 + $0x60] sm:$0xf]  ;;  %v5524_v43 = vld [vmem:[#allocation17 + $0x44] sm:$0xf]  ;;  %v5523_v21 = vld [vmem:[#allocation17 + $0x34] sm:$0xf0] }
 0x8b9   :  { %3445 = vmatpush.bf16.msra.mxu3 %v5062_v10  ;;  %3458 = vmatpush.bf16.msrb.mxu0 %v5066_v34  ;;  %v5022_v35 = vor.u32 %v5530_v39, %v5021_v49  ;;  %v5029_v10 = vld [vmem:[#allocation17 + $0x68] sm:$0xf]  ;;  %v5525_v49 = vld [vmem:[#allocation17 + $0x4c] sm:$0xf]  ;;  %v5015_v39 = vld [vmem:[#allocation17 + $0x58] sm:$0xf0] }
 0x8ba   :  { %v5030_v34 = vor.u32 %v5531_v59, %v5029_v10  ;;  %v5520_v10 = vld [vmem:[#allocation17 + $0x24] sm:$0xf] }
 0x8bb   :  { %3432 = vmatpush.bf16.msrb.mxu2 %v5058_v22  ;;  %v5023_v22 = vld [vmem:[#allocation17 + $0x70] sm:$0xf0] }
 0x8bc   :  { %3420 = vmatpush.bf16.msrb.mxu1 %v5038_v2  ;;  %v5026_v37 = vor.u32 %v5528_v41, %v5023_v22  ;;  %v5005_v2 = vld [vmem:[#allocation17 + $0x40] sm:$0xf]  ;;  %v5018_v41 = vor.u32 %v5525_v49, %v5015_v39  ;;  %v5522_v22 = vld [vmem:[#allocation17 + $0x2c] sm:$0xf0]  ;;  %v5519_v49 = vld [vmem:[#allocation17 + $0x14] sm:$0xf0] }
 0x8bd   :  { %3446 = vmatpush.bf16.msra.mxu3 %v5046_v62  ;;  %3459 = vmatpush.bf16.msrb.mxu0 %v5050_v7  ;;  %v5006_v36 = vor.u32 %v5526_v61, %v5005_v2  ;;  %v5013_v62 = vld [vmem:[#allocation17 + $0x48] sm:$0xf]  ;;  %v5521_v2 = vld [vmem:[#allocation17 + $0x2c] sm:$0xf]  ;;  %v4999_v61 = vld [vmem:[#allocation17 + $0x38] sm:$0xf0] }
 0x8be   :  { %v5014_v7 = vor.u32 %v5527_v50, %v5013_v62  ;;  %v5516_v62 = vld [vmem:[#allocation17 + $0x4] sm:$0xf] }
 0x8bf   :  { %3433 = vmatpush.bf16.msrb.mxu2 %v5042_v8  ;;  %v5007_v8 = vld [vmem:[#allocation17 + $0x50] sm:$0xf0] }
 0x8c0   :  { %3421 = vmatpush.bf16.msrb.mxu1 %v5022_v35  ;;  %v5010_v33 = vor.u32 %v5524_v43, %v5007_v8  ;;  %v4989_v35 = vld [vmem:[#allocation17 + $0x20] sm:$0xf]  ;;  %v5002_v43 = vor.u32 %v5521_v2, %v4999_v61  ;;  %v5518_v8 = vld [vmem:[#allocation17 + $0xc] sm:$0xf0]  ;;  %v5563_v2 = vld [vmem:[#allocation19 + $0x78] sm:$0xff] }
 0x8c1   :  { %3447 = vmatpush.bf16.msra.mxu3 %v5030_v34  ;;  %3460 = vmatpush.bf16.msrb.mxu0 %v5034_v45  ;;  %v4990_v59 = vor.u32 %v5522_v22, %v4989_v35  ;;  %v4997_v34 = vld [vmem:[#allocation17 + $0x28] sm:$0xf]  ;;  %v5517_v35 = vld [vmem:[#allocation17 + $0xc] sm:$0xf]  ;;  %v4983_v22 = vld [vmem:[#allocation17 + $0x18] sm:$0xf0] }
 0x8c2   :  { %v4998_v45 = vor.u32 %v5523_v21, %v4997_v34  ;;  %v5555_v21 = vld [vmem:[#allocation19 + $0x38] sm:$0xff] }
 0x8c3   :  { %3434 = vmatpush.bf16.msrb.mxu2 %v5026_v37  ;;  %v4991_v37 = vld [vmem:[#allocation17 + $0x30] sm:$0xf0]  ;;  %v5571_v61 = vld [vmem:[#allocation19 + $0xb8] sm:$0xff] }
 0x8c4   :  { %3422 = vmatpush.bf16.msrb.mxu1 %v5006_v36  ;;  %v4994_v13 = vor.u32 %v5520_v10, %v4991_v37  ;;  %v4973_v36 = vld [vmem:[#allocation17] sm:$0xf]  ;;  %v4986_v10 = vor.u32 %v5517_v35, %v4983_v22 }
 0x8c5   :  { %3448 = vmatpush.bf16.msra.mxu3 %v5014_v7  ;;  %3461 = vmatpush.bf16.msrb.mxu0 %v5018_v41  ;;  %v4974_v50 = vor.u32 %v5518_v8, %v4973_v36  ;;  %v4981_v7 = vld [vmem:[#allocation17 + $0x8] sm:$0xf]  ;;  %v5554_v36 = vld [vmem:[#allocation19 + $0x30] sm:$0xff] }
 0x8c6   :  { %v4982_v41 = vor.u32 %v5519_v49, %v4981_v7  ;;  %v5578_v8 = vld [vmem:[#allocation19 + $0xf0] sm:$0xff] }
 0x8c7   :  { %3435 = vmatpush.bf16.msrb.mxu2 %v5010_v33  ;;  %v4975_v33 = vld [vmem:[#allocation17 + $0x10] sm:$0xf0] }
 0x8c8   :  { %3423 = vmatpush.bf16.msrb.mxu1 %v4990_v59  ;;  %v4978_v39 = vor.u32 %v5516_v62, %v4975_v33  ;;  %v5570_v7 = vld [vmem:[#allocation19 + $0xb0] sm:$0xff] }
 0x8c9   :  { %3449 = vmatpush.bf16.msra.mxu3 %v4998_v45  ;;  %3462 = vmatpush.bf16.msrb.mxu0 %v5002_v43 }
 0x8cb   :  { %3436 = vmatpush.bf16.msrb.mxu2 %v4994_v13  ;;  %v5579_v13 = vld [vmem:[#allocation19 + $0xf8] sm:$0xff] }
 0x8cc   :  { %3424 = vmatpush.bf16.msrb.mxu1 %v4974_v50  ;;  %v5562_v50 = vld [vmem:[#allocation19 + $0x70] sm:$0xff] }
 0x8cd   :  { %3450 = vmatpush.bf16.msra.mxu3 %v4982_v41  ;;  %3463 = vmatpush.bf16.msrb.mxu0 %v4986_v10  ;;  %v5577_v41 = vld [vmem:[#allocation19 + $0xe8] sm:$0xff] }
 0x8cf   :  { %3437 = vmatpush.bf16.msrb.mxu2 %v4978_v39  ;;  %v5553_v39 = vld [vmem:[#allocation19 + $0x28] sm:$0xff] }
 0x8d0   :  { %3686 = vmatpush.bf16.msra.mxu1 %v5555_v21 }
 0x8d1   :  { %3725 = vmatpush.bf16.msra.mxu0 %v5579_v13  ;;  %3712 = vmatpush.bf16.msrb.mxu3 %v5571_v61 }
 0x8d3   :  { %3699 = vmatpush.bf16.msra.mxu2 %v5563_v2 }
 0x8d4   :  { %3687 = vmatpush.bf16.msra.mxu1 %v5554_v36  ;;  %v5552_v36 = vld [vmem:[#allocation19 + $0x20] sm:$0xff] }
 0x8d5   :  { %3726 = vmatpush.bf16.msra.mxu0 %v5578_v8  ;;  %3713 = vmatpush.bf16.msrb.mxu3 %v5570_v7  ;;  %v5576_v8 = vld [vmem:[#allocation19 + $0xe0] sm:$0xff]  ;;  %v5575_v7 = vld [vmem:[#allocation19 + $0xd8] sm:$0xff] }
 0x8d7   :  { %3700 = vmatpush.bf16.msra.mxu2 %v5562_v50  ;;  %v5551_v50 = vld [vmem:[#allocation19 + $0x18] sm:$0xff] }
 0x8d8   :  { %3688 = vmatpush.bf16.msra.mxu1 %v5553_v39  ;;  %v5550_v39 = vld [vmem:[#allocation19 + $0x10] sm:$0xff] }
 0x8d9   :  { %3727 = vmatpush.bf16.msra.mxu0 %v5577_v41  ;;  %v5574_v41 = vld [vmem:[#allocation19 + $0xd0] sm:$0xff] }
 0x8dc   :  { %3689 = vmatpush.bf16.msra.mxu1 %v5552_v36  ;;  %v5564_v36 = vld [vmem:[#allocation19 + $0x80] sm:$0xff] }
 0x8dd   :  { %3728 = vmatpush.bf16.msra.mxu0 %v5576_v8 }
 0x8e0   :  { %3690 = vmatpush.bf16.msra.mxu1 %v5551_v50  ;;  %v7973_v50 = vld [vmem:[#allocation176_spill] sm:$0xff] }
 0x8e1   :  { %3729 = vmatpush.bf16.msra.mxu0 %v5575_v7  ;;  %v7974_v7 = vld [vmem:[#allocation164_spill] sm:$0xff] }
 0x8e4   :  { %3691 = vmatpush.bf16.msra.mxu1 %v5550_v39  ;;  %v7975_v39 = vld [vmem:[#allocation174_spill] sm:$0xff] }
 0x8e5   :  { %3730 = vmatpush.bf16.msra.mxu0 %v5574_v41  ;;  %v7976_v41 = vld [vmem:[#allocation173_spill] sm:$0xff] }
 0x92d   :  { %v3167_v37 = vpop.f32.mrf.mxu1 }
 0x92f   :  { %v3227_v43 = vpop.f32.mrf.mxu0 }
 0x933   :  { %v3207_v59 = vpop.f32.mrf.mxu3 }
 0x934   :  { %v3228_v62 = vadd.f32 %v3227_v43, %v3207_v59 }
 0x935   :  { %v3187_v34 = vpop.f32.mrf.mxu2 }
 0x936   :  { %v3188_v45 = vadd.f32 %v3187_v34, %v3167_v37 }
 0x938   :  { %v3230_v33 = vmul.f32 %v3188_v45, %v3188_v45  ;;  %v3232_v13 = vsub.f32 %v7343_v26, %v3188_v45  ;;  %v5560_v45 = vld [vmem:[#allocation19 + $0x60] sm:$0xff] }
 0x93a   :  { %v3231_v49 = vsub.f32 %v3228_v62, %v3230_v33  ;;  %v5561_v62 = vld [vmem:[#allocation19 + $0x68] sm:$0xff] }
 0x93b   :  { %v5569_v33 = vld [vmem:[#allocation19 + $0xa8] sm:$0xff]  ;;  %3701 = vmatpush.bf16.msra.mxu2 %v5561_v62 }
 0x93c   :  { %v3233_v35 = vadd.f32 1e-05, %v3231_v49  ;;  %3714 = vmatpush.bf16.msrb.mxu3 %v5569_v33  ;;  %v5568_v49 = vld [vmem:[#allocation19 + $0xa0] sm:$0xff] }
 0x93e   :  { %5644 = vrsqrt.f32 %v3233_v35  ;;  %vm3240_vm11 = vweird.f32 %v3233_v35 }
 0x93f   :  { %3702 = vmatpush.bf16.msra.mxu2 %v5560_v45 }
 0x940   :  { %3715 = vmatpush.bf16.msrb.mxu3 %v5568_v49 }
 0x944   :  { %v5645_v22 = vpop.eup %5644 }
 0x945   :  { %v3235_v10 = vmul.f32 %v5645_v22, %v3233_v35  ;;  %vm3241_vm10 = vweird.f32 %v5645_v22  ;;  %v5559_v35 = vld [vmem:[#allocation19 + $0x58] sm:$0xff] }
 0x946   :  { %vm3242_vm12 = vmor %vm3240_vm11, %vm3241_vm10  ;;  %3703 = vmatpush.bf16.msra.mxu2 %v5559_v35 }
 0x947   :  { %v3236_v37 = vmul.f32 %v5645_v22, %v3235_v10  ;;  %v5549_v10 = vld [vmem:[#allocation19 + $0x8] sm:$0xff] }
 0x948   :  { %3692 = vmatpush.bf16.msra.mxu1 %v5549_v10 }
 0x949   :  { %v3237_v59 = vmul.f32 0.5, %v3236_v37  ;;  %v5573_v37 = vld [vmem:[#allocation19 + $0xc8] sm:$0xff] }
 0x94a   :  { %3731 = vmatpush.bf16.msra.mxu0 %v5573_v37  ;;  %v7978_v37 = vld [vmem:[#allocation170_spill] sm:$0xff] }
 0x94b   :  { %v3238_v34 = vsub.f32 1.5, %v3237_v59  ;;  %v5558_v59 = vld [vmem:[#allocation19 + $0x50] sm:$0xff] }
 0x94c   :  { %3704 = vmatpush.bf16.msra.mxu2 %v5558_v59 }
 0x94d   :  { %v3239_v21 = vmul.f32 %v5645_v22, %v3238_v34  ;;  %v5566_v34 = vld [vmem:[#allocation19 + $0x90] sm:$0xff] }
 0x94f   :  { %v3243_v2 = vsel %vm3242_vm12, %v5645_v22, %v3239_v21  ;;  %v5567_v22 = vld [vmem:[#allocation19 + $0x98] sm:$0xff]  ;;  %v5548_v21 = vld [vmem:[#allocation19] sm:$0xff] }
 0x950   :  { %v3244_v61 = vmul.f32 %v3243_v2, %v3232_v13  ;;  %3716 = vmatpush.bf16.msrb.mxu3 %v5567_v22  ;;  %v5572_v13 = vld [vmem:[#allocation19 + $0xc0] sm:$0xff]  ;;  %3693 = vmatpush.bf16.msra.mxu1 %v5548_v21  ;;  %v5557_v2 = vld [vmem:[#allocation19 + $0x48] sm:$0xff] }
 0x951   :  { %3732 = vmatpush.bf16.msra.mxu0 %v5572_v13  ;;  %3705 = vmatpush.bf16.msra.mxu2 %v5557_v2  ;;  %v7977_v22 = vld [vmem:[#allocation160_spill] sm:$0xff]  ;;  %v7980_v13 = vld [vmem:[#allocation167_spill] sm:$0xff] }
 0x952   :  { %v3245_v43 = vpack.c.bf16 %v3244_v61, %v3244_v61  ;;  %v5565_v61 = vld [vmem:[#allocation19 + $0x88] sm:$0xff] }
 0x954   :  { %3425 = vmatmul.bf16.vlgmr.msrb.gmra.mxu1 %v3245_v43  ;;  %3438 = vmatmul.bf16.vlgmr.msrb.gmra.mxu2 %v3245_v43 }
 0x955   :  { %3451 = vmatmul.bf16.vlgmr.msra.gmra.mxu3 %v3245_v43  ;;  %3464 = vmatmul.bf16.vlgmr.msrb.gmra.mxu0 %v3245_v43  ;;  %v5556_v43 = vld [vmem:[#allocation19 + $0x40] sm:$0xff] }
 0x956   :  { %3717 = vmatpush.bf16.msrb.mxu3 %v5566_v34  ;;  %3740 = vmatpush.msrb.mxu1 %v7124_v0  ;;  %v4970_v0 = vld [vmem:[%s7457_s5 + $0x21] ss:$8 sm:$0xf] }
 0x957   :  { %3800 = vmatpush.msrb.mxu0 %v7290_v40  ;;  %3706 = vmatpush.bf16.msra.mxu2 %v5556_v43  ;;  %v7965_v40 = vld [vmem:[#allocation175_spill] sm:$0xff]  ;;  %v7979_v34 = vld [vmem:[#allocation177_spill] sm:$0xff] }
 0x958   :  { %3741 = vmatpush.msrb.mxu1 %v7128_v28  ;;  %v3249_v28 = vperm.slane %v4970_v0, 0 }
 0x959   :  { %3801 = vmatpush.msrb.mxu0 %v7293_v6  ;;  %v7966_v6 = vld [vmem:[#allocation161_spill] sm:$0xff] }
 0x95a   :  { %3718 = vmatpush.bf16.msrb.mxu3 %v5565_v61  ;;  %3742 = vmatpush.msrb.mxu1 %v7132_v19  ;;  %v3252_v19 = vperm.slane %v4970_v0, 3  ;;  %v7981_v61 = vld [vmem:[#allocation163_spill] sm:$0xff] }
 0x95b   :  { %3802 = vmatpush.msrb.mxu0 %v7296_v54  ;;  %3760 = vmatpush.msrb.mxu2 %v7174_v58 }
 0x95c   :  { %3743 = vmatpush.msrb.mxu1 %v7138_v14 }
 0x95d   :  { %3803 = vmatpush.msrb.mxu0 %v7299_v15  ;;  %3761 = vmatpush.msrb.mxu2 %v7185_v31  ;;  %v7967_v15 = vld [vmem:[#allocation156_spill] sm:$0xff] }
 0x95e   :  { %3719 = vmatpush.bf16.msrb.mxu3 %v5564_v36  ;;  %3744 = vmatpush.msrb.mxu1 %v7142_v47  ;;  %v7982_v36 = vld [vmem:[#allocation171_spill] sm:$0xff] }
 0x95f   :  { %3804 = vmatpush.msrb.mxu0 %v7302_v20  ;;  %3762 = vmatpush.msrb.mxu2 %v7194_v29  ;;  %v3251_v29 = vperm.slane %v4970_v0, 2  ;;  %v7968_v20 = vld [vmem:[#allocation28_spill] sm:$0xff] }
 0x960   :  { %3745 = vmatpush.msrb.mxu1 %v7146_v9  ;;  %v3250_v9 = vperm.slane %v4970_v0, 1 }
 0x961   :  { %3805 = vmatpush.msrb.mxu0 %v7305_v55  ;;  %3763 = vmatpush.msrb.mxu2 %v7203_v23 }
 0x962   :  { %3780 = vmatpush.msra.mxu3 %v7177_v38  ;;  %3746 = vmatpush.msrb.mxu1 %v7150_v51 }
 0x963   :  { %3806 = vmatpush.msrb.mxu0 %v7308_v32  ;;  %3764 = vmatpush.msrb.mxu2 %v7212_v11  ;;  %v7969_v32 = vld [vmem:[#allocation158_spill] sm:$0xff] }
 0x964   :  { %3781 = vmatpush.msra.mxu3 %v7188_v25  ;;  %3747 = vmatpush.msrb.mxu1 %v7154_v30 }
 0x965   :  { %3807 = vmatpush.msrb.mxu0 %v7312_v46  ;;  %3765 = vmatpush.msrb.mxu2 %v7220_v53  ;;  %v7970_v46 = vld [vmem:[#allocation168_spill] sm:$0xff] }
 0x966   :  { %3782 = vmatpush.msra.mxu3 %v7197_v1  ;;  %3748 = vmatpush.msrb.mxu1 %v7158_v52 }
 0x967   :  { %3808 = vmatpush.msrb.mxu0 %v7315_v3  ;;  %3766 = vmatpush.msrb.mxu2 %v7226_v5  ;;  %v7961_v5 = vld [vmem:[#allocation157_spill] sm:$0xff] }
 0x968   :  { %3783 = vmatpush.msra.mxu3 %v7206_v24  ;;  %3749 = vmatpush.msrb.mxu1 %v7162_v56 }
 0x969   :  { %3809 = vmatpush.msrb.mxu0 %v7318_v12  ;;  %3767 = vmatpush.msrb.mxu2 %v7232_v60  ;;  %v7963_v60 = vld [vmem:[#allocation162_spill] sm:$0xff] }
 0x96a   :  { %3784 = vmatpush.msra.mxu3 %v7215_v44  ;;  %3750 = vmatpush.msrb.mxu1 %v7166_v4 }
 0x96b   :  { %3810 = vmatpush.msrb.mxu0 %v7321_v48  ;;  %3768 = vmatpush.msrb.mxu2 %v7238_v17  ;;  %v7971_v48 = vld [vmem:[#allocation159_spill] sm:$0xff] }
 0x96c   :  { %3785 = vmatpush.msra.mxu3 %v7223_v27  ;;  %3751 = vmatpush.msrb.mxu1 %v7170_v57 }
 0x96d   :  { %3811 = vmatpush.msrb.mxu0 %v7324_v63  ;;  %v7972_v63 = vld [vmem:[#allocation166_spill] sm:$0xff] }
 0x96e   :  { %3786 = vmatpush.msra.mxu3 %v7229_v42  ;;  %v7962_v42 = vld [vmem:[#allocation165_spill] sm:$0xff]  ;;  %3752 = vmatpush.msrb.mxu1 %v7963_v60 }
 0x96f   :  { %3769 = vmatpush.msrb.mxu2 %v7962_v42 }
 0x970   :  { %3787 = vmatpush.msra.mxu3 %v7235_v18  ;;  %v7964_v18 = vld [vmem:[#allocation172_spill] sm:$0xff]  ;;  %3753 = vmatpush.msrb.mxu1 %v7967_v15 }
 0x971   :  { %3812 = vmatpush.msrb.mxu0 %v7964_v18  ;;  %3770 = vmatpush.msrb.mxu2 %v7966_v6 }
 0x972   :  { %3788 = vmatpush.msra.mxu3 %v7241_v16  ;;  %3754 = vmatpush.msrb.mxu1 %v7971_v48 }
 0x973   :  { %3813 = vmatpush.msrb.mxu0 %v7968_v20  ;;  %3771 = vmatpush.msrb.mxu2 %v7970_v46 }
 0x974   :  { %3789 = vmatpush.msra.mxu3 %v7961_v5  ;;  %3755 = vmatpush.msrb.mxu1 %v7975_v39 }
 0x975   :  { %3814 = vmatpush.msrb.mxu0 %v7972_v63  ;;  %3772 = vmatpush.msrb.mxu2 %v7974_v7  ;;  %v3852_v63 = vld [vmem:[%s7457_s5 + $0x2] ss:$0 sm:$0xff] }
 0x976   :  { %3790 = vmatpush.msra.mxu3 %v7965_v40 }
 0x977   :  { %3815 = vmatpush.msrb.mxu0 %v7976_v41  ;;  %3773 = vmatpush.msrb.mxu2 %v7978_v37 }
 0x978   :  { %3791 = vmatpush.msra.mxu3 %v7969_v32 }
 0x979   :  { %3774 = vmatpush.msrb.mxu2 %v7980_v13 }
 0x97a   :  { %3792 = vmatpush.msra.mxu3 %v7973_v50 }
 0x97b   :  { %3775 = vmatpush.msrb.mxu2 %v7982_v36 }
 0x97c   :  { %3793 = vmatpush.msra.mxu3 %v7977_v22 }
 0x97e   :  { %3794 = vmatpush.msra.mxu3 %v7979_v34 }
 0x980   :  { %3795 = vmatpush.msra.mxu3 %v7981_v61 }
 0x9d1   :  { %v3426_v14 = vpop.f32.mrf.mxu1 }
 0x9d2   :  { %v3427_v58 = vadd.f32 %v3426_v14, %v3249_v28  ;;  %v3465_v38 = vpop.f32.mrf.mxu0 }
 0x9d3   :  { %v3466_v47 = vadd.f32 %v3465_v38, %v3252_v19  ;;  %v3493_v19 = vld [vmem:[%s7457_s5 + $0x22] ss:$0 sm:$0xff] }
 0x9d4   :  { %v3469_v31 = vmul.f32 0.5, %v3427_v58 }
 0x9d5   :  { %v3472_v25 = vmul.f32 0.5, %v3466_v47 }
 0x9d6   :  { %5646 = vtanh.f32 %v3469_v31 }
 0x9d7   :  { %5648 = vtanh.f32 %v3472_v25  ;;  %v3439_v51 = vpop.f32.mrf.mxu2 }
 0x9d8   :  { %v3440_v30 = vadd.f32 %v3439_v51, %v3250_v9  ;;  %v3452_v1 = vpop.f32.mrf.mxu3 }
 0x9d9   :  { %v3453_v23 = vadd.f32 %v3452_v1, %v3251_v29  ;;  %v3428_v24 = vpop.f32.mrf.mxu1 }
 0x9da   :  { %v3470_v52 = vmul.f32 0.5, %v3440_v30  ;;  %v3467_v11 = vpop.f32.mrf.mxu0  ;;  %v5587_v24 = vld [vmem:[%s7456_s4 + $0x38] sm:$0xff] }
 0x9db   :  { %v3471_v44 = vmul.f32 0.5, %v3453_v23  ;;  %v5584_v11 = vld [vmem:[%s7456_s4 + $0x20] sm:$0xff] }
 0x9dc   :  { %v5647_v56 = vpop.eup %5646  ;;  %5650 = vtanh.f32 %v3470_v52  ;;  %v5586_v52 = vld [vmem:[%s7456_s4 + $0x30] sm:$0xff] }
 0x9dd   :  { %v5649_v53 = vpop.eup %5648  ;;  %v3477_v27 = vmul.f32 0.5, %v5647_v56  ;;  %5652 = vtanh.f32 %v3471_v44  ;;  %v5583_v44 = vld [vmem:[%s7456_s4 + $0x18] sm:$0xff]  ;;  %v5582_v56 = vld [vmem:[%s7456_s4 + $0x10] sm:$0xff] }
 0x9de   :  { %v3480_v4 = vmul.f32 0.5, %v5649_v53  ;;  %v5581_v53 = vld [vmem:[%s7456_s4 + $0x8] sm:$0xff] }
 0x9df   :  { %v3481_v16 = vadd.f32 0.5, %v3477_v27  ;;  %v3441_v17 = vpop.f32.mrf.mxu2  ;;  %v5580_v27 = vld [vmem:[%s7456_s4] sm:$0xff] }
 0x9e0   :  { %v3484_v57 = vadd.f32 0.5, %v3480_v4  ;;  %v3454_v54 = vpop.f32.mrf.mxu3 }
 0x9e1   :  { %v3485_v55 = vmul.f32 %v3481_v16, %v3427_v58 }
 0x9e2   :  { %v5651_v3 = vpop.eup %5650  ;;  %v3488_v12 = vmul.f32 %v3484_v57, %v3466_v47 }
 0x9e3   :  { %v5653_v8 = vpop.eup %5652  ;;  %v3489_v62 = vpack.c.bf16 %v3485_v55, %v3485_v55  ;;  %v3478_v33 = vmul.f32 0.5, %v5651_v3 }
 0x9e4   :  { %v3492_v45 = vpack.c.bf16 %v3488_v12, %v3488_v12  ;;  %v3479_v49 = vmul.f32 0.5, %v5653_v8 }
 0x9e5   :  { %v3482_v35 = vadd.f32 0.5, %v3478_v33  ;;  %3694 = vmatmul.bf16.vlgmr.msra.gmra.mxu1 %v3489_v62 }
 0x9e6   :  { %v3483_v10 = vadd.f32 0.5, %v3479_v49  ;;  %3733 = vmatmul.bf16.vlgmr.msra.gmra.mxu0 %v3492_v45  ;;  %3901 = vmatpush.bf16.msra.mxu1 %v5587_v24 }
 0x9e7   :  { %v3486_v59 = vmul.f32 %v3482_v35, %v3440_v30 }
 0x9e8   :  { %v3487_v21 = vmul.f32 %v3483_v10, %v3453_v23 }
 0x9e9   :  { %v3490_v2 = vpack.c.bf16 %v3486_v59, %v3486_v59 }
 0x9ea   :  { %v3491_v43 = vpack.c.bf16 %v3487_v21, %v3487_v21  ;;  %3902 = vmatpush.bf16.msra.mxu1 %v5586_v52 }
 0x9eb   :  { %3707 = vmatmul.bf16.vlgmr.msra.gmra.mxu2 %v3490_v2 }
 0x9ec   :  { %3720 = vmatmul.bf16.vlgmr.msrb.gmra.mxu3 %v3491_v43 }
 0xa62   :  { %v3695_v0 = vpop.f32.mrf.mxu1 }
 0xa63   :  { %v3734_v28 = vpop.f32.mrf.mxu0  ;;  %v3696_v38 = vadd.f32 %v3695_v0, %v3493_v19 }
 0xa6a   :  { %v3697_v14 = vpop.f32.mrf.mxu1 }
 0xa6b   :  { %v3736_v58 = vpop.f32.mrf.mxu0 }
 0xa6e   :  { %v3708_v47 = vpop.f32.mrf.mxu2 }
 0xa6f   :  { %v3709_v31 = vadd.f32 %v3708_v47, %v3696_v38  ;;  %v3721_v9 = vpop.f32.mrf.mxu3 }
 0xa71   :  { %v3722_v25 = vadd.f32 %v3721_v9, %v3709_v31 }
 0xa73   :  { %v3735_v29 = vadd.f32 %v3734_v28, %v3722_v25 }
 0xa75   :  { %v3738_v51 = vadd.f32 %v3735_v29, %v7343_v26  ;;  %v5585_v26 = vld [vmem:[%s7456_s4 + $0x28] sm:$0xff] }
 0xa76   :  { %v3710_v30 = vpop.f32.mrf.mxu2  ;;  %3903 = vmatpush.bf16.msra.mxu1 %v5585_v26 }
 0xa77   :  { %v3723_v1 = vpop.f32.mrf.mxu3  ;;  %3756 = vmatmul.f32.vlgmr.msrb.gmra.mxu1 %v3738_v51  ;;  %3796 = vmatmul.f32.vlgmr.msra.gmra.mxu3 %v3738_v51  ;;  %v3739_v23 = vmul.f32 %v3738_v51, %v3738_v51 }
 0xa79   :  { %3776 = vmatmul.f32.vlgmr.msrb.gmra.mxu2 %v3739_v23  ;;  %3816 = vmatmul.f32.vlgmr.msrb.gmra.mxu0 %v3739_v23 }
 0xa7a   :  { %3904 = vmatpush.bf16.msra.mxu1 %v5584_v11 }
 0xa7e   :  { %3905 = vmatpush.bf16.msra.mxu1 %v5583_v44 }
 0xa82   :  { %3906 = vmatpush.bf16.msra.mxu1 %v5582_v56 }
 0xa86   :  { %3907 = vmatpush.bf16.msra.mxu1 %v5581_v53 }
 0xa8a   :  { %3908 = vmatpush.bf16.msra.mxu1 %v5580_v27 }
 0xaf4   :  { %v3757_v5 = vpop.f32.mrf.mxu1 }
 0xaf6   :  { %v3817_v18 = vpop.f32.mrf.mxu0 }
 0xafa   :  { %v3797_v42 = vpop.f32.mrf.mxu3 }
 0xafb   :  { %v3818_v16 = vadd.f32 %v3817_v18, %v3797_v42 }
 0xafc   :  { %v3777_v4 = vpop.f32.mrf.mxu2 }
 0xafd   :  { %v3778_v60 = vadd.f32 %v3777_v4, %v3757_v5 }
 0xaff   :  { %v3820_v17 = vmul.f32 %v3778_v60, %v3778_v60  ;;  %v3822_v46 = vsub.f32 %v3738_v51, %v3778_v60 }
 0xb01   :  { %v3821_v40 = vsub.f32 %v3818_v16, %v3820_v17 }
 0xb03   :  { %v3823_v6 = vadd.f32 1e-05, %v3821_v40 }
 0xb05   :  { %5654 = vrsqrt.f32 %v3823_v6  ;;  %vm3830_vm14 = vweird.f32 %v3823_v6 }
 0xb0b   :  { %v5655_v57 = vpop.eup %5654 }
 0xb0c   :  { %v3825_v54 = vmul.f32 %v5655_v57, %v3823_v6  ;;  %vm3831_vm13 = vweird.f32 %v5655_v57 }
 0xb0d   :  { %vm3832_vm15 = vmor %vm3830_vm14, %vm3831_vm13 }
 0xb0e   :  { %v3826_v15 = vmul.f32 %v5655_v57, %v3825_v54 }
 0xb10   :  { %v3827_v20 = vmul.f32 0.5, %v3826_v15 }
 0xb12   :  { %v3828_v55 = vsub.f32 1.5, %v3827_v20 }
 0xb14   :  { %v3829_v32 = vmul.f32 %v5655_v57, %v3828_v55 }
 0xb16   :  { %v3833_v3 = vsel %vm3832_vm15, %v5655_v57, %v3829_v32 }
 0xb17   :  { %v3834_v12 = vmul.f32 %v3833_v3, %v3822_v46 }
 0xb19   :  { %v3835_v48 = vpack.c.bf16 %v3834_v12, %v3834_v12 }
 0xb1b   :  { %3909 = vmatmul.bf16.vlgmr.msra.gmra.mxu1 %v3835_v48 }
 0xb98   :  { %v3910_v8 = vpop.f32.mrf.mxu1 }
 0xb99   :  { %v3911_v62 = vadd.f32 %v3910_v8, %v3852_v63 }
 0xb9b   :  { %v3914_v33 = vmax.f32 %v3911_v62, 0.0 }
 0xb9d   :  { %3915 = vst.msk [vmem:[#allocation20] sm:$0xff] %vm423_vm0, %v3914_v33 }
 0xb9e   :  { %3926 = dma.vmem_to_hbm [thread:$0]  %s3922_s24, 128, %s3924_s7, [#allocation4]  }
 0xba0   :  { %v3912_v50 = vpop.f32.mrf.mxu1 }
 0xba1   :  { %6084 = dma.done.wait [#allocation4], 128  }
 0xba2   :  { %6085 = vsyncadd [#allocation4], 4294967168 }
 0xba3   :  { %3931 = vsyncpa [#allocation3], 1 }
 0xba4   :  { %3932 = vsyncpa [#allocation6], 1 }
 0xba5   :  { %3933 = vsyncpa [#allocation9], 1 }
 0xba6   :  { %3934 = vsyncpa [#allocation12], 1 }
 0xba7   :  { %3935 = vsyncpa [#allocation15], 1 }
 0xba8   :  { %3936 = vsyncpa [#allocation18], 1 }
 0xba9   :  { %3937 = vsyncpa [#allocation4], 1 }

</bundles_post_ra>
